<compile_context>
chip_gen: v7x
topology: tpu7x:2x2x1
jax: 0.10.0
libtpu: 0.0.40
codegen_flags: <defaults>
</compile_context>

<pallas_src>
import functools

import jax
import jax.numpy as jnp
import numpy as np
from jax.experimental import pallas as pl
from jax.experimental.pallas import tpu as pltpu

HIDDEN = 32                   # hidden_size
OUTPUT = 64                   # output_size (vocabulary)
MAXLEN = 128                  # max_length (stand-in for 250; lane-aligned)
GPAD = 128                    # per-GRU-gate lane padding (one full vreg lane block)
NBIG = MAXLEN + 4 * GPAD      # fused [attn | r | z | n | combine] matmul width
PACK = MAXLEN + GPAD          # packed per-step output width: [attn_w | logp | junk]
STEPS_PER_CHUNK = 8           # decode steps per grid iteration


def attn_decoder_chunk_kernel(
    emb_ref,     # (S, 1, H)       bf16 embedded input tokens for this chunk
    h0_ref,      # (1, GPAD)       f32 initial hidden, zero-padded to 128 lanes
    enc_ref,     # (MAXLEN, H)     bf16 encoder outputs (VMEM-resident)
    wbig_ref,    # (2H, NBIG)      bf16 fused [attn | Whr | Whz | Whn | Wc_e]
    bbig_ref,    # (1, NBIG)       f32  fused [ba  | bhr | bhz | bhn | bc  ]
    wca_ref,     # (H, H)          bf16 attn_combine weight (attn_applied half)
    wi_ref,      # (H, 3*GPAD)     bf16 x-path GRU gate weights, 128-lane blocks/gate
    bi_ref,      # (1, 3*GPAD)     f32
    wo_ref,      # (GPAD, OUTPUT)  bf16 out weight, zero rows H:GPAD
    bo_ref,      # (1, OUTPUT)     f32
    out_ref,     # (S, 1, PACK)    f32 per-step packed output: [attn_w | logp]
    h_ref,       # (1, GPAD)       f32 hidden carry (resident) / final hidden
    *, seq_len, steps,
):
    c = pl.program_id(0)

    @pl.when(c == 0)
    def _():
        h_ref[...] = h0_ref[...]

    h_pad = h_ref[...]            # (1, GPAD) f32; lanes >= HIDDEN stay exactly 0
    # TODO(synk): nn.Dropout omitted (eval-mode identity; no RNG dropout in kernel).

    # S decode steps, fully unrolled (static trip count == fori_loop(unroll=True)),
    # hidden carried in vregs; h_ref flushed once at the chunk boundary.
    for i in range(steps):
        emb = emb_ref[i]                                        # (1, H) bf16
        h_b = h_pad[:, :HIDDEN].astype(jnp.bfloat16)
        xh = jnp.concatenate([emb, h_b], axis=1)                # (1, 2H) bf16

        # One fused MXU pass: [emb|h] @ [attn | Whr | Whz | Whn | Wc_e]
        big = jnp.dot(xh, wbig_ref[...],
                      preferred_element_type=jnp.float32) + bbig_ref[...]
        logits = big[:, :MAXLEN]                                # attention logits
        gh = big[:, MAXLEN:MAXLEN + 3 * GPAD]                   # h-path GRU pre-acts (+bh)
        cemb = big[:, MAXLEN + 3 * GPAD:MAXLEN + 3 * GPAD + HIDDEN]  # emb@wc_e + bc

        # attn_weights = softmax(logits)
        m = jnp.max(logits, axis=1, keepdims=True)
        e = jnp.exp(logits - m)
        attn_w = e * pl.reciprocal(jnp.sum(e, axis=1, keepdims=True), approx=True)
        out_ref[i, :, 0:MAXLEN] = attn_w

        # attn_applied = attn_weights @ encoder_outputs
        attn_applied = jnp.dot(attn_w.astype(jnp.bfloat16), enc_ref[...],
                               preferred_element_type=jnp.float32)   # (1, H)

        # relu(attn_combine(cat(embedded, attn_applied)))  (emb half pre-folded)
        x = jnp.maximum(
            jnp.dot(attn_applied.astype(jnp.bfloat16), wca_ref[...],
                    preferred_element_type=jnp.float32) + cemb, 0.0)

        # Single-step GRU (PyTorch gate order r, z, n); x-path gates in one matmul.
        gx = jnp.dot(x.astype(jnp.bfloat16), wi_ref[...],
                     preferred_element_type=jnp.float32) + bi_ref[...]  # (1, 3*GPAD)
        rz = jax.nn.sigmoid(gx[:, :2 * GPAD] + gh[:, :2 * GPAD])
        r = rz[:, :GPAD]
        z = rz[:, GPAD:]
        n = jnp.tanh(gx[:, 2 * GPAD:] + r * gh[:, 2 * GPAD:])
        h_new = (1.0 - z) * n + z * h_pad        # padded lanes never leak into real ones

        # output = log_softmax(out(h_new), dim=1)  (padded rows of wo are zero)
        ologits = jnp.dot(h_new.astype(jnp.bfloat16), wo_ref[...],
                          preferred_element_type=jnp.float32) + bo_ref[...]
        m2 = jnp.max(ologits, axis=1, keepdims=True)
        lse = jnp.log(jnp.sum(jnp.exp(ologits - m2), axis=1, keepdims=True)) + m2
        out_ref[i, :, MAXLEN:MAXLEN + OUTPUT] = ologits - lse

        # Tail-of-sequence padding steps must not advance the hidden carry.
        valid = (c * steps + i) < seq_len
        h_pad = jnp.where(valid, h_new, h_pad)

    h_ref[...] = h_pad


def pack_params(p):
    """Host-side, one-time repack of the natural (PyTorch-equivalent) parameters."""
    H, O, L, G = HIDDEN, OUTPUT, MAXLEN, GPAD
    f32, bf16 = jnp.float32, jnp.bfloat16

    # Rows = [emb | h]; columns = [attn(L) | r(G) | z(G) | n(G) | combine(G)]
    wbig = jnp.zeros((2 * H, NBIG), f32)
    wbig = wbig.at[0:H, 0:L].set(p["wa_e"])
    wbig = wbig.at[H:2 * H, 0:L].set(p["wa_h"])
    wbig = wbig.at[H:2 * H, L:L + H].set(p["whr"])
    wbig = wbig.at[H:2 * H, L + G:L + G + H].set(p["whz"])
    wbig = wbig.at[H:2 * H, L + 2 * G:L + 2 * G + H].set(p["whn"])
    wbig = wbig.at[0:H, L + 3 * G:L + 3 * G + H].set(p["wc_e"])      # combine (emb rows)
    bbig = jnp.zeros((1, NBIG), f32)
    bbig = bbig.at[:, 0:L].set(p["ba"])
    bbig = bbig.at[:, L:L + H].set(p["bhr"])
    bbig = bbig.at[:, L + G:L + G + H].set(p["bhz"])
    bbig = bbig.at[:, L + 2 * G:L + 2 * G + H].set(p["bhn"])
    bbig = bbig.at[:, L + 3 * G:L + 3 * G + H].set(p["bc"])

    wi = jnp.zeros((H, 3 * G), f32)
    wi = wi.at[:, 0:H].set(p["wir"]).at[:, G:G + H].set(p["wiz"]).at[:, 2 * G:2 * G + H].set(p["win"])
    bi = jnp.zeros((1, 3 * G), f32)
    bi = bi.at[:, 0:H].set(p["bir"]).at[:, G:G + H].set(p["biz"]).at[:, 2 * G:2 * G + H].set(p["bin"])

    wo = jnp.zeros((G, O), f32).at[0:H, :].set(p["wo"])

    # Weights (matmul operands) -> bf16; biases stay f32 (added post-accumulation).
    return {"wbig": wbig.astype(bf16), "bbig": bbig,
            "wca": p["wc_a"].astype(bf16),
            "wi": wi.astype(bf16), "bi": bi,
            "wo": wo.astype(bf16), "bo": p["bo"]}


def attn_decoder_forward_seq(tokens, hidden, encoder_outputs, params, packed=None,
                             steps_per_chunk=STEPS_PER_CHUNK):
    """tokens: int32 (T,) teacher-forced inputs; hidden: (1,1,H); encoder_outputs: (MAXLEN,H).
    Returns (log_probs (T, OUTPUT), final hidden (1,1,H), attn_weights (T, MAXLEN))."""
    if packed is None:
        packed = pack_params(params)
    T = int(tokens.shape[0])
    S = max(1, min(int(steps_per_chunk), T))
    C = pl.cdiv(T, S)
    Tpad = C * S

    # Embedding lookup hoisted out of the kernel; matmul operands cast to bf16.
    emb_seq = jnp.take(params["emb"], tokens, axis=0).astype(jnp.bfloat16).reshape(T, 1, HIDDEN)
    if Tpad > T:
        emb_seq = jnp.concatenate(
            [emb_seq, jnp.zeros((Tpad - T, 1, HIDDEN), jnp.bfloat16)], axis=0)
    h0 = jnp.zeros((1, GPAD), jnp.float32).at[:, :HIDDEN].set(hidden.reshape(1, HIDDEN))
    enc = encoder_outputs.astype(jnp.bfloat16)

    kernel = functools.partial(attn_decoder_chunk_kernel, seq_len=T, steps=S)

    const2 = lambda c: (0, 0)
    in_specs = [
        pl.BlockSpec((S, 1, HIDDEN), lambda c: (c, 0, 0)),      # embedded tokens per chunk
        pl.BlockSpec((1, GPAD), const2),                        # initial hidden
        pl.BlockSpec((MAXLEN, HIDDEN), const2),                 # encoder outputs (resident)
        pl.BlockSpec((2 * HIDDEN, NBIG), const2),
        pl.BlockSpec((1, NBIG), const2),
        pl.BlockSpec((HIDDEN, HIDDEN), const2),
        pl.BlockSpec((HIDDEN, 3 * GPAD), const2),
        pl.BlockSpec((1, 3 * GPAD), const2),
        pl.BlockSpec((GPAD, OUTPUT), const2),
        pl.BlockSpec((1, OUTPUT), const2),
    ]
    out_specs = (
        pl.BlockSpec((S, 1, PACK), lambda c: (c, 0, 0)),        # per-step [attn_w | logp] slab
        pl.BlockSpec((1, GPAD), const2),                        # hidden carry / final hidden
    )
    out_shape = (
        jax.ShapeDtypeStruct((Tpad, 1, PACK), jnp.float32),
        jax.ShapeDtypeStruct((1, GPAD), jnp.float32),
    )

    packed_out, h_fin = pl.pallas_call(
        kernel,
        grid=(C,),
        in_specs=in_specs,
        out_specs=out_specs,
        out_shape=out_shape,
        compiler_params=pltpu.CompilerParams(dimension_semantics=("arbitrary",)),
    )(emb_seq, h0, enc,
      packed["wbig"], packed["bbig"], packed["wca"],
      packed["wi"], packed["bi"], packed["wo"], packed["bo"])

    attn_w = packed_out[:T, 0, :MAXLEN]
    logp = packed_out[:T, 0, MAXLEN:MAXLEN + OUTPUT]
    return logp, h_fin[:, :HIDDEN].reshape(1, 1, HIDDEN), attn_w


def attn_decoder_forward(token, hidden, encoder_outputs, params, packed=None):
    """Module-equivalent single decode step. token: int32 (1,)."""
    logp, h_new, attn_w = attn_decoder_forward_seq(
        token.reshape(1), hidden, encoder_outputs, params, packed)
    return logp, h_new, attn_w


def make_params(key):
    """Deterministic synthetic parameters matching the module's shapes (natural layout)."""
    ks = jax.random.split(key, 24)
    u = lambda k, shape, scale=0.1: jax.random.uniform(
        k, shape, jnp.float32, minval=-scale, maxval=scale)
    H, O, L = HIDDEN, OUTPUT, MAXLEN
    return {
        "emb":  jax.random.normal(ks[0], (O, H), jnp.float32),
        # attn: Linear(2H, L) -> split by input rows (embedded part / hidden part)
        "wa_e": u(ks[1], (H, L)), "wa_h": u(ks[2], (H, L)), "ba": u(ks[3], (1, L)),
        # attn_combine: Linear(2H, H)
        "wc_e": u(ks[4], (H, H)), "wc_a": u(ks[5], (H, H)), "bc": u(ks[6], (1, H)),
        # GRU(H, H) per-gate weights/biases
        "wir": u(ks[7], (H, H)), "wiz": u(ks[8], (H, H)), "win": u(ks[9], (H, H)),
        "whr": u(ks[10], (H, H)), "whz": u(ks[11], (H, H)), "whn": u(ks[12], (H, H)),
        "bir": u(ks[13], (1, H)), "biz": u(ks[14], (1, H)), "bin": u(ks[15], (1, H)),
        "bhr": u(ks[16], (1, H)), "bhz": u(ks[17], (1, H)), "bhn": u(ks[18], (1, H)),
        # out: Linear(H, O)
        "wo": u(ks[19], (H, O)), "bo": u(ks[20], (1, O)),
    }


def reference_forward_step(token, hidden, enc, p):
    """Pure-JAX f32 reference mirroring the PyTorch forward (eval mode)."""
    emb = p["emb"][token][None, :]
    h = hidden.reshape(1, HIDDEN)
    logits = emb @ p["wa_e"] + h @ p["wa_h"] + p["ba"]
    attn_w = jax.nn.softmax(logits, axis=1)
    attn_applied = attn_w @ enc
    x = jnp.maximum(emb @ p["wc_e"] + attn_applied @ p["wc_a"] + p["bc"], 0.0)
    r = jax.nn.sigmoid(x @ p["wir"] + p["bir"] + h @ p["whr"] + p["bhr"])
    z = jax.nn.sigmoid(x @ p["wiz"] + p["biz"] + h @ p["whz"] + p["bhz"])
    n = jnp.tanh(x @ p["win"] + p["bin"] + r * (h @ p["whn"] + p["bhn"]))
    h_new = (1.0 - z) * n + z * h
    out = jax.nn.log_softmax(h_new @ p["wo"] + p["bo"], axis=1)
    return out, h_new.reshape(1, 1, HIDDEN), attn_w


def reference_forward_seq(tokens, hidden, enc, p):
    logps, attns, h = [], [], hidden
    for t in range(tokens.shape[0]):
        lp, h, aw = reference_forward_step(int(tokens[t]), h, enc, p)
        logps.append(lp)
        attns.append(aw)
    return jnp.concatenate(logps, axis=0), h, jnp.concatenate(attns, axis=0)


if __name__ == "__main__":
    key = jax.random.PRNGKey(0)
    kp, kh, ke, kt = jax.random.split(key, 4)

    params = make_params(kp)
    packed = pack_params(params)

    # T deliberately not a multiple of STEPS_PER_CHUNK to exercise the tail-masking path.
    T = 11
    tokens = jax.random.randint(kt, (T,), 0, OUTPUT, dtype=jnp.int32)      # teacher-forced inputs
    hidden0 = jax.random.normal(kh, (1, 1, HIDDEN), jnp.float32)
    encoder_outputs = jax.random.normal(ke, (MAXLEN, HIDDEN), jnp.float32)

    # Multi-step decode: whole loop runs inside one pallas_call (2 grid chunks of 8 steps).
    logp, h_fin, attn_w = attn_decoder_forward_seq(tokens, hidden0, encoder_outputs, params, packed)
    jax.block_until_ready((logp, h_fin, attn_w))

    ref_logp, ref_h, ref_attn = reference_forward_seq(tokens, hidden0, encoder_outputs, params)
    assert logp.shape == (T, OUTPUT) and h_fin.shape == (1, 1, HIDDEN) and attn_w.shape == (T, MAXLEN)
    # bf16 matmul operands + approx reciprocal over an 11-step recurrence -> ~1e-2 tolerance.
    TOL = dict(rtol=1e-2, atol=1e-2)
    np.testing.assert_allclose(np.asarray(logp), np.asarray(ref_logp), **TOL)
    np.testing.assert_allclose(np.asarray(h_fin), np.asarray(ref_h), **TOL)
    np.testing.assert_allclose(np.asarray(attn_w), np.asarray(ref_attn), **TOL)

    # Single-step, module-equivalent call (same semantics as AttnDecoderRNN.forward).
    lp1, h1, aw1 = attn_decoder_forward(tokens[0:1], hidden0, encoder_outputs, params, packed)
    jax.block_until_ready((lp1, h1, aw1))
    r_lp1, r_h1, r_aw1 = reference_forward_step(int(tokens[0]), hidden0, encoder_outputs, params)
    assert lp1.shape == (1, OUTPUT) and h1.shape == (1, 1, HIDDEN) and aw1.shape == (1, MAXLEN)
    np.testing.assert_allclose(np.asarray(lp1), np.asarray(r_lp1), **TOL)
    np.testing.assert_allclose(np.asarray(h1), np.asarray(r_h1), **TOL)
    np.testing.assert_allclose(np.asarray(aw1), np.asarray(r_aw1), **TOL)

    print("KERNEL_OK")
</pallas_src>

<mosaic_0001>
module attributes {stable_mosaic.version = 11 : i64} {
  func.func @attn_decoder_chunk_kernel(%arg0: i32, %arg1: memref<8x1x32xbf16, #tpu.memory_space<vmem>>, %arg2: memref<1x128xf32, #tpu.memory_space<vmem>>, %arg3: memref<128x32xbf16, #tpu.memory_space<vmem>>, %arg4: memref<64x640xbf16, #tpu.memory_space<vmem>>, %arg5: memref<1x640xf32, #tpu.memory_space<vmem>>, %arg6: memref<32x32xbf16, #tpu.memory_space<vmem>>, %arg7: memref<32x384xbf16, #tpu.memory_space<vmem>>, %arg8: memref<1x384xf32, #tpu.memory_space<vmem>>, %arg9: memref<128x64xbf16, #tpu.memory_space<vmem>>, %arg10: memref<1x64xf32, #tpu.memory_space<vmem>>, %arg11: memref<8x1x256xf32, #tpu.memory_space<vmem>>, %arg12: memref<1x128xf32, #tpu.memory_space<vmem>>) attributes {dimension_semantics = [#tpu.dimension_semantics<arbitrary>], iteration_bounds = array<i64: 2>, scalar_prefetch = 0 : i64, scratch_operands = 0 : i64, tpu.core_type = #tpu.core_type<tc>, window_params = [{transform_indices = @transform_0, window_bounds = array<i64: 8, 1, 32>}, {pipeline_mode = #tpu.pipeline_mode<synchronous>, transform_indices = @transform_1, window_bounds = array<i64: 1, 128>}, {pipeline_mode = #tpu.pipeline_mode<synchronous>, transform_indices = @transform_2, window_bounds = array<i64: 128, 32>}, {pipeline_mode = #tpu.pipeline_mode<synchronous>, transform_indices = @transform_3, window_bounds = array<i64: 64, 640>}, {pipeline_mode = #tpu.pipeline_mode<synchronous>, transform_indices = @transform_4, window_bounds = array<i64: 1, 640>}, {pipeline_mode = #tpu.pipeline_mode<synchronous>, transform_indices = @transform_5, window_bounds = array<i64: 32, 32>}, {pipeline_mode = #tpu.pipeline_mode<synchronous>, transform_indices = @transform_6, window_bounds = array<i64: 32, 384>}, {pipeline_mode = #tpu.pipeline_mode<synchronous>, transform_indices = @transform_7, window_bounds = array<i64: 1, 384>}, {pipeline_mode = #tpu.pipeline_mode<synchronous>, transform_indices = @transform_8, window_bounds = array<i64: 128, 64>}, {pipeline_mode = #tpu.pipeline_mode<synchronous>, transform_indices = @transform_9, window_bounds = array<i64: 1, 64>}, {transform_indices = @transform_10, window_bounds = array<i64: 8, 1, 256>}, {pipeline_mode = #tpu.pipeline_mode<synchronous>, transform_indices = @transform_11, window_bounds = array<i64: 1, 128>}]} {
    %c0_i32 = arith.constant 0 : i32
    %0 = arith.cmpi eq, %arg0, %c0_i32 : i32
    %1 = arith.extui %0 : i1 to i32
    %c0_i32_0 = arith.constant 0 : i32
    %2 = arith.cmpi ne, %1, %c0_i32_0 : i32
    scf.if %2 {
      %c0_306 = arith.constant 0 : index
      %c0_307 = arith.constant 0 : index
      %661 = vector.load %arg2[%c0_306, %c0_307] : memref<1x128xf32, #tpu.memory_space<vmem>>, vector<1x128xf32>
      %c0_308 = arith.constant 0 : index
      %c0_309 = arith.constant 0 : index
      %662 = vector.load %arg12[%c0_308, %c0_309] : memref<1x128xf32, #tpu.memory_space<vmem>>, vector<1x128xf32>
      tpu.vector_store %arg12[%c0_308, %c0_309], %661 {strides = array<i32>} : memref<1x128xf32, #tpu.memory_space<vmem>>, vector<1x128xf32>,
    } else {
    }
    %c0 = arith.constant 0 : index
    %c0_1 = arith.constant 0 : index
    %3 = vector.load %arg12[%c0, %c0_1] : memref<1x128xf32, #tpu.memory_space<vmem>>, vector<1x128xf32>
    %c0_2 = arith.constant 0 : index
    %c0_3 = arith.constant 0 : index
    %c0_4 = arith.constant 0 : index
    %4 = vector.load %arg1[%c0_2, %c0_3, %c0_4] : memref<8x1x32xbf16, #tpu.memory_space<vmem>>, vector<1x1x32xbf16>
    %5 = vector.shape_cast %4 : vector<1x1x32xbf16> to vector<1x32xbf16>
    %6 = vector.extract_strided_slice %3 {offsets = [0, 0], sizes = [1, 32], strides = [1, 1]} : vector<1x128xf32> to vector<1x32xf32>
    %7 = arith.truncf %6 : vector<1x32xf32> to vector<1x32xbf16>
    %8 = tpu.concatenate %5, %7 in 1 : vector<1x32xbf16>, vector<1x32xbf16> -> vector<1x64xbf16>
    %c0_5 = arith.constant 0 : index
    %c0_6 = arith.constant 0 : index
    %9 = vector.load %arg4[%c0_5, %c0_6] : memref<64x640xbf16, #tpu.memory_space<vmem>>, vector<64x640xbf16>
    %cst = arith.constant dense<0.000000e+00> : vector<1x640xf32>
    %10 = tpu.matmul %8, %9, %cst {dimension_numbers = #tpu.dot_dimension_numbers<[1], [0], [0], [1], [0, 0, 1, 1], [], []>} : vector<1x64xbf16>, vector<64x640xbf16>, vector<1x640xf32> -> vector<1x640xf32>
    %c0_7 = arith.constant 0 : index
    %c0_8 = arith.constant 0 : index
    %11 = vector.load %arg5[%c0_7, %c0_8] : memref<1x640xf32, #tpu.memory_space<vmem>>, vector<1x640xf32>
    %12 = arith.addf %10, %11 : vector<1x640xf32>
    %13 = vector.extract_strided_slice %12 {offsets = [0, 0], sizes = [1, 128], strides = [1, 1]} : vector<1x640xf32> to vector<1x128xf32>
    %14 = vector.extract_strided_slice %12 {offsets = [0, 128], sizes = [1, 384], strides = [1, 1]} : vector<1x640xf32> to vector<1x384xf32>
    %15 = vector.extract_strided_slice %12 {offsets = [0, 512], sizes = [1, 32], strides = [1, 1]} : vector<1x640xf32> to vector<1x32xf32>
    %cst_9 = arith.constant dense<0xFF800000> : vector<1xf32>
    %16 = vector.multi_reduction <maximumf>, %13, %cst_9 [1] : vector<1x128xf32> to vector<1xf32>
    %17 = vector.shape_cast %16 : vector<1xf32> to vector<1x1xf32>
    %18 = vector.broadcast %17 : vector<1x1xf32> to vector<1x128xf32>
    %19 = arith.subf %13, %18 : vector<1x128xf32>
    %20 = math.exp %19 : vector<1x128xf32>
    %cst_10 = arith.constant dense<0.000000e+00> : vector<1xf32>
    %21 = vector.multi_reduction <add>, %20, %cst_10 [1] : vector<1x128xf32> to vector<1xf32>
    %22 = vector.shape_cast %21 : vector<1xf32> to vector<1x1xf32>
    %23 = tpu.reciprocal %22 {approx = true} : vector<1x1xf32> -> vector<1x1xf32>
    %24 = vector.broadcast %23 : vector<1x1xf32> to vector<1x128xf32>
    %25 = arith.mulf %20, %24 : vector<1x128xf32>
    %c0_11 = arith.constant 0 : index
    %c0_12 = arith.constant 0 : index
    %c0_13 = arith.constant 0 : index
    %26 = vector.load %arg11[%c0_11, %c0_12, %c0_13] : memref<8x1x256xf32, #tpu.memory_space<vmem>>, vector<1x1x128xf32>
    %27 = vector.shape_cast %26 : vector<1x1x128xf32> to vector<1x128xf32>
    %28 = vector.shape_cast %25 : vector<1x128xf32> to vector<1x1x128xf32>
    tpu.vector_store %arg11[%c0_11, %c0_12, %c0_13], %28 {strides = array<i32>} : memref<8x1x256xf32, #tpu.memory_space<vmem>>, vector<1x1x128xf32>,
    %29 = arith.truncf %25 : vector<1x128xf32> to vector<1x128xbf16>
    %c0_14 = arith.constant 0 : index
    %c0_15 = arith.constant 0 : index
    %30 = vector.load %arg3[%c0_14, %c0_15] : memref<128x32xbf16, #tpu.memory_space<vmem>>, vector<128x32xbf16>
    %cst_16 = arith.constant dense<0.000000e+00> : vector<1x32xf32>
    %31 = tpu.matmul %29, %30, %cst_16 {dimension_numbers = #tpu.dot_dimension_numbers<[1], [0], [0], [1], [0, 0, 1, 1], [], []>} : vector<1x128xbf16>, vector<128x32xbf16>, vector<1x32xf32> -> vector<1x32xf32>
    %32 = arith.truncf %31 : vector<1x32xf32> to vector<1x32xbf16>
    %c0_17 = arith.constant 0 : index
    %c0_18 = arith.constant 0 : index
    %33 = vector.load %arg6[%c0_17, %c0_18] : memref<32x32xbf16, #tpu.memory_space<vmem>>, vector<32x32xbf16>
    %cst_19 = arith.constant dense<0.000000e+00> : vector<1x32xf32>
    %34 = tpu.matmul %32, %33, %cst_19 {dimension_numbers = #tpu.dot_dimension_numbers<[1], [0], [0], [1], [0, 0, 1, 1], [], []>} : vector<1x32xbf16>, vector<32x32xbf16>, vector<1x32xf32> -> vector<1x32xf32>
    %35 = arith.addf %34, %15 : vector<1x32xf32>
    %cst_20 = arith.constant 0.000000e+00 : f32
    %36 = vector.broadcast %cst_20 : f32 to vector<1x32xf32>
    %37 = arith.maximumf %35, %36 : vector<1x32xf32>
    %38 = arith.truncf %37 : vector<1x32xf32> to vector<1x32xbf16>
    %c0_21 = arith.constant 0 : index
    %c0_22 = arith.constant 0 : index
    %39 = vector.load %arg7[%c0_21, %c0_22] : memref<32x384xbf16, #tpu.memory_space<vmem>>, vector<32x384xbf16>
    %cst_23 = arith.constant dense<0.000000e+00> : vector<1x384xf32>
    %40 = tpu.matmul %38, %39, %cst_23 {dimension_numbers = #tpu.dot_dimension_numbers<[1], [0], [0], [1], [0, 0, 1, 1], [], []>} : vector<1x32xbf16>, vector<32x384xbf16>, vector<1x384xf32> -> vector<1x384xf32>
    %c0_24 = arith.constant 0 : index
    %c0_25 = arith.constant 0 : index
    %41 = vector.load %arg8[%c0_24, %c0_25] : memref<1x384xf32, #tpu.memory_space<vmem>>, vector<1x384xf32>
    %42 = arith.addf %40, %41 : vector<1x384xf32>
    %43 = vector.extract_strided_slice %42 {offsets = [0, 0], sizes = [1, 256], strides = [1, 1]} : vector<1x384xf32> to vector<1x256xf32>
    %44 = vector.extract_strided_slice %14 {offsets = [0, 0], sizes = [1, 256], strides = [1, 1]} : vector<1x384xf32> to vector<1x256xf32>
    %45 = arith.addf %43, %44 : vector<1x256xf32>
    %46 = arith.negf %45 : vector<1x256xf32>
    %47 = math.exp %46 : vector<1x256xf32>
    %cst_26 = arith.constant 1.000000e+00 : f32
    %48 = vector.broadcast %cst_26 : f32 to vector<1x256xf32>
    %49 = arith.addf %48, %47 : vector<1x256xf32>
    %50 = arith.divf %48, %49 : vector<1x256xf32>
    %51 = vector.extract_strided_slice %50 {offsets = [0, 0], sizes = [1, 128], strides = [1, 1]} : vector<1x256xf32> to vector<1x128xf32>
    %52 = vector.extract_strided_slice %50 {offsets = [0, 128], sizes = [1, 128], strides = [1, 1]} : vector<1x256xf32> to vector<1x128xf32>
    %53 = vector.extract_strided_slice %42 {offsets = [0, 256], sizes = [1, 128], strides = [1, 1]} : vector<1x384xf32> to vector<1x128xf32>
    %54 = vector.extract_strided_slice %14 {offsets = [0, 256], sizes = [1, 128], strides = [1, 1]} : vector<1x384xf32> to vector<1x128xf32>
    %55 = arith.mulf %51, %54 : vector<1x128xf32>
    %56 = arith.addf %53, %55 : vector<1x128xf32>
    %57 = math.tanh %56 : vector<1x128xf32>
    %cst_27 = arith.constant 1.000000e+00 : f32
    %58 = vector.broadcast %cst_27 : f32 to vector<1x128xf32>
    %59 = arith.subf %58, %52 : vector<1x128xf32>
    %60 = arith.mulf %59, %57 : vector<1x128xf32>
    %61 = arith.mulf %52, %3 : vector<1x128xf32>
    %62 = arith.addf %60, %61 : vector<1x128xf32>
    %63 = arith.truncf %62 : vector<1x128xf32> to vector<1x128xbf16>
    %c0_28 = arith.constant 0 : index
    %c0_29 = arith.constant 0 : index
    %64 = vector.load %arg9[%c0_28, %c0_29] : memref<128x64xbf16, #tpu.memory_space<vmem>>, vector<128x64xbf16>
    %cst_30 = arith.constant dense<0.000000e+00> : vector<1x64xf32>
    %65 = tpu.matmul %63, %64, %cst_30 {dimension_numbers = #tpu.dot_dimension_numbers<[1], [0], [0], [1], [0, 0, 1, 1], [], []>} : vector<1x128xbf16>, vector<128x64xbf16>, vector<1x64xf32> -> vector<1x64xf32>
    %c0_31 = arith.constant 0 : index
    %c0_32 = arith.constant 0 : index
    %66 = vector.load %arg10[%c0_31, %c0_32] : memref<1x64xf32, #tpu.memory_space<vmem>>, vector<1x64xf32>
    %67 = arith.addf %65, %66 : vector<1x64xf32>
    %cst_33 = arith.constant dense<0xFF800000> : vector<1xf32>
    %68 = vector.multi_reduction <maximumf>, %67, %cst_33 [1] : vector<1x64xf32> to vector<1xf32>
    %69 = vector.shape_cast %68 : vector<1xf32> to vector<1x1xf32>
    %70 = vector.broadcast %69 : vector<1x1xf32> to vector<1x64xf32>
    %71 = arith.subf %67, %70 : vector<1x64xf32>
    %72 = math.exp %71 : vector<1x64xf32>
    %cst_34 = arith.constant dense<0.000000e+00> : vector<1xf32>
    %73 = vector.multi_reduction <add>, %72, %cst_34 [1] : vector<1x64xf32> to vector<1xf32>
    %74 = vector.shape_cast %73 : vector<1xf32> to vector<1x1xf32>
    %75 = math.log %74 : vector<1x1xf32>
    %76 = arith.addf %75, %69 : vector<1x1xf32>
    %77 = vector.broadcast %76 : vector<1x1xf32> to vector<1x64xf32>
    %78 = arith.subf %67, %77 : vector<1x64xf32>
    %c0_35 = arith.constant 0 : index
    %c0_36 = arith.constant 0 : index
    %c128 = arith.constant 128 : index
    %79 = vector.load %arg11[%c0_35, %c0_36, %c128] : memref<8x1x256xf32, #tpu.memory_space<vmem>>, vector<1x1x64xf32>
    %80 = vector.shape_cast %79 : vector<1x1x64xf32> to vector<1x64xf32>
    %81 = vector.shape_cast %78 : vector<1x64xf32> to vector<1x1x64xf32>
    tpu.vector_store %arg11[%c0_35, %c0_36, %c128], %81 {strides = array<i32>} : memref<8x1x256xf32, #tpu.memory_space<vmem>>, vector<1x1x64xf32>,
    %c8_i32 = arith.constant 8 : i32
    %82 = arith.muli %arg0, %c8_i32 : i32
    %c0_i32_37 = arith.constant 0 : i32
    %83 = arith.addi %82, %c0_i32_37 : i32
    %c11_i32 = arith.constant 11 : i32
    %84 = arith.cmpi slt, %83, %c11_i32 : i32
    %85 = arith.select %84, %62, %3 : vector<1x128xf32>
    %c1 = arith.constant 1 : index
    %c0_38 = arith.constant 0 : index
    %c0_39 = arith.constant 0 : index
    %86 = vector.load %arg1[%c1, %c0_38, %c0_39] : memref<8x1x32xbf16, #tpu.memory_space<vmem>>, vector<1x1x32xbf16>
    %87 = vector.shape_cast %86 : vector<1x1x32xbf16> to vector<1x32xbf16>
    %88 = vector.extract_strided_slice %85 {offsets = [0, 0], sizes = [1, 32], strides = [1, 1]} : vector<1x128xf32> to vector<1x32xf32>
    %89 = arith.truncf %88 : vector<1x32xf32> to vector<1x32xbf16>
    %90 = tpu.concatenate %87, %89 in 1 : vector<1x32xbf16>, vector<1x32xbf16> -> vector<1x64xbf16>
    %c0_40 = arith.constant 0 : index
    %c0_41 = arith.constant 0 : index
    %91 = vector.load %arg4[%c0_40, %c0_41] : memref<64x640xbf16, #tpu.memory_space<vmem>>, vector<64x640xbf16>
    %cst_42 = arith.constant dense<0.000000e+00> : vector<1x640xf32>
    %92 = tpu.matmul %90, %91, %cst_42 {dimension_numbers = #tpu.dot_dimension_numbers<[1], [0], [0], [1], [0, 0, 1, 1], [], []>} : vector<1x64xbf16>, vector<64x640xbf16>, vector<1x640xf32> -> vector<1x640xf32>
    %c0_43 = arith.constant 0 : index
    %c0_44 = arith.constant 0 : index
    %93 = vector.load %arg5[%c0_43, %c0_44] : memref<1x640xf32, #tpu.memory_space<vmem>>, vector<1x640xf32>
    %94 = arith.addf %92, %93 : vector<1x640xf32>
    %95 = vector.extract_strided_slice %94 {offsets = [0, 0], sizes = [1, 128], strides = [1, 1]} : vector<1x640xf32> to vector<1x128xf32>
    %96 = vector.extract_strided_slice %94 {offsets = [0, 128], sizes = [1, 384], strides = [1, 1]} : vector<1x640xf32> to vector<1x384xf32>
    %97 = vector.extract_strided_slice %94 {offsets = [0, 512], sizes = [1, 32], strides = [1, 1]} : vector<1x640xf32> to vector<1x32xf32>
    %cst_45 = arith.constant dense<0xFF800000> : vector<1xf32>
    %98 = vector.multi_reduction <maximumf>, %95, %cst_45 [1] : vector<1x128xf32> to vector<1xf32>
    %99 = vector.shape_cast %98 : vector<1xf32> to vector<1x1xf32>
    %100 = vector.broadcast %99 : vector<1x1xf32> to vector<1x128xf32>
    %101 = arith.subf %95, %100 : vector<1x128xf32>
    %102 = math.exp %101 : vector<1x128xf32>
    %cst_46 = arith.constant dense<0.000000e+00> : vector<1xf32>
    %103 = vector.multi_reduction <add>, %102, %cst_46 [1] : vector<1x128xf32> to vector<1xf32>
    %104 = vector.shape_cast %103 : vector<1xf32> to vector<1x1xf32>
    %105 = tpu.reciprocal %104 {approx = true} : vector<1x1xf32> -> vector<1x1xf32>
    %106 = vector.broadcast %105 : vector<1x1xf32> to vector<1x128xf32>
    %107 = arith.mulf %102, %106 : vector<1x128xf32>
    %c1_47 = arith.constant 1 : index
    %c0_48 = arith.constant 0 : index
    %c0_49 = arith.constant 0 : index
    %108 = vector.load %arg11[%c1_47, %c0_48, %c0_49] : memref<8x1x256xf32, #tpu.memory_space<vmem>>, vector<1x1x128xf32>
    %109 = vector.shape_cast %108 : vector<1x1x128xf32> to vector<1x128xf32>
    %110 = vector.shape_cast %107 : vector<1x128xf32> to vector<1x1x128xf32>
    tpu.vector_store %arg11[%c1_47, %c0_48, %c0_49], %110 {strides = array<i32>} : memref<8x1x256xf32, #tpu.memory_space<vmem>>, vector<1x1x128xf32>,
    %111 = arith.truncf %107 : vector<1x128xf32> to vector<1x128xbf16>
    %c0_50 = arith.constant 0 : index
    %c0_51 = arith.constant 0 : index
    %112 = vector.load %arg3[%c0_50, %c0_51] : memref<128x32xbf16, #tpu.memory_space<vmem>>, vector<128x32xbf16>
    %cst_52 = arith.constant dense<0.000000e+00> : vector<1x32xf32>
    %113 = tpu.matmul %111, %112, %cst_52 {dimension_numbers = #tpu.dot_dimension_numbers<[1], [0], [0], [1], [0, 0, 1, 1], [], []>} : vector<1x128xbf16>, vector<128x32xbf16>, vector<1x32xf32> -> vector<1x32xf32>
    %114 = arith.truncf %113 : vector<1x32xf32> to vector<1x32xbf16>
    %c0_53 = arith.constant 0 : index
    %c0_54 = arith.constant 0 : index
    %115 = vector.load %arg6[%c0_53, %c0_54] : memref<32x32xbf16, #tpu.memory_space<vmem>>, vector<32x32xbf16>
    %cst_55 = arith.constant dense<0.000000e+00> : vector<1x32xf32>
    %116 = tpu.matmul %114, %115, %cst_55 {dimension_numbers = #tpu.dot_dimension_numbers<[1], [0], [0], [1], [0, 0, 1, 1], [], []>} : vector<1x32xbf16>, vector<32x32xbf16>, vector<1x32xf32> -> vector<1x32xf32>
    %117 = arith.addf %116, %97 : vector<1x32xf32>
    %cst_56 = arith.constant 0.000000e+00 : f32
    %118 = vector.broadcast %cst_56 : f32 to vector<1x32xf32>
    %119 = arith.maximumf %117, %118 : vector<1x32xf32>
    %120 = arith.truncf %119 : vector<1x32xf32> to vector<1x32xbf16>
    %c0_57 = arith.constant 0 : index
    %c0_58 = arith.constant 0 : index
    %121 = vector.load %arg7[%c0_57, %c0_58] : memref<32x384xbf16, #tpu.memory_space<vmem>>, vector<32x384xbf16>
    %cst_59 = arith.constant dense<0.000000e+00> : vector<1x384xf32>
    %122 = tpu.matmul %120, %121, %cst_59 {dimension_numbers = #tpu.dot_dimension_numbers<[1], [0], [0], [1], [0, 0, 1, 1], [], []>} : vector<1x32xbf16>, vector<32x384xbf16>, vector<1x384xf32> -> vector<1x384xf32>
    %c0_60 = arith.constant 0 : index
    %c0_61 = arith.constant 0 : index
    %123 = vector.load %arg8[%c0_60, %c0_61] : memref<1x384xf32, #tpu.memory_space<vmem>>, vector<1x384xf32>
    %124 = arith.addf %122, %123 : vector<1x384xf32>
    %125 = vector.extract_strided_slice %124 {offsets = [0, 0], sizes = [1, 256], strides = [1, 1]} : vector<1x384xf32> to vector<1x256xf32>
    %126 = vector.extract_strided_slice %96 {offsets = [0, 0], sizes = [1, 256], strides = [1, 1]} : vector<1x384xf32> to vector<1x256xf32>
    %127 = arith.addf %125, %126 : vector<1x256xf32>
    %128 = arith.negf %127 : vector<1x256xf32>
    %129 = math.exp %128 : vector<1x256xf32>
    %cst_62 = arith.constant 1.000000e+00 : f32
    %130 = vector.broadcast %cst_62 : f32 to vector<1x256xf32>
    %131 = arith.addf %130, %129 : vector<1x256xf32>
    %132 = arith.divf %130, %131 : vector<1x256xf32>
    %133 = vector.extract_strided_slice %132 {offsets = [0, 0], sizes = [1, 128], strides = [1, 1]} : vector<1x256xf32> to vector<1x128xf32>
    %134 = vector.extract_strided_slice %132 {offsets = [0, 128], sizes = [1, 128], strides = [1, 1]} : vector<1x256xf32> to vector<1x128xf32>
    %135 = vector.extract_strided_slice %124 {offsets = [0, 256], sizes = [1, 128], strides = [1, 1]} : vector<1x384xf32> to vector<1x128xf32>
    %136 = vector.extract_strided_slice %96 {offsets = [0, 256], sizes = [1, 128], strides = [1, 1]} : vector<1x384xf32> to vector<1x128xf32>
    %137 = arith.mulf %133, %136 : vector<1x128xf32>
    %138 = arith.addf %135, %137 : vector<1x128xf32>
    %139 = math.tanh %138 : vector<1x128xf32>
    %cst_63 = arith.constant 1.000000e+00 : f32
    %140 = vector.broadcast %cst_63 : f32 to vector<1x128xf32>
    %141 = arith.subf %140, %134 : vector<1x128xf32>
    %142 = arith.mulf %141, %139 : vector<1x128xf32>
    %143 = arith.mulf %134, %85 : vector<1x128xf32>
    %144 = arith.addf %142, %143 : vector<1x128xf32>
    %145 = arith.truncf %144 : vector<1x128xf32> to vector<1x128xbf16>
    %c0_64 = arith.constant 0 : index
    %c0_65 = arith.constant 0 : index
    %146 = vector.load %arg9[%c0_64, %c0_65] : memref<128x64xbf16, #tpu.memory_space<vmem>>, vector<128x64xbf16>
    %cst_66 = arith.constant dense<0.000000e+00> : vector<1x64xf32>
    %147 = tpu.matmul %145, %146, %cst_66 {dimension_numbers = #tpu.dot_dimension_numbers<[1], [0], [0], [1], [0, 0, 1, 1], [], []>} : vector<1x128xbf16>, vector<128x64xbf16>, vector<1x64xf32> -> vector<1x64xf32>
    %c0_67 = arith.constant 0 : index
    %c0_68 = arith.constant 0 : index
    %148 = vector.load %arg10[%c0_67, %c0_68] : memref<1x64xf32, #tpu.memory_space<vmem>>, vector<1x64xf32>
    %149 = arith.addf %147, %148 : vector<1x64xf32>
    %cst_69 = arith.constant dense<0xFF800000> : vector<1xf32>
    %150 = vector.multi_reduction <maximumf>, %149, %cst_69 [1] : vector<1x64xf32> to vector<1xf32>
    %151 = vector.shape_cast %150 : vector<1xf32> to vector<1x1xf32>
    %152 = vector.broadcast %151 : vector<1x1xf32> to vector<1x64xf32>
    %153 = arith.subf %149, %152 : vector<1x64xf32>
    %154 = math.exp %153 : vector<1x64xf32>
    %cst_70 = arith.constant dense<0.000000e+00> : vector<1xf32>
    %155 = vector.multi_reduction <add>, %154, %cst_70 [1] : vector<1x64xf32> to vector<1xf32>
    %156 = vector.shape_cast %155 : vector<1xf32> to vector<1x1xf32>
    %157 = math.log %156 : vector<1x1xf32>
    %158 = arith.addf %157, %151 : vector<1x1xf32>
    %159 = vector.broadcast %158 : vector<1x1xf32> to vector<1x64xf32>
    %160 = arith.subf %149, %159 : vector<1x64xf32>
    %c1_71 = arith.constant 1 : index
    %c0_72 = arith.constant 0 : index
    %c128_73 = arith.constant 128 : index
    %161 = vector.load %arg11[%c1_71, %c0_72, %c128_73] : memref<8x1x256xf32, #tpu.memory_space<vmem>>, vector<1x1x64xf32>
    %162 = vector.shape_cast %161 : vector<1x1x64xf32> to vector<1x64xf32>
    %163 = vector.shape_cast %160 : vector<1x64xf32> to vector<1x1x64xf32>
    tpu.vector_store %arg11[%c1_71, %c0_72, %c128_73], %163 {strides = array<i32>} : memref<8x1x256xf32, #tpu.memory_space<vmem>>, vector<1x1x64xf32>,
    %c8_i32_74 = arith.constant 8 : i32
    %164 = arith.muli %arg0, %c8_i32_74 : i32
    %c1_i32 = arith.constant 1 : i32
    %165 = arith.addi %164, %c1_i32 : i32
    %c11_i32_75 = arith.constant 11 : i32
    %166 = arith.cmpi slt, %165, %c11_i32_75 : i32
    %167 = arith.select %166, %144, %85 : vector<1x128xf32>
    %c2 = arith.constant 2 : index
    %c0_76 = arith.constant 0 : index
    %c0_77 = arith.constant 0 : index
    %168 = vector.load %arg1[%c2, %c0_76, %c0_77] : memref<8x1x32xbf16, #tpu.memory_space<vmem>>, vector<1x1x32xbf16>
    %169 = vector.shape_cast %168 : vector<1x1x32xbf16> to vector<1x32xbf16>
    %170 = vector.extract_strided_slice %167 {offsets = [0, 0], sizes = [1, 32], strides = [1, 1]} : vector<1x128xf32> to vector<1x32xf32>
    %171 = arith.truncf %170 : vector<1x32xf32> to vector<1x32xbf16>
    %172 = tpu.concatenate %169, %171 in 1 : vector<1x32xbf16>, vector<1x32xbf16> -> vector<1x64xbf16>
    %c0_78 = arith.constant 0 : index
    %c0_79 = arith.constant 0 : index
    %173 = vector.load %arg4[%c0_78, %c0_79] : memref<64x640xbf16, #tpu.memory_space<vmem>>, vector<64x640xbf16>
    %cst_80 = arith.constant dense<0.000000e+00> : vector<1x640xf32>
    %174 = tpu.matmul %172, %173, %cst_80 {dimension_numbers = #tpu.dot_dimension_numbers<[1], [0], [0], [1], [0, 0, 1, 1], [], []>} : vector<1x64xbf16>, vector<64x640xbf16>, vector<1x640xf32> -> vector<1x640xf32>
    %c0_81 = arith.constant 0 : index
    %c0_82 = arith.constant 0 : index
    %175 = vector.load %arg5[%c0_81, %c0_82] : memref<1x640xf32, #tpu.memory_space<vmem>>, vector<1x640xf32>
    %176 = arith.addf %174, %175 : vector<1x640xf32>
    %177 = vector.extract_strided_slice %176 {offsets = [0, 0], sizes = [1, 128], strides = [1, 1]} : vector<1x640xf32> to vector<1x128xf32>
    %178 = vector.extract_strided_slice %176 {offsets = [0, 128], sizes = [1, 384], strides = [1, 1]} : vector<1x640xf32> to vector<1x384xf32>
    %179 = vector.extract_strided_slice %176 {offsets = [0, 512], sizes = [1, 32], strides = [1, 1]} : vector<1x640xf32> to vector<1x32xf32>
    %cst_83 = arith.constant dense<0xFF800000> : vector<1xf32>
    %180 = vector.multi_reduction <maximumf>, %177, %cst_83 [1] : vector<1x128xf32> to vector<1xf32>
    %181 = vector.shape_cast %180 : vector<1xf32> to vector<1x1xf32>
    %182 = vector.broadcast %181 : vector<1x1xf32> to vector<1x128xf32>
    %183 = arith.subf %177, %182 : vector<1x128xf32>
    %184 = math.exp %183 : vector<1x128xf32>
    %cst_84 = arith.constant dense<0.000000e+00> : vector<1xf32>
    %185 = vector.multi_reduction <add>, %184, %cst_84 [1] : vector<1x128xf32> to vector<1xf32>
    %186 = vector.shape_cast %185 : vector<1xf32> to vector<1x1xf32>
    %187 = tpu.reciprocal %186 {approx = true} : vector<1x1xf32> -> vector<1x1xf32>
    %188 = vector.broadcast %187 : vector<1x1xf32> to vector<1x128xf32>
    %189 = arith.mulf %184, %188 : vector<1x128xf32>
    %c2_85 = arith.constant 2 : index
    %c0_86 = arith.constant 0 : index
    %c0_87 = arith.constant 0 : index
    %190 = vector.load %arg11[%c2_85, %c0_86, %c0_87] : memref<8x1x256xf32, #tpu.memory_space<vmem>>, vector<1x1x128xf32>
    %191 = vector.shape_cast %190 : vector<1x1x128xf32> to vector<1x128xf32>
    %192 = vector.shape_cast %189 : vector<1x128xf32> to vector<1x1x128xf32>
    tpu.vector_store %arg11[%c2_85, %c0_86, %c0_87], %192 {strides = array<i32>} : memref<8x1x256xf32, #tpu.memory_space<vmem>>, vector<1x1x128xf32>,
    %193 = arith.truncf %189 : vector<1x128xf32> to vector<1x128xbf16>
    %c0_88 = arith.constant 0 : index
    %c0_89 = arith.constant 0 : index
    %194 = vector.load %arg3[%c0_88, %c0_89] : memref<128x32xbf16, #tpu.memory_space<vmem>>, vector<128x32xbf16>
    %cst_90 = arith.constant dense<0.000000e+00> : vector<1x32xf32>
    %195 = tpu.matmul %193, %194, %cst_90 {dimension_numbers = #tpu.dot_dimension_numbers<[1], [0], [0], [1], [0, 0, 1, 1], [], []>} : vector<1x128xbf16>, vector<128x32xbf16>, vector<1x32xf32> -> vector<1x32xf32>
    %196 = arith.truncf %195 : vector<1x32xf32> to vector<1x32xbf16>
    %c0_91 = arith.constant 0 : index
    %c0_92 = arith.constant 0 : index
    %197 = vector.load %arg6[%c0_91, %c0_92] : memref<32x32xbf16, #tpu.memory_space<vmem>>, vector<32x32xbf16>
    %cst_93 = arith.constant dense<0.000000e+00> : vector<1x32xf32>
    %198 = tpu.matmul %196, %197, %cst_93 {dimension_numbers = #tpu.dot_dimension_numbers<[1], [0], [0], [1], [0, 0, 1, 1], [], []>} : vector<1x32xbf16>, vector<32x32xbf16>, vector<1x32xf32> -> vector<1x32xf32>
    %199 = arith.addf %198, %179 : vector<1x32xf32>
    %cst_94 = arith.constant 0.000000e+00 : f32
    %200 = vector.broadcast %cst_94 : f32 to vector<1x32xf32>
    %201 = arith.maximumf %199, %200 : vector<1x32xf32>
    %202 = arith.truncf %201 : vector<1x32xf32> to vector<1x32xbf16>
    %c0_95 = arith.constant 0 : index
    %c0_96 = arith.constant 0 : index
    %203 = vector.load %arg7[%c0_95, %c0_96] : memref<32x384xbf16, #tpu.memory_space<vmem>>, vector<32x384xbf16>
    %cst_97 = arith.constant dense<0.000000e+00> : vector<1x384xf32>
    %204 = tpu.matmul %202, %203, %cst_97 {dimension_numbers = #tpu.dot_dimension_numbers<[1], [0], [0], [1], [0, 0, 1, 1], [], []>} : vector<1x32xbf16>, vector<32x384xbf16>, vector<1x384xf32> -> vector<1x384xf32>
    %c0_98 = arith.constant 0 : index
    %c0_99 = arith.constant 0 : index
    %205 = vector.load %arg8[%c0_98, %c0_99] : memref<1x384xf32, #tpu.memory_space<vmem>>, vector<1x384xf32>
    %206 = arith.addf %204, %205 : vector<1x384xf32>
    %207 = vector.extract_strided_slice %206 {offsets = [0, 0], sizes = [1, 256], strides = [1, 1]} : vector<1x384xf32> to vector<1x256xf32>
    %208 = vector.extract_strided_slice %178 {offsets = [0, 0], sizes = [1, 256], strides = [1, 1]} : vector<1x384xf32> to vector<1x256xf32>
    %209 = arith.addf %207, %208 : vector<1x256xf32>
    %210 = arith.negf %209 : vector<1x256xf32>
    %211 = math.exp %210 : vector<1x256xf32>
    %cst_100 = arith.constant 1.000000e+00 : f32
    %212 = vector.broadcast %cst_100 : f32 to vector<1x256xf32>
    %213 = arith.addf %212, %211 : vector<1x256xf32>
    %214 = arith.divf %212, %213 : vector<1x256xf32>
    %215 = vector.extract_strided_slice %214 {offsets = [0, 0], sizes = [1, 128], strides = [1, 1]} : vector<1x256xf32> to vector<1x128xf32>
    %216 = vector.extract_strided_slice %214 {offsets = [0, 128], sizes = [1, 128], strides = [1, 1]} : vector<1x256xf32> to vector<1x128xf32>
    %217 = vector.extract_strided_slice %206 {offsets = [0, 256], sizes = [1, 128], strides = [1, 1]} : vector<1x384xf32> to vector<1x128xf32>
    %218 = vector.extract_strided_slice %178 {offsets = [0, 256], sizes = [1, 128], strides = [1, 1]} : vector<1x384xf32> to vector<1x128xf32>
    %219 = arith.mulf %215, %218 : vector<1x128xf32>
    %220 = arith.addf %217, %219 : vector<1x128xf32>
    %221 = math.tanh %220 : vector<1x128xf32>
    %cst_101 = arith.constant 1.000000e+00 : f32
    %222 = vector.broadcast %cst_101 : f32 to vector<1x128xf32>
    %223 = arith.subf %222, %216 : vector<1x128xf32>
    %224 = arith.mulf %223, %221 : vector<1x128xf32>
    %225 = arith.mulf %216, %167 : vector<1x128xf32>
    %226 = arith.addf %224, %225 : vector<1x128xf32>
    %227 = arith.truncf %226 : vector<1x128xf32> to vector<1x128xbf16>
    %c0_102 = arith.constant 0 : index
    %c0_103 = arith.constant 0 : index
    %228 = vector.load %arg9[%c0_102, %c0_103] : memref<128x64xbf16, #tpu.memory_space<vmem>>, vector<128x64xbf16>
    %cst_104 = arith.constant dense<0.000000e+00> : vector<1x64xf32>
    %229 = tpu.matmul %227, %228, %cst_104 {dimension_numbers = #tpu.dot_dimension_numbers<[1], [0], [0], [1], [0, 0, 1, 1], [], []>} : vector<1x128xbf16>, vector<128x64xbf16>, vector<1x64xf32> -> vector<1x64xf32>
    %c0_105 = arith.constant 0 : index
    %c0_106 = arith.constant 0 : index
    %230 = vector.load %arg10[%c0_105, %c0_106] : memref<1x64xf32, #tpu.memory_space<vmem>>, vector<1x64xf32>
    %231 = arith.addf %229, %230 : vector<1x64xf32>
    %cst_107 = arith.constant dense<0xFF800000> : vector<1xf32>
    %232 = vector.multi_reduction <maximumf>, %231, %cst_107 [1] : vector<1x64xf32> to vector<1xf32>
    %233 = vector.shape_cast %232 : vector<1xf32> to vector<1x1xf32>
    %234 = vector.broadcast %233 : vector<1x1xf32> to vector<1x64xf32>
    %235 = arith.subf %231, %234 : vector<1x64xf32>
    %236 = math.exp %235 : vector<1x64xf32>
    %cst_108 = arith.constant dense<0.000000e+00> : vector<1xf32>
    %237 = vector.multi_reduction <add>, %236, %cst_108 [1] : vector<1x64xf32> to vector<1xf32>
    %238 = vector.shape_cast %237 : vector<1xf32> to vector<1x1xf32>
    %239 = math.log %238 : vector<1x1xf32>
    %240 = arith.addf %239, %233 : vector<1x1xf32>
    %241 = vector.broadcast %240 : vector<1x1xf32> to vector<1x64xf32>
    %242 = arith.subf %231, %241 : vector<1x64xf32>
    %c2_109 = arith.constant 2 : index
    %c0_110 = arith.constant 0 : index
    %c128_111 = arith.constant 128 : index
    %243 = vector.load %arg11[%c2_109, %c0_110, %c128_111] : memref<8x1x256xf32, #tpu.memory_space<vmem>>, vector<1x1x64xf32>
    %244 = vector.shape_cast %243 : vector<1x1x64xf32> to vector<1x64xf32>
    %245 = vector.shape_cast %242 : vector<1x64xf32> to vector<1x1x64xf32>
    tpu.vector_store %arg11[%c2_109, %c0_110, %c128_111], %245 {strides = array<i32>} : memref<8x1x256xf32, #tpu.memory_space<vmem>>, vector<1x1x64xf32>,
    %c8_i32_112 = arith.constant 8 : i32
    %246 = arith.muli %arg0, %c8_i32_112 : i32
    %c2_i32 = arith.constant 2 : i32
    %247 = arith.addi %246, %c2_i32 : i32
    %c11_i32_113 = arith.constant 11 : i32
    %248 = arith.cmpi slt, %247, %c11_i32_113 : i32
    %249 = arith.select %248, %226, %167 : vector<1x128xf32>
    %c3 = arith.constant 3 : index
    %c0_114 = arith.constant 0 : index
    %c0_115 = arith.constant 0 : index
    %250 = vector.load %arg1[%c3, %c0_114, %c0_115] : memref<8x1x32xbf16, #tpu.memory_space<vmem>>, vector<1x1x32xbf16>
    %251 = vector.shape_cast %250 : vector<1x1x32xbf16> to vector<1x32xbf16>
    %252 = vector.extract_strided_slice %249 {offsets = [0, 0], sizes = [1, 32], strides = [1, 1]} : vector<1x128xf32> to vector<1x32xf32>
    %253 = arith.truncf %252 : vector<1x32xf32> to vector<1x32xbf16>
    %254 = tpu.concatenate %251, %253 in 1 : vector<1x32xbf16>, vector<1x32xbf16> -> vector<1x64xbf16>
    %c0_116 = arith.constant 0 : index
    %c0_117 = arith.constant 0 : index
    %255 = vector.load %arg4[%c0_116, %c0_117] : memref<64x640xbf16, #tpu.memory_space<vmem>>, vector<64x640xbf16>
    %cst_118 = arith.constant dense<0.000000e+00> : vector<1x640xf32>
    %256 = tpu.matmul %254, %255, %cst_118 {dimension_numbers = #tpu.dot_dimension_numbers<[1], [0], [0], [1], [0, 0, 1, 1], [], []>} : vector<1x64xbf16>, vector<64x640xbf16>, vector<1x640xf32> -> vector<1x640xf32>
    %c0_119 = arith.constant 0 : index
    %c0_120 = arith.constant 0 : index
    %257 = vector.load %arg5[%c0_119, %c0_120] : memref<1x640xf32, #tpu.memory_space<vmem>>, vector<1x640xf32>
    %258 = arith.addf %256, %257 : vector<1x640xf32>
    %259 = vector.extract_strided_slice %258 {offsets = [0, 0], sizes = [1, 128], strides = [1, 1]} : vector<1x640xf32> to vector<1x128xf32>
    %260 = vector.extract_strided_slice %258 {offsets = [0, 128], sizes = [1, 384], strides = [1, 1]} : vector<1x640xf32> to vector<1x384xf32>
    %261 = vector.extract_strided_slice %258 {offsets = [0, 512], sizes = [1, 32], strides = [1, 1]} : vector<1x640xf32> to vector<1x32xf32>
    %cst_121 = arith.constant dense<0xFF800000> : vector<1xf32>
    %262 = vector.multi_reduction <maximumf>, %259, %cst_121 [1] : vector<1x128xf32> to vector<1xf32>
    %263 = vector.shape_cast %262 : vector<1xf32> to vector<1x1xf32>
    %264 = vector.broadcast %263 : vector<1x1xf32> to vector<1x128xf32>
    %265 = arith.subf %259, %264 : vector<1x128xf32>
    %266 = math.exp %265 : vector<1x128xf32>
    %cst_122 = arith.constant dense<0.000000e+00> : vector<1xf32>
    %267 = vector.multi_reduction <add>, %266, %cst_122 [1] : vector<1x128xf32> to vector<1xf32>
    %268 = vector.shape_cast %267 : vector<1xf32> to vector<1x1xf32>
    %269 = tpu.reciprocal %268 {approx = true} : vector<1x1xf32> -> vector<1x1xf32>
    %270 = vector.broadcast %269 : vector<1x1xf32> to vector<1x128xf32>
    %271 = arith.mulf %266, %270 : vector<1x128xf32>
    %c3_123 = arith.constant 3 : index
    %c0_124 = arith.constant 0 : index
    %c0_125 = arith.constant 0 : index
    %272 = vector.load %arg11[%c3_123, %c0_124, %c0_125] : memref<8x1x256xf32, #tpu.memory_space<vmem>>, vector<1x1x128xf32>
    %273 = vector.shape_cast %272 : vector<1x1x128xf32> to vector<1x128xf32>
    %274 = vector.shape_cast %271 : vector<1x128xf32> to vector<1x1x128xf32>
    tpu.vector_store %arg11[%c3_123, %c0_124, %c0_125], %274 {strides = array<i32>} : memref<8x1x256xf32, #tpu.memory_space<vmem>>, vector<1x1x128xf32>,
    %275 = arith.truncf %271 : vector<1x128xf32> to vector<1x128xbf16>
    %c0_126 = arith.constant 0 : index
    %c0_127 = arith.constant 0 : index
    %276 = vector.load %arg3[%c0_126, %c0_127] : memref<128x32xbf16, #tpu.memory_space<vmem>>, vector<128x32xbf16>
    %cst_128 = arith.constant dense<0.000000e+00> : vector<1x32xf32>
    %277 = tpu.matmul %275, %276, %cst_128 {dimension_numbers = #tpu.dot_dimension_numbers<[1], [0], [0], [1], [0, 0, 1, 1], [], []>} : vector<1x128xbf16>, vector<128x32xbf16>, vector<1x32xf32> -> vector<1x32xf32>
    %278 = arith.truncf %277 : vector<1x32xf32> to vector<1x32xbf16>
    %c0_129 = arith.constant 0 : index
    %c0_130 = arith.constant 0 : index
    %279 = vector.load %arg6[%c0_129, %c0_130] : memref<32x32xbf16, #tpu.memory_space<vmem>>, vector<32x32xbf16>
    %cst_131 = arith.constant dense<0.000000e+00> : vector<1x32xf32>
    %280 = tpu.matmul %278, %279, %cst_131 {dimension_numbers = #tpu.dot_dimension_numbers<[1], [0], [0], [1], [0, 0, 1, 1], [], []>} : vector<1x32xbf16>, vector<32x32xbf16>, vector<1x32xf32> -> vector<1x32xf32>
    %281 = arith.addf %280, %261 : vector<1x32xf32>
    %cst_132 = arith.constant 0.000000e+00 : f32
    %282 = vector.broadcast %cst_132 : f32 to vector<1x32xf32>
    %283 = arith.maximumf %281, %282 : vector<1x32xf32>
    %284 = arith.truncf %283 : vector<1x32xf32> to vector<1x32xbf16>
    %c0_133 = arith.constant 0 : index
    %c0_134 = arith.constant 0 : index
    %285 = vector.load %arg7[%c0_133, %c0_134] : memref<32x384xbf16, #tpu.memory_space<vmem>>, vector<32x384xbf16>
    %cst_135 = arith.constant dense<0.000000e+00> : vector<1x384xf32>
    %286 = tpu.matmul %284, %285, %cst_135 {dimension_numbers = #tpu.dot_dimension_numbers<[1], [0], [0], [1], [0, 0, 1, 1], [], []>} : vector<1x32xbf16>, vector<32x384xbf16>, vector<1x384xf32> -> vector<1x384xf32>
    %c0_136 = arith.constant 0 : index
    %c0_137 = arith.constant 0 : index
    %287 = vector.load %arg8[%c0_136, %c0_137] : memref<1x384xf32, #tpu.memory_space<vmem>>, vector<1x384xf32>
    %288 = arith.addf %286, %287 : vector<1x384xf32>
    %289 = vector.extract_strided_slice %288 {offsets = [0, 0], sizes = [1, 256], strides = [1, 1]} : vector<1x384xf32> to vector<1x256xf32>
    %290 = vector.extract_strided_slice %260 {offsets = [0, 0], sizes = [1, 256], strides = [1, 1]} : vector<1x384xf32> to vector<1x256xf32>
    %291 = arith.addf %289, %290 : vector<1x256xf32>
    %292 = arith.negf %291 : vector<1x256xf32>
    %293 = math.exp %292 : vector<1x256xf32>
    %cst_138 = arith.constant 1.000000e+00 : f32
    %294 = vector.broadcast %cst_138 : f32 to vector<1x256xf32>
    %295 = arith.addf %294, %293 : vector<1x256xf32>
    %296 = arith.divf %294, %295 : vector<1x256xf32>
    %297 = vector.extract_strided_slice %296 {offsets = [0, 0], sizes = [1, 128], strides = [1, 1]} : vector<1x256xf32> to vector<1x128xf32>
    %298 = vector.extract_strided_slice %296 {offsets = [0, 128], sizes = [1, 128], strides = [1, 1]} : vector<1x256xf32> to vector<1x128xf32>
    %299 = vector.extract_strided_slice %288 {offsets = [0, 256], sizes = [1, 128], strides = [1, 1]} : vector<1x384xf32> to vector<1x128xf32>
    %300 = vector.extract_strided_slice %260 {offsets = [0, 256], sizes = [1, 128], strides = [1, 1]} : vector<1x384xf32> to vector<1x128xf32>
    %301 = arith.mulf %297, %300 : vector<1x128xf32>
    %302 = arith.addf %299, %301 : vector<1x128xf32>
    %303 = math.tanh %302 : vector<1x128xf32>
    %cst_139 = arith.constant 1.000000e+00 : f32
    %304 = vector.broadcast %cst_139 : f32 to vector<1x128xf32>
    %305 = arith.subf %304, %298 : vector<1x128xf32>
    %306 = arith.mulf %305, %303 : vector<1x128xf32>
    %307 = arith.mulf %298, %249 : vector<1x128xf32>
    %308 = arith.addf %306, %307 : vector<1x128xf32>
    %309 = arith.truncf %308 : vector<1x128xf32> to vector<1x128xbf16>
    %c0_140 = arith.constant 0 : index
    %c0_141 = arith.constant 0 : index
    %310 = vector.load %arg9[%c0_140, %c0_141] : memref<128x64xbf16, #tpu.memory_space<vmem>>, vector<128x64xbf16>
    %cst_142 = arith.constant dense<0.000000e+00> : vector<1x64xf32>
    %311 = tpu.matmul %309, %310, %cst_142 {dimension_numbers = #tpu.dot_dimension_numbers<[1], [0], [0], [1], [0, 0, 1, 1], [], []>} : vector<1x128xbf16>, vector<128x64xbf16>, vector<1x64xf32> -> vector<1x64xf32>
    %c0_143 = arith.constant 0 : index
    %c0_144 = arith.constant 0 : index
    %312 = vector.load %arg10[%c0_143, %c0_144] : memref<1x64xf32, #tpu.memory_space<vmem>>, vector<1x64xf32>
    %313 = arith.addf %311, %312 : vector<1x64xf32>
    %cst_145 = arith.constant dense<0xFF800000> : vector<1xf32>
    %314 = vector.multi_reduction <maximumf>, %313, %cst_145 [1] : vector<1x64xf32> to vector<1xf32>
    %315 = vector.shape_cast %314 : vector<1xf32> to vector<1x1xf32>
    %316 = vector.broadcast %315 : vector<1x1xf32> to vector<1x64xf32>
    %317 = arith.subf %313, %316 : vector<1x64xf32>
    %318 = math.exp %317 : vector<1x64xf32>
    %cst_146 = arith.constant dense<0.000000e+00> : vector<1xf32>
    %319 = vector.multi_reduction <add>, %318, %cst_146 [1] : vector<1x64xf32> to vector<1xf32>
    %320 = vector.shape_cast %319 : vector<1xf32> to vector<1x1xf32>
    %321 = math.log %320 : vector<1x1xf32>
    %322 = arith.addf %321, %315 : vector<1x1xf32>
    %323 = vector.broadcast %322 : vector<1x1xf32> to vector<1x64xf32>
    %324 = arith.subf %313, %323 : vector<1x64xf32>
    %c3_147 = arith.constant 3 : index
    %c0_148 = arith.constant 0 : index
    %c128_149 = arith.constant 128 : index
    %325 = vector.load %arg11[%c3_147, %c0_148, %c128_149] : memref<8x1x256xf32, #tpu.memory_space<vmem>>, vector<1x1x64xf32>
    %326 = vector.shape_cast %325 : vector<1x1x64xf32> to vector<1x64xf32>
    %327 = vector.shape_cast %324 : vector<1x64xf32> to vector<1x1x64xf32>
    tpu.vector_store %arg11[%c3_147, %c0_148, %c128_149], %327 {strides = array<i32>} : memref<8x1x256xf32, #tpu.memory_space<vmem>>, vector<1x1x64xf32>,
    %c8_i32_150 = arith.constant 8 : i32
    %328 = arith.muli %arg0, %c8_i32_150 : i32
    %c3_i32 = arith.constant 3 : i32
    %329 = arith.addi %328, %c3_i32 : i32
    %c11_i32_151 = arith.constant 11 : i32
    %330 = arith.cmpi slt, %329, %c11_i32_151 : i32
    %331 = arith.select %330, %308, %249 : vector<1x128xf32>
    %c4 = arith.constant 4 : index
    %c0_152 = arith.constant 0 : index
    %c0_153 = arith.constant 0 : index
    %332 = vector.load %arg1[%c4, %c0_152, %c0_153] : memref<8x1x32xbf16, #tpu.memory_space<vmem>>, vector<1x1x32xbf16>
    %333 = vector.shape_cast %332 : vector<1x1x32xbf16> to vector<1x32xbf16>
    %334 = vector.extract_strided_slice %331 {offsets = [0, 0], sizes = [1, 32], strides = [1, 1]} : vector<1x128xf32> to vector<1x32xf32>
    %335 = arith.truncf %334 : vector<1x32xf32> to vector<1x32xbf16>
    %336 = tpu.concatenate %333, %335 in 1 : vector<1x32xbf16>, vector<1x32xbf16> -> vector<1x64xbf16>
    %c0_154 = arith.constant 0 : index
    %c0_155 = arith.constant 0 : index
    %337 = vector.load %arg4[%c0_154, %c0_155] : memref<64x640xbf16, #tpu.memory_space<vmem>>, vector<64x640xbf16>
    %cst_156 = arith.constant dense<0.000000e+00> : vector<1x640xf32>
    %338 = tpu.matmul %336, %337, %cst_156 {dimension_numbers = #tpu.dot_dimension_numbers<[1], [0], [0], [1], [0, 0, 1, 1], [], []>} : vector<1x64xbf16>, vector<64x640xbf16>, vector<1x640xf32> -> vector<1x640xf32>
    %c0_157 = arith.constant 0 : index
    %c0_158 = arith.constant 0 : index
    %339 = vector.load %arg5[%c0_157, %c0_158] : memref<1x640xf32, #tpu.memory_space<vmem>>, vector<1x640xf32>
    %340 = arith.addf %338, %339 : vector<1x640xf32>
    %341 = vector.extract_strided_slice %340 {offsets = [0, 0], sizes = [1, 128], strides = [1, 1]} : vector<1x640xf32> to vector<1x128xf32>
    %342 = vector.extract_strided_slice %340 {offsets = [0, 128], sizes = [1, 384], strides = [1, 1]} : vector<1x640xf32> to vector<1x384xf32>
    %343 = vector.extract_strided_slice %340 {offsets = [0, 512], sizes = [1, 32], strides = [1, 1]} : vector<1x640xf32> to vector<1x32xf32>
    %cst_159 = arith.constant dense<0xFF800000> : vector<1xf32>
    %344 = vector.multi_reduction <maximumf>, %341, %cst_159 [1] : vector<1x128xf32> to vector<1xf32>
    %345 = vector.shape_cast %344 : vector<1xf32> to vector<1x1xf32>
    %346 = vector.broadcast %345 : vector<1x1xf32> to vector<1x128xf32>
    %347 = arith.subf %341, %346 : vector<1x128xf32>
    %348 = math.exp %347 : vector<1x128xf32>
    %cst_160 = arith.constant dense<0.000000e+00> : vector<1xf32>
    %349 = vector.multi_reduction <add>, %348, %cst_160 [1] : vector<1x128xf32> to vector<1xf32>
    %350 = vector.shape_cast %349 : vector<1xf32> to vector<1x1xf32>
    %351 = tpu.reciprocal %350 {approx = true} : vector<1x1xf32> -> vector<1x1xf32>
    %352 = vector.broadcast %351 : vector<1x1xf32> to vector<1x128xf32>
    %353 = arith.mulf %348, %352 : vector<1x128xf32>
    %c4_161 = arith.constant 4 : index
    %c0_162 = arith.constant 0 : index
    %c0_163 = arith.constant 0 : index
    %354 = vector.load %arg11[%c4_161, %c0_162, %c0_163] : memref<8x1x256xf32, #tpu.memory_space<vmem>>, vector<1x1x128xf32>
    %355 = vector.shape_cast %354 : vector<1x1x128xf32> to vector<1x128xf32>
    %356 = vector.shape_cast %353 : vector<1x128xf32> to vector<1x1x128xf32>
    tpu.vector_store %arg11[%c4_161, %c0_162, %c0_163], %356 {strides = array<i32>} : memref<8x1x256xf32, #tpu.memory_space<vmem>>, vector<1x1x128xf32>,
    %357 = arith.truncf %353 : vector<1x128xf32> to vector<1x128xbf16>
    %c0_164 = arith.constant 0 : index
    %c0_165 = arith.constant 0 : index
    %358 = vector.load %arg3[%c0_164, %c0_165] : memref<128x32xbf16, #tpu.memory_space<vmem>>, vector<128x32xbf16>
    %cst_166 = arith.constant dense<0.000000e+00> : vector<1x32xf32>
    %359 = tpu.matmul %357, %358, %cst_166 {dimension_numbers = #tpu.dot_dimension_numbers<[1], [0], [0], [1], [0, 0, 1, 1], [], []>} : vector<1x128xbf16>, vector<128x32xbf16>, vector<1x32xf32> -> vector<1x32xf32>
    %360 = arith.truncf %359 : vector<1x32xf32> to vector<1x32xbf16>
    %c0_167 = arith.constant 0 : index
    %c0_168 = arith.constant 0 : index
    %361 = vector.load %arg6[%c0_167, %c0_168] : memref<32x32xbf16, #tpu.memory_space<vmem>>, vector<32x32xbf16>
    %cst_169 = arith.constant dense<0.000000e+00> : vector<1x32xf32>
    %362 = tpu.matmul %360, %361, %cst_169 {dimension_numbers = #tpu.dot_dimension_numbers<[1], [0], [0], [1], [0, 0, 1, 1], [], []>} : vector<1x32xbf16>, vector<32x32xbf16>, vector<1x32xf32> -> vector<1x32xf32>
    %363 = arith.addf %362, %343 : vector<1x32xf32>
    %cst_170 = arith.constant 0.000000e+00 : f32
    %364 = vector.broadcast %cst_170 : f32 to vector<1x32xf32>
    %365 = arith.maximumf %363, %364 : vector<1x32xf32>
    %366 = arith.truncf %365 : vector<1x32xf32> to vector<1x32xbf16>
    %c0_171 = arith.constant 0 : index
    %c0_172 = arith.constant 0 : index
    %367 = vector.load %arg7[%c0_171, %c0_172] : memref<32x384xbf16, #tpu.memory_space<vmem>>, vector<32x384xbf16>
    %cst_173 = arith.constant dense<0.000000e+00> : vector<1x384xf32>
    %368 = tpu.matmul %366, %367, %cst_173 {dimension_numbers = #tpu.dot_dimension_numbers<[1], [0], [0], [1], [0, 0, 1, 1], [], []>} : vector<1x32xbf16>, vector<32x384xbf16>, vector<1x384xf32> -> vector<1x384xf32>
    %c0_174 = arith.constant 0 : index
    %c0_175 = arith.constant 0 : index
    %369 = vector.load %arg8[%c0_174, %c0_175] : memref<1x384xf32, #tpu.memory_space<vmem>>, vector<1x384xf32>
    %370 = arith.addf %368, %369 : vector<1x384xf32>
    %371 = vector.extract_strided_slice %370 {offsets = [0, 0], sizes = [1, 256], strides = [1, 1]} : vector<1x384xf32> to vector<1x256xf32>
    %372 = vector.extract_strided_slice %342 {offsets = [0, 0], sizes = [1, 256], strides = [1, 1]} : vector<1x384xf32> to vector<1x256xf32>
    %373 = arith.addf %371, %372 : vector<1x256xf32>
    %374 = arith.negf %373 : vector<1x256xf32>
    %375 = math.exp %374 : vector<1x256xf32>
    %cst_176 = arith.constant 1.000000e+00 : f32
    %376 = vector.broadcast %cst_176 : f32 to vector<1x256xf32>
    %377 = arith.addf %376, %375 : vector<1x256xf32>
    %378 = arith.divf %376, %377 : vector<1x256xf32>
    %379 = vector.extract_strided_slice %378 {offsets = [0, 0], sizes = [1, 128], strides = [1, 1]} : vector<1x256xf32> to vector<1x128xf32>
    %380 = vector.extract_strided_slice %378 {offsets = [0, 128], sizes = [1, 128], strides = [1, 1]} : vector<1x256xf32> to vector<1x128xf32>
    %381 = vector.extract_strided_slice %370 {offsets = [0, 256], sizes = [1, 128], strides = [1, 1]} : vector<1x384xf32> to vector<1x128xf32>
    %382 = vector.extract_strided_slice %342 {offsets = [0, 256], sizes = [1, 128], strides = [1, 1]} : vector<1x384xf32> to vector<1x128xf32>
    %383 = arith.mulf %379, %382 : vector<1x128xf32>
    %384 = arith.addf %381, %383 : vector<1x128xf32>
    %385 = math.tanh %384 : vector<1x128xf32>
    %cst_177 = arith.constant 1.000000e+00 : f32
    %386 = vector.broadcast %cst_177 : f32 to vector<1x128xf32>
    %387 = arith.subf %386, %380 : vector<1x128xf32>
    %388 = arith.mulf %387, %385 : vector<1x128xf32>
    %389 = arith.mulf %380, %331 : vector<1x128xf32>
    %390 = arith.addf %388, %389 : vector<1x128xf32>
    %391 = arith.truncf %390 : vector<1x128xf32> to vector<1x128xbf16>
    %c0_178 = arith.constant 0 : index
    %c0_179 = arith.constant 0 : index
    %392 = vector.load %arg9[%c0_178, %c0_179] : memref<128x64xbf16, #tpu.memory_space<vmem>>, vector<128x64xbf16>
    %cst_180 = arith.constant dense<0.000000e+00> : vector<1x64xf32>
    %393 = tpu.matmul %391, %392, %cst_180 {dimension_numbers = #tpu.dot_dimension_numbers<[1], [0], [0], [1], [0, 0, 1, 1], [], []>} : vector<1x128xbf16>, vector<128x64xbf16>, vector<1x64xf32> -> vector<1x64xf32>
    %c0_181 = arith.constant 0 : index
    %c0_182 = arith.constant 0 : index
    %394 = vector.load %arg10[%c0_181, %c0_182] : memref<1x64xf32, #tpu.memory_space<vmem>>, vector<1x64xf32>
    %395 = arith.addf %393, %394 : vector<1x64xf32>
    %cst_183 = arith.constant dense<0xFF800000> : vector<1xf32>
    %396 = vector.multi_reduction <maximumf>, %395, %cst_183 [1] : vector<1x64xf32> to vector<1xf32>
    %397 = vector.shape_cast %396 : vector<1xf32> to vector<1x1xf32>
    %398 = vector.broadcast %397 : vector<1x1xf32> to vector<1x64xf32>
    %399 = arith.subf %395, %398 : vector<1x64xf32>
    %400 = math.exp %399 : vector<1x64xf32>
    %cst_184 = arith.constant dense<0.000000e+00> : vector<1xf32>
    %401 = vector.multi_reduction <add>, %400, %cst_184 [1] : vector<1x64xf32> to vector<1xf32>
    %402 = vector.shape_cast %401 : vector<1xf32> to vector<1x1xf32>
    %403 = math.log %402 : vector<1x1xf32>
    %404 = arith.addf %403, %397 : vector<1x1xf32>
    %405 = vector.broadcast %404 : vector<1x1xf32> to vector<1x64xf32>
    %406 = arith.subf %395, %405 : vector<1x64xf32>
    %c4_185 = arith.constant 4 : index
    %c0_186 = arith.constant 0 : index
    %c128_187 = arith.constant 128 : index
    %407 = vector.load %arg11[%c4_185, %c0_186, %c128_187] : memref<8x1x256xf32, #tpu.memory_space<vmem>>, vector<1x1x64xf32>
    %408 = vector.shape_cast %407 : vector<1x1x64xf32> to vector<1x64xf32>
    %409 = vector.shape_cast %406 : vector<1x64xf32> to vector<1x1x64xf32>
    tpu.vector_store %arg11[%c4_185, %c0_186, %c128_187], %409 {strides = array<i32>} : memref<8x1x256xf32, #tpu.memory_space<vmem>>, vector<1x1x64xf32>,
    %c8_i32_188 = arith.constant 8 : i32
    %410 = arith.muli %arg0, %c8_i32_188 : i32
    %c4_i32 = arith.constant 4 : i32
    %411 = arith.addi %410, %c4_i32 : i32
    %c11_i32_189 = arith.constant 11 : i32
    %412 = arith.cmpi slt, %411, %c11_i32_189 : i32
    %413 = arith.select %412, %390, %331 : vector<1x128xf32>
    %c5 = arith.constant 5 : index
    %c0_190 = arith.constant 0 : index
    %c0_191 = arith.constant 0 : index
    %414 = vector.load %arg1[%c5, %c0_190, %c0_191] : memref<8x1x32xbf16, #tpu.memory_space<vmem>>, vector<1x1x32xbf16>
    %415 = vector.shape_cast %414 : vector<1x1x32xbf16> to vector<1x32xbf16>
    %416 = vector.extract_strided_slice %413 {offsets = [0, 0], sizes = [1, 32], strides = [1, 1]} : vector<1x128xf32> to vector<1x32xf32>
    %417 = arith.truncf %416 : vector<1x32xf32> to vector<1x32xbf16>
    %418 = tpu.concatenate %415, %417 in 1 : vector<1x32xbf16>, vector<1x32xbf16> -> vector<1x64xbf16>
    %c0_192 = arith.constant 0 : index
    %c0_193 = arith.constant 0 : index
    %419 = vector.load %arg4[%c0_192, %c0_193] : memref<64x640xbf16, #tpu.memory_space<vmem>>, vector<64x640xbf16>
    %cst_194 = arith.constant dense<0.000000e+00> : vector<1x640xf32>
    %420 = tpu.matmul %418, %419, %cst_194 {dimension_numbers = #tpu.dot_dimension_numbers<[1], [0], [0], [1], [0, 0, 1, 1], [], []>} : vector<1x64xbf16>, vector<64x640xbf16>, vector<1x640xf32> -> vector<1x640xf32>
    %c0_195 = arith.constant 0 : index
    %c0_196 = arith.constant 0 : index
    %421 = vector.load %arg5[%c0_195, %c0_196] : memref<1x640xf32, #tpu.memory_space<vmem>>, vector<1x640xf32>
    %422 = arith.addf %420, %421 : vector<1x640xf32>
    %423 = vector.extract_strided_slice %422 {offsets = [0, 0], sizes = [1, 128], strides = [1, 1]} : vector<1x640xf32> to vector<1x128xf32>
    %424 = vector.extract_strided_slice %422 {offsets = [0, 128], sizes = [1, 384], strides = [1, 1]} : vector<1x640xf32> to vector<1x384xf32>
    %425 = vector.extract_strided_slice %422 {offsets = [0, 512], sizes = [1, 32], strides = [1, 1]} : vector<1x640xf32> to vector<1x32xf32>
    %cst_197 = arith.constant dense<0xFF800000> : vector<1xf32>
    %426 = vector.multi_reduction <maximumf>, %423, %cst_197 [1] : vector<1x128xf32> to vector<1xf32>
    %427 = vector.shape_cast %426 : vector<1xf32> to vector<1x1xf32>
    %428 = vector.broadcast %427 : vector<1x1xf32> to vector<1x128xf32>
    %429 = arith.subf %423, %428 : vector<1x128xf32>
    %430 = math.exp %429 : vector<1x128xf32>
    %cst_198 = arith.constant dense<0.000000e+00> : vector<1xf32>
    %431 = vector.multi_reduction <add>, %430, %cst_198 [1] : vector<1x128xf32> to vector<1xf32>
    %432 = vector.shape_cast %431 : vector<1xf32> to vector<1x1xf32>
    %433 = tpu.reciprocal %432 {approx = true} : vector<1x1xf32> -> vector<1x1xf32>
    %434 = vector.broadcast %433 : vector<1x1xf32> to vector<1x128xf32>
    %435 = arith.mulf %430, %434 : vector<1x128xf32>
    %c5_199 = arith.constant 5 : index
    %c0_200 = arith.constant 0 : index
    %c0_201 = arith.constant 0 : index
    %436 = vector.load %arg11[%c5_199, %c0_200, %c0_201] : memref<8x1x256xf32, #tpu.memory_space<vmem>>, vector<1x1x128xf32>
    %437 = vector.shape_cast %436 : vector<1x1x128xf32> to vector<1x128xf32>
    %438 = vector.shape_cast %435 : vector<1x128xf32> to vector<1x1x128xf32>
    tpu.vector_store %arg11[%c5_199, %c0_200, %c0_201], %438 {strides = array<i32>} : memref<8x1x256xf32, #tpu.memory_space<vmem>>, vector<1x1x128xf32>,
    %439 = arith.truncf %435 : vector<1x128xf32> to vector<1x128xbf16>
    %c0_202 = arith.constant 0 : index
    %c0_203 = arith.constant 0 : index
    %440 = vector.load %arg3[%c0_202, %c0_203] : memref<128x32xbf16, #tpu.memory_space<vmem>>, vector<128x32xbf16>
    %cst_204 = arith.constant dense<0.000000e+00> : vector<1x32xf32>
    %441 = tpu.matmul %439, %440, %cst_204 {dimension_numbers = #tpu.dot_dimension_numbers<[1], [0], [0], [1], [0, 0, 1, 1], [], []>} : vector<1x128xbf16>, vector<128x32xbf16>, vector<1x32xf32> -> vector<1x32xf32>
    %442 = arith.truncf %441 : vector<1x32xf32> to vector<1x32xbf16>
    %c0_205 = arith.constant 0 : index
    %c0_206 = arith.constant 0 : index
    %443 = vector.load %arg6[%c0_205, %c0_206] : memref<32x32xbf16, #tpu.memory_space<vmem>>, vector<32x32xbf16>
    %cst_207 = arith.constant dense<0.000000e+00> : vector<1x32xf32>
    %444 = tpu.matmul %442, %443, %cst_207 {dimension_numbers = #tpu.dot_dimension_numbers<[1], [0], [0], [1], [0, 0, 1, 1], [], []>} : vector<1x32xbf16>, vector<32x32xbf16>, vector<1x32xf32> -> vector<1x32xf32>
    %445 = arith.addf %444, %425 : vector<1x32xf32>
    %cst_208 = arith.constant 0.000000e+00 : f32
    %446 = vector.broadcast %cst_208 : f32 to vector<1x32xf32>
    %447 = arith.maximumf %445, %446 : vector<1x32xf32>
    %448 = arith.truncf %447 : vector<1x32xf32> to vector<1x32xbf16>
    %c0_209 = arith.constant 0 : index
    %c0_210 = arith.constant 0 : index
    %449 = vector.load %arg7[%c0_209, %c0_210] : memref<32x384xbf16, #tpu.memory_space<vmem>>, vector<32x384xbf16>
    %cst_211 = arith.constant dense<0.000000e+00> : vector<1x384xf32>
    %450 = tpu.matmul %448, %449, %cst_211 {dimension_numbers = #tpu.dot_dimension_numbers<[1], [0], [0], [1], [0, 0, 1, 1], [], []>} : vector<1x32xbf16>, vector<32x384xbf16>, vector<1x384xf32> -> vector<1x384xf32>
    %c0_212 = arith.constant 0 : index
    %c0_213 = arith.constant 0 : index
    %451 = vector.load %arg8[%c0_212, %c0_213] : memref<1x384xf32, #tpu.memory_space<vmem>>, vector<1x384xf32>
    %452 = arith.addf %450, %451 : vector<1x384xf32>
    %453 = vector.extract_strided_slice %452 {offsets = [0, 0], sizes = [1, 256], strides = [1, 1]} : vector<1x384xf32> to vector<1x256xf32>
    %454 = vector.extract_strided_slice %424 {offsets = [0, 0], sizes = [1, 256], strides = [1, 1]} : vector<1x384xf32> to vector<1x256xf32>
    %455 = arith.addf %453, %454 : vector<1x256xf32>
    %456 = arith.negf %455 : vector<1x256xf32>
    %457 = math.exp %456 : vector<1x256xf32>
    %cst_214 = arith.constant 1.000000e+00 : f32
    %458 = vector.broadcast %cst_214 : f32 to vector<1x256xf32>
    %459 = arith.addf %458, %457 : vector<1x256xf32>
    %460 = arith.divf %458, %459 : vector<1x256xf32>
    %461 = vector.extract_strided_slice %460 {offsets = [0, 0], sizes = [1, 128], strides = [1, 1]} : vector<1x256xf32> to vector<1x128xf32>
    %462 = vector.extract_strided_slice %460 {offsets = [0, 128], sizes = [1, 128], strides = [1, 1]} : vector<1x256xf32> to vector<1x128xf32>
    %463 = vector.extract_strided_slice %452 {offsets = [0, 256], sizes = [1, 128], strides = [1, 1]} : vector<1x384xf32> to vector<1x128xf32>
    %464 = vector.extract_strided_slice %424 {offsets = [0, 256], sizes = [1, 128], strides = [1, 1]} : vector<1x384xf32> to vector<1x128xf32>
    %465 = arith.mulf %461, %464 : vector<1x128xf32>
    %466 = arith.addf %463, %465 : vector<1x128xf32>
    %467 = math.tanh %466 : vector<1x128xf32>
    %cst_215 = arith.constant 1.000000e+00 : f32
    %468 = vector.broadcast %cst_215 : f32 to vector<1x128xf32>
    %469 = arith.subf %468, %462 : vector<1x128xf32>
    %470 = arith.mulf %469, %467 : vector<1x128xf32>
    %471 = arith.mulf %462, %413 : vector<1x128xf32>
    %472 = arith.addf %470, %471 : vector<1x128xf32>
    %473 = arith.truncf %472 : vector<1x128xf32> to vector<1x128xbf16>
    %c0_216 = arith.constant 0 : index
    %c0_217 = arith.constant 0 : index
    %474 = vector.load %arg9[%c0_216, %c0_217] : memref<128x64xbf16, #tpu.memory_space<vmem>>, vector<128x64xbf16>
    %cst_218 = arith.constant dense<0.000000e+00> : vector<1x64xf32>
    %475 = tpu.matmul %473, %474, %cst_218 {dimension_numbers = #tpu.dot_dimension_numbers<[1], [0], [0], [1], [0, 0, 1, 1], [], []>} : vector<1x128xbf16>, vector<128x64xbf16>, vector<1x64xf32> -> vector<1x64xf32>
    %c0_219 = arith.constant 0 : index
    %c0_220 = arith.constant 0 : index
    %476 = vector.load %arg10[%c0_219, %c0_220] : memref<1x64xf32, #tpu.memory_space<vmem>>, vector<1x64xf32>
    %477 = arith.addf %475, %476 : vector<1x64xf32>
    %cst_221 = arith.constant dense<0xFF800000> : vector<1xf32>
    %478 = vector.multi_reduction <maximumf>, %477, %cst_221 [1] : vector<1x64xf32> to vector<1xf32>
    %479 = vector.shape_cast %478 : vector<1xf32> to vector<1x1xf32>
    %480 = vector.broadcast %479 : vector<1x1xf32> to vector<1x64xf32>
    %481 = arith.subf %477, %480 : vector<1x64xf32>
    %482 = math.exp %481 : vector<1x64xf32>
    %cst_222 = arith.constant dense<0.000000e+00> : vector<1xf32>
    %483 = vector.multi_reduction <add>, %482, %cst_222 [1] : vector<1x64xf32> to vector<1xf32>
    %484 = vector.shape_cast %483 : vector<1xf32> to vector<1x1xf32>
    %485 = math.log %484 : vector<1x1xf32>
    %486 = arith.addf %485, %479 : vector<1x1xf32>
    %487 = vector.broadcast %486 : vector<1x1xf32> to vector<1x64xf32>
    %488 = arith.subf %477, %487 : vector<1x64xf32>
    %c5_223 = arith.constant 5 : index
    %c0_224 = arith.constant 0 : index
    %c128_225 = arith.constant 128 : index
    %489 = vector.load %arg11[%c5_223, %c0_224, %c128_225] : memref<8x1x256xf32, #tpu.memory_space<vmem>>, vector<1x1x64xf32>
    %490 = vector.shape_cast %489 : vector<1x1x64xf32> to vector<1x64xf32>
    %491 = vector.shape_cast %488 : vector<1x64xf32> to vector<1x1x64xf32>
    tpu.vector_store %arg11[%c5_223, %c0_224, %c128_225], %491 {strides = array<i32>} : memref<8x1x256xf32, #tpu.memory_space<vmem>>, vector<1x1x64xf32>,
    %c8_i32_226 = arith.constant 8 : i32
    %492 = arith.muli %arg0, %c8_i32_226 : i32
    %c5_i32 = arith.constant 5 : i32
    %493 = arith.addi %492, %c5_i32 : i32
    %c11_i32_227 = arith.constant 11 : i32
    %494 = arith.cmpi slt, %493, %c11_i32_227 : i32
    %495 = arith.select %494, %472, %413 : vector<1x128xf32>
    %c6 = arith.constant 6 : index
    %c0_228 = arith.constant 0 : index
    %c0_229 = arith.constant 0 : index
    %496 = vector.load %arg1[%c6, %c0_228, %c0_229] : memref<8x1x32xbf16, #tpu.memory_space<vmem>>, vector<1x1x32xbf16>
    %497 = vector.shape_cast %496 : vector<1x1x32xbf16> to vector<1x32xbf16>
    %498 = vector.extract_strided_slice %495 {offsets = [0, 0], sizes = [1, 32], strides = [1, 1]} : vector<1x128xf32> to vector<1x32xf32>
    %499 = arith.truncf %498 : vector<1x32xf32> to vector<1x32xbf16>
    %500 = tpu.concatenate %497, %499 in 1 : vector<1x32xbf16>, vector<1x32xbf16> -> vector<1x64xbf16>
    %c0_230 = arith.constant 0 : index
    %c0_231 = arith.constant 0 : index
    %501 = vector.load %arg4[%c0_230, %c0_231] : memref<64x640xbf16, #tpu.memory_space<vmem>>, vector<64x640xbf16>
    %cst_232 = arith.constant dense<0.000000e+00> : vector<1x640xf32>
    %502 = tpu.matmul %500, %501, %cst_232 {dimension_numbers = #tpu.dot_dimension_numbers<[1], [0], [0], [1], [0, 0, 1, 1], [], []>} : vector<1x64xbf16>, vector<64x640xbf16>, vector<1x640xf32> -> vector<1x640xf32>
    %c0_233 = arith.constant 0 : index
    %c0_234 = arith.constant 0 : index
    %503 = vector.load %arg5[%c0_233, %c0_234] : memref<1x640xf32, #tpu.memory_space<vmem>>, vector<1x640xf32>
    %504 = arith.addf %502, %503 : vector<1x640xf32>
    %505 = vector.extract_strided_slice %504 {offsets = [0, 0], sizes = [1, 128], strides = [1, 1]} : vector<1x640xf32> to vector<1x128xf32>
    %506 = vector.extract_strided_slice %504 {offsets = [0, 128], sizes = [1, 384], strides = [1, 1]} : vector<1x640xf32> to vector<1x384xf32>
    %507 = vector.extract_strided_slice %504 {offsets = [0, 512], sizes = [1, 32], strides = [1, 1]} : vector<1x640xf32> to vector<1x32xf32>
    %cst_235 = arith.constant dense<0xFF800000> : vector<1xf32>
    %508 = vector.multi_reduction <maximumf>, %505, %cst_235 [1] : vector<1x128xf32> to vector<1xf32>
    %509 = vector.shape_cast %508 : vector<1xf32> to vector<1x1xf32>
    %510 = vector.broadcast %509 : vector<1x1xf32> to vector<1x128xf32>
    %511 = arith.subf %505, %510 : vector<1x128xf32>
    %512 = math.exp %511 : vector<1x128xf32>
    %cst_236 = arith.constant dense<0.000000e+00> : vector<1xf32>
    %513 = vector.multi_reduction <add>, %512, %cst_236 [1] : vector<1x128xf32> to vector<1xf32>
    %514 = vector.shape_cast %513 : vector<1xf32> to vector<1x1xf32>
    %515 = tpu.reciprocal %514 {approx = true} : vector<1x1xf32> -> vector<1x1xf32>
    %516 = vector.broadcast %515 : vector<1x1xf32> to vector<1x128xf32>
    %517 = arith.mulf %512, %516 : vector<1x128xf32>
    %c6_237 = arith.constant 6 : index
    %c0_238 = arith.constant 0 : index
    %c0_239 = arith.constant 0 : index
    %518 = vector.load %arg11[%c6_237, %c0_238, %c0_239] : memref<8x1x256xf32, #tpu.memory_space<vmem>>, vector<1x1x128xf32>
    %519 = vector.shape_cast %518 : vector<1x1x128xf32> to vector<1x128xf32>
    %520 = vector.shape_cast %517 : vector<1x128xf32> to vector<1x1x128xf32>
    tpu.vector_store %arg11[%c6_237, %c0_238, %c0_239], %520 {strides = array<i32>} : memref<8x1x256xf32, #tpu.memory_space<vmem>>, vector<1x1x128xf32>,
    %521 = arith.truncf %517 : vector<1x128xf32> to vector<1x128xbf16>
    %c0_240 = arith.constant 0 : index
    %c0_241 = arith.constant 0 : index
    %522 = vector.load %arg3[%c0_240, %c0_241] : memref<128x32xbf16, #tpu.memory_space<vmem>>, vector<128x32xbf16>
    %cst_242 = arith.constant dense<0.000000e+00> : vector<1x32xf32>
    %523 = tpu.matmul %521, %522, %cst_242 {dimension_numbers = #tpu.dot_dimension_numbers<[1], [0], [0], [1], [0, 0, 1, 1], [], []>} : vector<1x128xbf16>, vector<128x32xbf16>, vector<1x32xf32> -> vector<1x32xf32>
    %524 = arith.truncf %523 : vector<1x32xf32> to vector<1x32xbf16>
    %c0_243 = arith.constant 0 : index
    %c0_244 = arith.constant 0 : index
    %525 = vector.load %arg6[%c0_243, %c0_244] : memref<32x32xbf16, #tpu.memory_space<vmem>>, vector<32x32xbf16>
    %cst_245 = arith.constant dense<0.000000e+00> : vector<1x32xf32>
    %526 = tpu.matmul %524, %525, %cst_245 {dimension_numbers = #tpu.dot_dimension_numbers<[1], [0], [0], [1], [0, 0, 1, 1], [], []>} : vector<1x32xbf16>, vector<32x32xbf16>, vector<1x32xf32> -> vector<1x32xf32>
    %527 = arith.addf %526, %507 : vector<1x32xf32>
    %cst_246 = arith.constant 0.000000e+00 : f32
    %528 = vector.broadcast %cst_246 : f32 to vector<1x32xf32>
    %529 = arith.maximumf %527, %528 : vector<1x32xf32>
    %530 = arith.truncf %529 : vector<1x32xf32> to vector<1x32xbf16>
    %c0_247 = arith.constant 0 : index
    %c0_248 = arith.constant 0 : index
    %531 = vector.load %arg7[%c0_247, %c0_248] : memref<32x384xbf16, #tpu.memory_space<vmem>>, vector<32x384xbf16>
    %cst_249 = arith.constant dense<0.000000e+00> : vector<1x384xf32>
    %532 = tpu.matmul %530, %531, %cst_249 {dimension_numbers = #tpu.dot_dimension_numbers<[1], [0], [0], [1], [0, 0, 1, 1], [], []>} : vector<1x32xbf16>, vector<32x384xbf16>, vector<1x384xf32> -> vector<1x384xf32>
    %c0_250 = arith.constant 0 : index
    %c0_251 = arith.constant 0 : index
    %533 = vector.load %arg8[%c0_250, %c0_251] : memref<1x384xf32, #tpu.memory_space<vmem>>, vector<1x384xf32>
    %534 = arith.addf %532, %533 : vector<1x384xf32>
    %535 = vector.extract_strided_slice %534 {offsets = [0, 0], sizes = [1, 256], strides = [1, 1]} : vector<1x384xf32> to vector<1x256xf32>
    %536 = vector.extract_strided_slice %506 {offsets = [0, 0], sizes = [1, 256], strides = [1, 1]} : vector<1x384xf32> to vector<1x256xf32>
    %537 = arith.addf %535, %536 : vector<1x256xf32>
    %538 = arith.negf %537 : vector<1x256xf32>
    %539 = math.exp %538 : vector<1x256xf32>
    %cst_252 = arith.constant 1.000000e+00 : f32
    %540 = vector.broadcast %cst_252 : f32 to vector<1x256xf32>
    %541 = arith.addf %540, %539 : vector<1x256xf32>
    %542 = arith.divf %540, %541 : vector<1x256xf32>
    %543 = vector.extract_strided_slice %542 {offsets = [0, 0], sizes = [1, 128], strides = [1, 1]} : vector<1x256xf32> to vector<1x128xf32>
    %544 = vector.extract_strided_slice %542 {offsets = [0, 128], sizes = [1, 128], strides = [1, 1]} : vector<1x256xf32> to vector<1x128xf32>
    %545 = vector.extract_strided_slice %534 {offsets = [0, 256], sizes = [1, 128], strides = [1, 1]} : vector<1x384xf32> to vector<1x128xf32>
    %546 = vector.extract_strided_slice %506 {offsets = [0, 256], sizes = [1, 128], strides = [1, 1]} : vector<1x384xf32> to vector<1x128xf32>
    %547 = arith.mulf %543, %546 : vector<1x128xf32>
    %548 = arith.addf %545, %547 : vector<1x128xf32>
    %549 = math.tanh %548 : vector<1x128xf32>
    %cst_253 = arith.constant 1.000000e+00 : f32
    %550 = vector.broadcast %cst_253 : f32 to vector<1x128xf32>
    %551 = arith.subf %550, %544 : vector<1x128xf32>
    %552 = arith.mulf %551, %549 : vector<1x128xf32>
    %553 = arith.mulf %544, %495 : vector<1x128xf32>
    %554 = arith.addf %552, %553 : vector<1x128xf32>
    %555 = arith.truncf %554 : vector<1x128xf32> to vector<1x128xbf16>
    %c0_254 = arith.constant 0 : index
    %c0_255 = arith.constant 0 : index
    %556 = vector.load %arg9[%c0_254, %c0_255] : memref<128x64xbf16, #tpu.memory_space<vmem>>, vector<128x64xbf16>
    %cst_256 = arith.constant dense<0.000000e+00> : vector<1x64xf32>
    %557 = tpu.matmul %555, %556, %cst_256 {dimension_numbers = #tpu.dot_dimension_numbers<[1], [0], [0], [1], [0, 0, 1, 1], [], []>} : vector<1x128xbf16>, vector<128x64xbf16>, vector<1x64xf32> -> vector<1x64xf32>
    %c0_257 = arith.constant 0 : index
    %c0_258 = arith.constant 0 : index
    %558 = vector.load %arg10[%c0_257, %c0_258] : memref<1x64xf32, #tpu.memory_space<vmem>>, vector<1x64xf32>
    %559 = arith.addf %557, %558 : vector<1x64xf32>
    %cst_259 = arith.constant dense<0xFF800000> : vector<1xf32>
    %560 = vector.multi_reduction <maximumf>, %559, %cst_259 [1] : vector<1x64xf32> to vector<1xf32>
    %561 = vector.shape_cast %560 : vector<1xf32> to vector<1x1xf32>
    %562 = vector.broadcast %561 : vector<1x1xf32> to vector<1x64xf32>
    %563 = arith.subf %559, %562 : vector<1x64xf32>
    %564 = math.exp %563 : vector<1x64xf32>
    %cst_260 = arith.constant dense<0.000000e+00> : vector<1xf32>
    %565 = vector.multi_reduction <add>, %564, %cst_260 [1] : vector<1x64xf32> to vector<1xf32>
    %566 = vector.shape_cast %565 : vector<1xf32> to vector<1x1xf32>
    %567 = math.log %566 : vector<1x1xf32>
    %568 = arith.addf %567, %561 : vector<1x1xf32>
    %569 = vector.broadcast %568 : vector<1x1xf32> to vector<1x64xf32>
    %570 = arith.subf %559, %569 : vector<1x64xf32>
    %c6_261 = arith.constant 6 : index
    %c0_262 = arith.constant 0 : index
    %c128_263 = arith.constant 128 : index
    %571 = vector.load %arg11[%c6_261, %c0_262, %c128_263] : memref<8x1x256xf32, #tpu.memory_space<vmem>>, vector<1x1x64xf32>
    %572 = vector.shape_cast %571 : vector<1x1x64xf32> to vector<1x64xf32>
    %573 = vector.shape_cast %570 : vector<1x64xf32> to vector<1x1x64xf32>
    tpu.vector_store %arg11[%c6_261, %c0_262, %c128_263], %573 {strides = array<i32>} : memref<8x1x256xf32, #tpu.memory_space<vmem>>, vector<1x1x64xf32>,
    %c8_i32_264 = arith.constant 8 : i32
    %574 = arith.muli %arg0, %c8_i32_264 : i32
    %c6_i32 = arith.constant 6 : i32
    %575 = arith.addi %574, %c6_i32 : i32
    %c11_i32_265 = arith.constant 11 : i32
    %576 = arith.cmpi slt, %575, %c11_i32_265 : i32
    %577 = arith.select %576, %554, %495 : vector<1x128xf32>
    %c7 = arith.constant 7 : index
    %c0_266 = arith.constant 0 : index
    %c0_267 = arith.constant 0 : index
    %578 = vector.load %arg1[%c7, %c0_266, %c0_267] : memref<8x1x32xbf16, #tpu.memory_space<vmem>>, vector<1x1x32xbf16>
    %579 = vector.shape_cast %578 : vector<1x1x32xbf16> to vector<1x32xbf16>
    %580 = vector.extract_strided_slice %577 {offsets = [0, 0], sizes = [1, 32], strides = [1, 1]} : vector<1x128xf32> to vector<1x32xf32>
    %581 = arith.truncf %580 : vector<1x32xf32> to vector<1x32xbf16>
    %582 = tpu.concatenate %579, %581 in 1 : vector<1x32xbf16>, vector<1x32xbf16> -> vector<1x64xbf16>
    %c0_268 = arith.constant 0 : index
    %c0_269 = arith.constant 0 : index
    %583 = vector.load %arg4[%c0_268, %c0_269] : memref<64x640xbf16, #tpu.memory_space<vmem>>, vector<64x640xbf16>
    %cst_270 = arith.constant dense<0.000000e+00> : vector<1x640xf32>
    %584 = tpu.matmul %582, %583, %cst_270 {dimension_numbers = #tpu.dot_dimension_numbers<[1], [0], [0], [1], [0, 0, 1, 1], [], []>} : vector<1x64xbf16>, vector<64x640xbf16>, vector<1x640xf32> -> vector<1x640xf32>
    %c0_271 = arith.constant 0 : index
    %c0_272 = arith.constant 0 : index
    %585 = vector.load %arg5[%c0_271, %c0_272] : memref<1x640xf32, #tpu.memory_space<vmem>>, vector<1x640xf32>
    %586 = arith.addf %584, %585 : vector<1x640xf32>
    %587 = vector.extract_strided_slice %586 {offsets = [0, 0], sizes = [1, 128], strides = [1, 1]} : vector<1x640xf32> to vector<1x128xf32>
    %588 = vector.extract_strided_slice %586 {offsets = [0, 128], sizes = [1, 384], strides = [1, 1]} : vector<1x640xf32> to vector<1x384xf32>
    %589 = vector.extract_strided_slice %586 {offsets = [0, 512], sizes = [1, 32], strides = [1, 1]} : vector<1x640xf32> to vector<1x32xf32>
    %cst_273 = arith.constant dense<0xFF800000> : vector<1xf32>
    %590 = vector.multi_reduction <maximumf>, %587, %cst_273 [1] : vector<1x128xf32> to vector<1xf32>
    %591 = vector.shape_cast %590 : vector<1xf32> to vector<1x1xf32>
    %592 = vector.broadcast %591 : vector<1x1xf32> to vector<1x128xf32>
    %593 = arith.subf %587, %592 : vector<1x128xf32>
    %594 = math.exp %593 : vector<1x128xf32>
    %cst_274 = arith.constant dense<0.000000e+00> : vector<1xf32>
    %595 = vector.multi_reduction <add>, %594, %cst_274 [1] : vector<1x128xf32> to vector<1xf32>
    %596 = vector.shape_cast %595 : vector<1xf32> to vector<1x1xf32>
    %597 = tpu.reciprocal %596 {approx = true} : vector<1x1xf32> -> vector<1x1xf32>
    %598 = vector.broadcast %597 : vector<1x1xf32> to vector<1x128xf32>
    %599 = arith.mulf %594, %598 : vector<1x128xf32>
    %c7_275 = arith.constant 7 : index
    %c0_276 = arith.constant 0 : index
    %c0_277 = arith.constant 0 : index
    %600 = vector.load %arg11[%c7_275, %c0_276, %c0_277] : memref<8x1x256xf32, #tpu.memory_space<vmem>>, vector<1x1x128xf32>
    %601 = vector.shape_cast %600 : vector<1x1x128xf32> to vector<1x128xf32>
    %602 = vector.shape_cast %599 : vector<1x128xf32> to vector<1x1x128xf32>
    tpu.vector_store %arg11[%c7_275, %c0_276, %c0_277], %602 {strides = array<i32>} : memref<8x1x256xf32, #tpu.memory_space<vmem>>, vector<1x1x128xf32>,
    %603 = arith.truncf %599 : vector<1x128xf32> to vector<1x128xbf16>
    %c0_278 = arith.constant 0 : index
    %c0_279 = arith.constant 0 : index
    %604 = vector.load %arg3[%c0_278, %c0_279] : memref<128x32xbf16, #tpu.memory_space<vmem>>, vector<128x32xbf16>
    %cst_280 = arith.constant dense<0.000000e+00> : vector<1x32xf32>
    %605 = tpu.matmul %603, %604, %cst_280 {dimension_numbers = #tpu.dot_dimension_numbers<[1], [0], [0], [1], [0, 0, 1, 1], [], []>} : vector<1x128xbf16>, vector<128x32xbf16>, vector<1x32xf32> -> vector<1x32xf32>
    %606 = arith.truncf %605 : vector<1x32xf32> to vector<1x32xbf16>
    %c0_281 = arith.constant 0 : index
    %c0_282 = arith.constant 0 : index
    %607 = vector.load %arg6[%c0_281, %c0_282] : memref<32x32xbf16, #tpu.memory_space<vmem>>, vector<32x32xbf16>
    %cst_283 = arith.constant dense<0.000000e+00> : vector<1x32xf32>
    %608 = tpu.matmul %606, %607, %cst_283 {dimension_numbers = #tpu.dot_dimension_numbers<[1], [0], [0], [1], [0, 0, 1, 1], [], []>} : vector<1x32xbf16>, vector<32x32xbf16>, vector<1x32xf32> -> vector<1x32xf32>
    %609 = arith.addf %608, %589 : vector<1x32xf32>
    %cst_284 = arith.constant 0.000000e+00 : f32
    %610 = vector.broadcast %cst_284 : f32 to vector<1x32xf32>
    %611 = arith.maximumf %609, %610 : vector<1x32xf32>
    %612 = arith.truncf %611 : vector<1x32xf32> to vector<1x32xbf16>
    %c0_285 = arith.constant 0 : index
    %c0_286 = arith.constant 0 : index
    %613 = vector.load %arg7[%c0_285, %c0_286] : memref<32x384xbf16, #tpu.memory_space<vmem>>, vector<32x384xbf16>
    %cst_287 = arith.constant dense<0.000000e+00> : vector<1x384xf32>
    %614 = tpu.matmul %612, %613, %cst_287 {dimension_numbers = #tpu.dot_dimension_numbers<[1], [0], [0], [1], [0, 0, 1, 1], [], []>} : vector<1x32xbf16>, vector<32x384xbf16>, vector<1x384xf32> -> vector<1x384xf32>
    %c0_288 = arith.constant 0 : index
    %c0_289 = arith.constant 0 : index
    %615 = vector.load %arg8[%c0_288, %c0_289] : memref<1x384xf32, #tpu.memory_space<vmem>>, vector<1x384xf32>
    %616 = arith.addf %614, %615 : vector<1x384xf32>
    %617 = vector.extract_strided_slice %616 {offsets = [0, 0], sizes = [1, 256], strides = [1, 1]} : vector<1x384xf32> to vector<1x256xf32>
    %618 = vector.extract_strided_slice %588 {offsets = [0, 0], sizes = [1, 256], strides = [1, 1]} : vector<1x384xf32> to vector<1x256xf32>
    %619 = arith.addf %617, %618 : vector<1x256xf32>
    %620 = arith.negf %619 : vector<1x256xf32>
    %621 = math.exp %620 : vector<1x256xf32>
    %cst_290 = arith.constant 1.000000e+00 : f32
    %622 = vector.broadcast %cst_290 : f32 to vector<1x256xf32>
    %623 = arith.addf %622, %621 : vector<1x256xf32>
    %624 = arith.divf %622, %623 : vector<1x256xf32>
    %625 = vector.extract_strided_slice %624 {offsets = [0, 0], sizes = [1, 128], strides = [1, 1]} : vector<1x256xf32> to vector<1x128xf32>
    %626 = vector.extract_strided_slice %624 {offsets = [0, 128], sizes = [1, 128], strides = [1, 1]} : vector<1x256xf32> to vector<1x128xf32>
    %627 = vector.extract_strided_slice %616 {offsets = [0, 256], sizes = [1, 128], strides = [1, 1]} : vector<1x384xf32> to vector<1x128xf32>
    %628 = vector.extract_strided_slice %588 {offsets = [0, 256], sizes = [1, 128], strides = [1, 1]} : vector<1x384xf32> to vector<1x128xf32>
    %629 = arith.mulf %625, %628 : vector<1x128xf32>
    %630 = arith.addf %627, %629 : vector<1x128xf32>
    %631 = math.tanh %630 : vector<1x128xf32>
    %cst_291 = arith.constant 1.000000e+00 : f32
    %632 = vector.broadcast %cst_291 : f32 to vector<1x128xf32>
    %633 = arith.subf %632, %626 : vector<1x128xf32>
    %634 = arith.mulf %633, %631 : vector<1x128xf32>
    %635 = arith.mulf %626, %577 : vector<1x128xf32>
    %636 = arith.addf %634, %635 : vector<1x128xf32>
    %637 = arith.truncf %636 : vector<1x128xf32> to vector<1x128xbf16>
    %c0_292 = arith.constant 0 : index
    %c0_293 = arith.constant 0 : index
    %638 = vector.load %arg9[%c0_292, %c0_293] : memref<128x64xbf16, #tpu.memory_space<vmem>>, vector<128x64xbf16>
    %cst_294 = arith.constant dense<0.000000e+00> : vector<1x64xf32>
    %639 = tpu.matmul %637, %638, %cst_294 {dimension_numbers = #tpu.dot_dimension_numbers<[1], [0], [0], [1], [0, 0, 1, 1], [], []>} : vector<1x128xbf16>, vector<128x64xbf16>, vector<1x64xf32> -> vector<1x64xf32>
    %c0_295 = arith.constant 0 : index
    %c0_296 = arith.constant 0 : index
    %640 = vector.load %arg10[%c0_295, %c0_296] : memref<1x64xf32, #tpu.memory_space<vmem>>, vector<1x64xf32>
    %641 = arith.addf %639, %640 : vector<1x64xf32>
    %cst_297 = arith.constant dense<0xFF800000> : vector<1xf32>
    %642 = vector.multi_reduction <maximumf>, %641, %cst_297 [1] : vector<1x64xf32> to vector<1xf32>
    %643 = vector.shape_cast %642 : vector<1xf32> to vector<1x1xf32>
    %644 = vector.broadcast %643 : vector<1x1xf32> to vector<1x64xf32>
    %645 = arith.subf %641, %644 : vector<1x64xf32>
    %646 = math.exp %645 : vector<1x64xf32>
    %cst_298 = arith.constant dense<0.000000e+00> : vector<1xf32>
    %647 = vector.multi_reduction <add>, %646, %cst_298 [1] : vector<1x64xf32> to vector<1xf32>
    %648 = vector.shape_cast %647 : vector<1xf32> to vector<1x1xf32>
    %649 = math.log %648 : vector<1x1xf32>
    %650 = arith.addf %649, %643 : vector<1x1xf32>
    %651 = vector.broadcast %650 : vector<1x1xf32> to vector<1x64xf32>
    %652 = arith.subf %641, %651 : vector<1x64xf32>
    %c7_299 = arith.constant 7 : index
    %c0_300 = arith.constant 0 : index
    %c128_301 = arith.constant 128 : index
    %653 = vector.load %arg11[%c7_299, %c0_300, %c128_301] : memref<8x1x256xf32, #tpu.memory_space<vmem>>, vector<1x1x64xf32>
    %654 = vector.shape_cast %653 : vector<1x1x64xf32> to vector<1x64xf32>
    %655 = vector.shape_cast %652 : vector<1x64xf32> to vector<1x1x64xf32>
    tpu.vector_store %arg11[%c7_299, %c0_300, %c128_301], %655 {strides = array<i32>} : memref<8x1x256xf32, #tpu.memory_space<vmem>>, vector<1x1x64xf32>,
    %c8_i32_302 = arith.constant 8 : i32
    %656 = arith.muli %arg0, %c8_i32_302 : i32
    %c7_i32 = arith.constant 7 : i32
    %657 = arith.addi %656, %c7_i32 : i32
    %c11_i32_303 = arith.constant 11 : i32
    %658 = arith.cmpi slt, %657, %c11_i32_303 : i32
    %659 = arith.select %658, %636, %577 : vector<1x128xf32>
    %c0_304 = arith.constant 0 : index
    %c0_305 = arith.constant 0 : index
    %660 = vector.load %arg12[%c0_304, %c0_305] : memref<1x128xf32, #tpu.memory_space<vmem>>, vector<1x128xf32>
    tpu.vector_store %arg12[%c0_304, %c0_305], %659 {strides = array<i32>} : memref<1x128xf32, #tpu.memory_space<vmem>>, vector<1x128xf32>,
    return
  }
  func.func @transform_0(%arg0: i32) -> (i32, i32, i32) {
    %c0_i32 = arith.constant 0 : i32
    %c0_i32_0 = arith.constant 0 : i32
    %c0_i32_1 = arith.constant 0 : i32
    return %arg0, %c0_i32, %c0_i32_0 : i32, i32, i32
  }
  func.func @transform_1(%arg0: i32) -> (i32, i32) {
    %c0_i32 = arith.constant 0 : i32
    %c0_i32_0 = arith.constant 0 : i32
    %c0_i32_1 = arith.constant 0 : i32
    return %c0_i32, %c0_i32_0 : i32, i32
  }
  func.func @transform_2(%arg0: i32) -> (i32, i32) {
    %c0_i32 = arith.constant 0 : i32
    %c0_i32_0 = arith.constant 0 : i32
    %c0_i32_1 = arith.constant 0 : i32
    return %c0_i32, %c0_i32_0 : i32, i32
  }
  func.func @transform_3(%arg0: i32) -> (i32, i32) {
    %c0_i32 = arith.constant 0 : i32
    %c0_i32_0 = arith.constant 0 : i32
    %c0_i32_1 = arith.constant 0 : i32
    return %c0_i32, %c0_i32_0 : i32, i32
  }
  func.func @transform_4(%arg0: i32) -> (i32, i32) {
    %c0_i32 = arith.constant 0 : i32
    %c0_i32_0 = arith.constant 0 : i32
    %c0_i32_1 = arith.constant 0 : i32
    return %c0_i32, %c0_i32_0 : i32, i32
  }
  func.func @transform_5(%arg0: i32) -> (i32, i32) {
    %c0_i32 = arith.constant 0 : i32
    %c0_i32_0 = arith.constant 0 : i32
    %c0_i32_1 = arith.constant 0 : i32
    return %c0_i32, %c0_i32_0 : i32, i32
  }
  func.func @transform_6(%arg0: i32) -> (i32, i32) {
    %c0_i32 = arith.constant 0 : i32
    %c0_i32_0 = arith.constant 0 : i32
    %c0_i32_1 = arith.constant 0 : i32
    return %c0_i32, %c0_i32_0 : i32, i32
  }
  func.func @transform_7(%arg0: i32) -> (i32, i32) {
    %c0_i32 = arith.constant 0 : i32
    %c0_i32_0 = arith.constant 0 : i32
    %c0_i32_1 = arith.constant 0 : i32
    return %c0_i32, %c0_i32_0 : i32, i32
  }
  func.func @transform_8(%arg0: i32) -> (i32, i32) {
    %c0_i32 = arith.constant 0 : i32
    %c0_i32_0 = arith.constant 0 : i32
    %c0_i32_1 = arith.constant 0 : i32
    return %c0_i32, %c0_i32_0 : i32, i32
  }
  func.func @transform_9(%arg0: i32) -> (i32, i32) {
    %c0_i32 = arith.constant 0 : i32
    %c0_i32_0 = arith.constant 0 : i32
    %c0_i32_1 = arith.constant 0 : i32
    return %c0_i32, %c0_i32_0 : i32, i32
  }
  func.func @transform_10(%arg0: i32) -> (i32, i32, i32) {
    %c0_i32 = arith.constant 0 : i32
    %c0_i32_0 = arith.constant 0 : i32
    %c0_i32_1 = arith.constant 0 : i32
    return %arg0, %c0_i32, %c0_i32_0 : i32, i32, i32
  }
  func.func @transform_11(%arg0: i32) -> (i32, i32) {
    %c0_i32 = arith.constant 0 : i32
    %c0_i32_0 = arith.constant 0 : i32
    %c0_i32_1 = arith.constant 0 : i32
    return %c0_i32, %c0_i32_0 : i32, i32
  }
}

</mosaic_0001>

<bundles_post_ra>
// kernel: tpu_custom_call.1
= control target key start
LH: loop header
LB: loop body
LE: loop exit
PB: predicated region body
PF: predicated region fallthrough
CT: control target
= control target key end

     0   :  { %s10691_s0 = inlined_call_operand.vmem [shape: bf16[16,1,32], index: 0, kind: input, shape index: {}]   ;;  %s10692_s1 = inlined_call_operand.vmem [shape: f32[1,128], index: 1, kind: input, shape index: {}]   ;;  %s10693_s2 = inlined_call_operand.vmem [shape: bf16[128,32], index: 2, kind: input, shape index: {}]   ;;  %s10694_s3 = inlined_call_operand.vmem [shape: bf16[64,640], index: 3, kind: input, shape index: {}]   ;;  %s10695_s4 = inlined_call_operand.vmem [shape: f32[1,640], index: 4, kind: input, shape index: {}]   ;;  %s10696_s5 = inlined_call_operand.hbm [shape: bf16[32,32], index: 5, kind: input, shape index: {}]   ;;  %s10697_s6 = inlined_call_operand.vmem [shape: bf16[32,384], index: 6, kind: input, shape index: {}]   ;;  %s10698_s7 = inlined_call_operand.vmem [shape: f32[1,384], index: 7, kind: input, shape index: {}]   ;;  %s10699_s8 = inlined_call_operand.vmem [shape: bf16[128,64], index: 8, kind: input, shape index: {}]   ;;  %s10700_s9 = inlined_call_operand.vmem [shape: f32[1,64], index: 9, kind: input, shape index: {}]   ;;  %s10701_s10 = inlined_call_operand.hbm [shape: f32[16,1,256], index: 10, kind: output, shape index: {0}]   ;;  %s10702_s11 = inlined_call_operand.hbm [shape: f32[1,128], index: 11, kind: output, shape index: {1}]  }
   0x1   :  { %10710 = sst [smem:[#allocation12_spill]] %s10691_s0 }
   0x2   :  { %10711 = sst [smem:[#allocation13_spill]] %s10692_s1 }
   0x3   :  { %17 = vsyncpa [#allocation3], 0 }
   0x4   :  { %18 = vsyncpa [#allocation4], 0 }
   0x5   :  { %20 = vsyncpa [#allocation4 + $0x1], 0 }
   0x6   :  { %21 = vsyncpa [#allocation7], 0  ;;  %s8571_s17 = smov 0   ;;  %s8573_s18 = smov 0  }
   0x7   :  { %s8575_s19 = smov 0   ;;  %s8577_s20 = smov 0  }
   0x8 LB: > { %s8592_s21 = sadd.s32 4294967295, %s8499_s20   ;;  %s6572_s22 = sadd.s32 4294967294, %s8499_s20   ;;  %s8499_s20 = sphi %s8577_s20, %s10740_s20   ;;  %s8495_s19 = sphi %s8575_s19, %s10739_s19   ;;  %s8491_s18 = sphi %s8573_s18, %s10738_s18   ;;  %s8487_s17 = sphi %s8571_s17, %s10737_s17  }
   0x9   : > { %s8596_s23 = sadd.s32 1, %s8499_s20   ;;  %s249_s24 = sadd.s32 1, %s8495_s19 }
   0xa   : > { %s246_s25 = ssub.s32 %s8499_s20, %s8596_s23  ;;  %p259_p0 = scmp.ne.s32.totalorder %s8495_s19, %s8491_s18 }
   0xb   : > { %p247_p1 = scmp.eq.s32.totalorder %s246_s25, 0  ;;  %p10703_p2 = scmp.eq.s32.totalorder %s8592_s21, 1 }
   0xc   : > { %p265_p3 = scmp.ne.s32.totalorder %s8491_s18, %s8487_s17  ;;  %p266_p4 = scmp.eq.s32.totalorder %s6572_s22, 1 }
   0xd   : > { %s8607_s26 = scalar_select %p247_p1, %s8495_s19, %s249_s24  }
   0xe   : > { %p8611_p5 = por %p10703_p2, %p259_p0  ;;  %p8615_p6 = por %p266_p4, %p265_p3 }
   0xf   : > { %10712 = sst [smem:[#allocation11_spill]] %s8607_s26  ;;  %p6573_p7 = scmp.ge.s32.totalorder %s8499_s20, 1 }
  0x10   : > { %s10713_s27 = scalar_select %p8611_p5, 1, 0 }
  0x11   : > { %s10714_s28 = scalar_select %p8615_p6, 1, 0 }
  0x12   : > { %p294_p8 = scmp.lt.s32.totalorder %s8499_s20, 3  ;;  %p10704_p10 = scmp.eq.s32.totalorder %s8592_s21, 0 }
  0x13   : > { %s8501_s30 = smov [#allocation2]   ;;  %s8375_s16 = scalar_lea.hbm %s10696_s5, 256 }
  0x14   : > { %p8623_p11 = pnand %p6573_p7, %p294_p8  ;;  %s318_s12 = sshll.u32 %s8501_s30, 4  ;;  %s319_s12 = int_to_ptr.vmem [resolvable:$true] %s318_s12 }
  0x15   : > { %p8376_p0 = scmp.ne.s32.totalorder %s10696_s5, %s8375_s16  ;;  %p8382_p7 = scmp.lt.u32.totalorder %s8375_s16, %s10696_s5 }
  0x16   : > { %s10715_s29 = scalar_select %p8623_p11, 1, 0 }
  0x17   : > { %p7855_p12 = pneg %p8623_p11 }
  0x19   : > { %p8631_p13 = pnand %p10704_p10, %p7855_p12 }
  0x1b   : > { %p8377_p1 = pneg %p8631_p13 }
  0x1d   : > { %p8378_p3 = pnand %p8377_p1, %p8376_p0 }
  0x1f   : > { %p8379_p4 = pneg %p8378_p3 }
  0x21   : > { %p8384_p8 = pnand %p8382_p7, %p8379_p4 }
  0x23   : > { %8387 = shalt.err (!%p8384_p8)
}
  0x24   : > { %s8388_s26 = scalar_lea.vmem %s319_s12, 256  ;;  %p8396_p10 = scmp.lt.s32.totalorder %s319_s12, %s319_s12 }
  0x25   : > { %p8389_p12 = scmp.ne.s32.totalorder %s319_s12, %s8388_s26  ;;  %p8397_p6 = scmp.lt.s32.totalorder %s8388_s26, %s8388_s26 }
  0x27   : > { %p8391_p2 = pnand %p8389_p12, %p8377_p1  ;;  %p8398_p5 = por %p8397_p6, %p8396_p10 }
  0x29   : > { %p8392_p9 = pneg %p8391_p2 }
  0x2b   : > { %p8399_p11 = pnand %p8398_p5, %p8392_p9 }
  0x2d   : > { %8402 = shalt.err (!%p8399_p11)
}
  0x2e   : > { %s8502_s14 = smov 64   ;;  %s8503_s15 = smov 4  }
  0x2f   : > { %7858 = dma.hbm_to_vmem [thread:$0]  (!%p8631_p13), %s10696_s5, 256, %s319_s12, [#allocation3], %s8502_s14, %s8502_s14, %s8503_s15  }
  0x30   : > { %p10717_p0 = scmp.ne.s32.totalorder %s10715_s29, 0 }
  0x31   : > { %p10718_p3 = scmp.eq.s32.totalorder (!%p10717_p0), %s8592_s21, 0 }
  0x32   : > { %354 = sbr.rel (%p10717_p0) target bundleno = 11365 (0x2c65), region = 60 }
  0x39   : > { %8474 = dma.done.wait (%p10718_p3), [#allocation3], 256   ;;  %p10719_p2 = pmov %p10718_p3 }
  0x3a   : > { %s10707_s26 = sand.u32 1, %s8491_s18   ;;  %s8659_s16 = sshll.u32 %s8592_s21, 3 }
  0x3b   : > { %8476 = vsyncadd (%p10719_p2), [#allocation3], 4294967040  ;;  %s6578_s13 = sshll.u32 %s10707_s26, 4  ;;  %p394_p5 = scmp.lt.s32.totalorder %s8659_s16, 15 }
  0x3c   : > { %s10720_s0 = sld [smem:[#allocation12_spill]]  ;;  %s8670_s14 = scalar_lea.vmem [#allocation5], %s6578_s13 }
  0x3d   : > { %s395_s12 = scalar_select %p394_p5, %s8659_s16, 15 }
  0x3e   : > { %p10721_p6 = scmp.ne.s32.totalorder %s8592_s21, 0 }
  0x3f   : > { %s10722_s1 = sld [smem:[#allocation13_spill]] (!%p10721_p6) }
  0x40   : > { %403 = sbr.rel (%p10721_p6) target bundleno = 71 (0x47), region = 68 }
  0x42   : > { %s8668_s30 = scalar_lea.vmem %s10720_s0, %s395_s12 }
  0x45   : > { %v404_v0 = vld [vmem:[%s10722_s1] sm:$0x1] (!%p10721_p6) }
  0x46   : > { %405 = vst [vmem:[#allocation6] sm:$0x1] (!%p10721_p6), %v404_v0 }
  0x47 PF: > { %v7909_v3 = vld [vmem:[%s10694_s3 + $0x4] ss:$20 sps:$4 sm:$0xff]   ;;  %v7911_v4 = vld [vmem:[%s10694_s3] ss:$20 sps:$4 sm:$0xff]   ;;  %v8504_v5 = vmov 0.0   ;;  %s10708_s15 = smov 32   ;;  %v546_v28 = vlaneseq }
  0x48   : > { %7261 = vmatprep.subr.bf16.mxu0 %v8504_v5  ;;  %v7912_v6 = vld [vmem:[%s10694_s3 + $0x10] ss:$20 sps:$4 sm:$0xff]   ;;  %574 = vmatprep.subr.bf16.mxu1 %v7909_v3  ;;  %v7913_v7 = vld [vmem:[%s10694_s3 + $0x2c] ss:$20 sps:$4 sm:$0xff]   ;;  %v7915_v8 = vld [vmem:[%s10694_s3 + $0x28] ss:$20 sps:$4 sm:$0xff]  }
  0x49   : > { %575 = vmatpush1.bf16.msra.mxu1 %v7911_v4  ;;  %7262 = vmatpush3.bf16.msra.mxu0 %v7912_v6  ;;  %v7916_v9 = vld [vmem:[%s10694_s3 + $0x38] ss:$20 sps:$4 sm:$0xff]   ;;  %v7917_v10 = vld [vmem:[%s10694_s3 + $0x54] ss:$20 sps:$4 sm:$0xff]   ;;  %v8506_v11 = vmov 0   ;;  %vm8507_vm0 = vmmov 0  }
  0x4a   : > { %576 = vmatprep.subr.bf16.mxu1 %v7913_v7  ;;  %7263 = vmatprep.subr.bf16.mxu0 %v8504_v5  ;;  %v7919_v12 = vld [vmem:[%s10694_s3 + $0x50] ss:$20 sps:$4 sm:$0xff]   ;;  %v7920_v13 = vld [vmem:[%s10694_s3 + $0x60] ss:$20 sps:$4 sm:$0xff]   ;;  %v7923_v15 = vld [vmem:[%s10694_s3 + $0x78] ss:$20 sps:$4 sm:$0xff]  }
  0x4b   : > { %606 = vmatprep.mubr.bf16.mxu1 %v8506_v11  ;;  %7269 = vmatprep.mubr.msk.bf16.mxu0 %vm8507_vm0, %v8504_v5  ;;  %v7921_v14 = vld [vmem:[%s10694_s3 + $0x7c] ss:$20 sps:$4 sm:$0xff]   ;;  %v7927_v17 = vld [vmem:[%s10694_s3 + $0xc] ss:$20 sps:$4 sm:$0xff]   ;;  %vm412_vm1 = vcmask 261120   ;;  %vm571_vm2 = vcmask 523264  }
  0x4c   : > { %v7924_v16 = vld [vmem:[%s10694_s3 + $0x88] ss:$20 sps:$4 sm:$0xff]   ;;  %v407_v18 = vld [vmem:[%s8668_s30] sm:$0x1]  ;;  %v8740_v23 = vld [vmem:[%s10694_s3 + $0x30] ss:$20 sps:$4 sm:$0xff]  }
  0x4d   : > { %v406_v1 = vld [vmem:[#allocation6] sm:$0x1]  ;;  %577 = vmatpush1.bf16.msra.mxu1 %v7915_v8  ;;  %7264 = vmatpush3.bf16.msra.mxu0 %v7916_v9  ;;  %v8729_v19 = vld [vmem:[%s10694_s3 + $0x8] ss:$20 sps:$4 sm:$0xff]   ;;  %v8757_v25 = vld [vmem:[%s10694_s3 + $0x58] ss:$20 sps:$4 sm:$0xff]  }
  0x4e   : > { %v408_v2 = vpack.c.bf16 %v406_v1, %v406_v1  ;;  %578 = vmatprep.subr.bf16.mxu1 %v7917_v10  ;;  %7265 = vmatprep.subr.bf16.mxu0 %v8504_v5  ;;  %v8734_v20 = vld [vmem:[%s10694_s3 + $0x34] ss:$20 sps:$4 sm:$0xff]   ;;  %v8747_v24 = vld [vmem:[%s10694_s3 + $0x5c] ss:$20 sps:$4 sm:$0xff]   ;;  %v8762_v26 = vld [vmem:[%s10694_s3 + $0x84] ss:$20 sps:$4 sm:$0xff]  }
  0x4f   : > { %v8769_v27 = vld [vmem:[%s10694_s3 + $0x80] ss:$20 sps:$4 sm:$0xff]   ;;  %v8779_v29 = vshrl.u32 %v546_v28, 7  ;;  %vm696_vm3 = vcmask 1040384   ;;  %v7938_v44 = vld [vmem:[%s10693_s2 + $0x8] sm:$0xff]   ;;  %v7940_v46 = vld [vmem:[%s10693_s2 + $0x18] sm:$0xff]  }
  0x50   : > { %410 = vrot.lane.b32.xlu0 %v408_v2, %s10708_s15  ;;  %v8787_v31 = vld [vmem:[%s10695_s4] sm:$0x1f]  ;;  %v7939_v45 = vld [vmem:[%s10693_s2 + $0x10] sm:$0xff]   ;;  %v7942_v53 = vld [vmem:[%s10693_s2 + $0x28] sm:$0xff]   ;;  %vm8833_vm4 = vcmp.lt.s32.totalorder %v546_v28, 128  ;;  %p1166_p9 = scmp.lt.s32.totalorder %s8659_s16, 11 }
  0x51   : > { %579 = vmatpush1.bf16.msra.mxu1 %v7919_v12  ;;  %7266 = vmatpush3.bf16.msra.mxu0 %v7920_v13  ;;  %v8782_v30 = vsub.s32 0, %v8779_v29  ;;  %v7937_v43 = vld [vmem:[%s10693_s2] sm:$0xff]   ;;  %v7943_v54 = vld [vmem:[%s10693_s2 + $0x30] sm:$0xff]   ;;  %v7944_v55 = vld [vmem:[%s10693_s2 + $0x38] sm:$0xff]   ;;  %v8870_v9 = vsub.s32 4, %v8779_v29  ;;  %s10725_s22 = smov 32  }
  0x52   : > { %580 = vmatprep.subr.bf16.mxu1 %v7921_v14  ;;  %7267 = vmatprep.subr.bf16.mxu0 %v8504_v5  ;;  %v7941_v52 = vld [vmem:[%s10693_s2 + $0x20] sm:$0xff]   ;;  %v7945_v56 = vld [vmem:[#allocation2] sm:$0xff]   ;;  %v7946_v57 = vld [vmem:[#allocation2 + $0x8] sm:$0xff]   ;;  %s1167_s13 = scalar_select %p1166_p9, 1, 0  ;;  %vm1148_vm12 = vcmask 516096  }
  0x53   : > { %v549_v32 = vrot.slane %v8787_v31, %v8782_v30  ;;  %v8845_v63 = vld [vmem:[%s10697_s6 + $0x4] ss:$12 sps:$4 sm:$0xff]   ;;  %v8851_v1 = vld [vmem:[%s10697_s6] ss:$12 sps:$4 sm:$0xff]   ;;  %v8859_v7 = vld [vmem:[%s10697_s6 + $0x1c] ss:$12 sps:$4 sm:$0xff]   ;;  %v565_v10 = vrot.slane %v8787_v31, %v8870_v9 }
  0x54   : > { %v8864_v8 = vld [vmem:[%s10697_s6 + $0x18] ss:$12 sps:$4 sm:$0xff]   ;;  %s1921_s0 = sadd.s32 1, %s8659_s16  ;;  %s2677_s15 = sadd.s32 2, %s8659_s16  ;;  %vm10492_vm13 = vcmp.lt.s32.totalorder %v546_v28, 64 }
  0x55   : > { %581 = vmatpush1.bf16.msra.mxu1 %v7923_v15  ;;  %7268 = vmatpush3.bf16.msra.mxu0 %v7924_v16  ;;  %p1922_p10 = scmp.lt.s32.totalorder %s1921_s0, 11  ;;  %p2678_p11 = scmp.lt.s32.totalorder %s2677_s15, 11 }
  0x56   : > { %615 = vmatprep.subr.bf16.mxu1 %v7927_v17  ;;  %7293 = vmatprep.subr.bf16.mxu0 %v8504_v5  ;;  %s3433_s29 = sadd.s32 3, %s8659_s16  ;;  %s4945_s1 = sadd.s32 5, %s8659_s16 }
  0x57   : > { %s1923_s26 = scalar_select %p1922_p10, 1, 0 }
  0x58   : > { %p3434_p13 = scmp.lt.s32.totalorder %s3433_s29, 11  ;;  %p4946_p4 = scmp.lt.s32.totalorder %s4945_s1, 11 }
  0x59   : > { %s8508_s1 = smov [#allocation6]   ;;  %p10728_p0 = scmp.eq.s32.totalorder %s8592_s21, 1 }
  0x5a   : > { %s3435_s25 = scalar_select %p3434_p13, 1, 0 }
  0x5b   : > { %s4947_s24 = scalar_select %p4946_p4, 1, 0 }
  0x5c   : > { %s6493_s15 = sshll.u32 %s8508_s1, 4  ;;  %s6494_s15 = int_to_ptr.vmem [resolvable:$true] %s6493_s15 }
  0x5d   : > { %p8410_p5 = scmp.lt.s32.totalorder %s6494_s15, %s6494_s15 }
  0xc2   : > { %v411_v21 = vpop.permute.xlu0 %410 }
  0xc3   : > { %v415_v22 = vsel %vm412_vm1, %v407_v18, %v411_v21  ;;  %v7953_v18 = vld [vmem:[%s10697_s6 + $0x8] ss:$12 sps:$4 sm:$0xff]  }
  0xc4   : > { %6601 = vmatmul.mubr.msk.bf16.vlgmr.msra.gmra.mrb[0].mxu1 %vm571_vm2, %v415_v22  ;;  %7270 = vmatmul.mubr.msk.bf16.vlgmr.msra.gmra.mrb[0].mxu0 %vm571_vm2, %v415_v22 }
  0xc5   : > { %616 = vmatpush1.bf16.msra.mxu1 %v8729_v19  ;;  %647 = vmatprep.mubr.bf16.mxu1 %v8506_v11 }
  0xc6   : > { %617 = vmatprep.subr.bf16.mxu1 %v8734_v20  ;;  %7297 = vmatprep.mubr.msk.bf16.mxu0 %vm8507_vm0, %v8504_v5 }
  0xc7   : > { %7294 = vmatpush3.bf16.msra.mxu0 %v7945_v56 }
  0xc8   : > { %7295 = vmatprep.subr.bf16.mxu0 %v8504_v5 }
  0xc9   : > { %618 = vmatpush1.bf16.msra.mxu1 %v8740_v23 }
  0xca   : > { %619 = vmatprep.subr.bf16.mxu1 %v8747_v24 }
  0xcb   : > { %7296 = vmatpush3.bf16.msra.mxu0 %v7946_v57 }
  0xcc   : > { %940 = vmatprep.subr.bf16.mxu0 %v8845_v63 }
  0xcd   : > { %620 = vmatpush1.bf16.msra.mxu1 %v8757_v25 }
  0xce   : > { %621 = vmatprep.subr.bf16.mxu1 %v8762_v26 }
  0xd1   : > { %622 = vmatpush1.bf16.msra.mxu1 %v8769_v27 }
  0xd2   : > { %7273 = vmatprep.subr.bf16.mxu1 %v8504_v5 }
  0xd4   : > { %6602 = vmatmul.mubr.msk.bf16.vlgmr.msra.gmra.mrb[4].mxu1 %vm571_vm2, %v415_v22  ;;  %v7954_v22 = vld [vmem:[%s10697_s6 + $0x20] ss:$12 sps:$4 sm:$0xff]  }
  0xd5   : > { %7289 = vmatprep.mubr.msk.bf16.mxu1 %vm8507_vm0, %v8504_v5  ;;  %7274 = vmatpush3.bf16.msra.mxu1 %v7937_v43  ;;  %v8373_v43 = vld [vmem:[%s10694_s3 + $0xc] ss:$20 sps:$4 sm:$0xff]  }
  0xd6   : > { %7275 = vmatprep.subr.bf16.mxu1 %v8504_v5 }
  0xd9   : > { %7276 = vmatpush3.bf16.msra.mxu1 %v7938_v44  ;;  %v7955_v44 = vld [vmem:[%s10699_s8] sm:$0xff]  }
  0xda   : > { %7277 = vmatprep.subr.bf16.mxu1 %v8504_v5 }
  0xdd   : > { %7278 = vmatpush3.bf16.msra.mxu1 %v7939_v45  ;;  %v7956_v45 = vld [vmem:[%s10699_s8 + $0x8] sm:$0xff]  }
  0xde   : > { %7279 = vmatprep.subr.bf16.mxu1 %v8504_v5 }
  0xe1   : > { %7280 = vmatpush3.bf16.msra.mxu1 %v7940_v46  ;;  %v7957_v46 = vld [vmem:[%s10699_s8 + $0x10] sm:$0xff]  }
  0xe2   : > { %7281 = vmatprep.subr.bf16.mxu1 %v8504_v5 }
  0xe5   : > { %7282 = vmatpush3.bf16.msra.mxu1 %v7941_v52  ;;  %v8946_v52 = vsub.s32 1, %v8779_v29 }
  0xe6   : > { %7283 = vmatprep.subr.bf16.mxu1 %v8504_v5 }
  0xe9   : > { %7284 = vmatpush3.bf16.msra.mxu1 %v7942_v53  ;;  %v8949_v53 = vsub.s32 2, %v8779_v29 }
  0xea   : > { %7285 = vmatprep.subr.bf16.mxu1 %v8504_v5 }
  0xeb   : > { %v557_v57 = vrot.slane %v8787_v31, %v8949_v53 }
  0xed   : > { %7286 = vmatpush3.bf16.msra.mxu1 %v7943_v54  ;;  %v888_v54 = vld [vmem:[%s10698_s7] sm:$0x7] }
  0xee   : > { %7287 = vmatprep.subr.bf16.mxu1 %v8504_v5  ;;  %v925_v56 = vrot.slane %v888_v54, %v8782_v30 }
  0xf1   : > { %7288 = vmatpush3.bf16.msra.mxu1 %v7944_v55  ;;  %v553_v55 = vrot.slane %v8787_v31, %v8946_v52 }
  0xf2   : > { %7309 = vmatprep.subr.bf16.mxu1 %v8504_v5 }
 0x197   : > { %v608_v33 = vpop.f32.mrb[0].mxu1 }
 0x198   : > { %v609_v34 = vadd.f32 %v608_v33, %v549_v32  ;;  %v8791_v35 = vpop.f32.mrb[1].mxu1  ;;  %v8365_v32 = vld [vmem:[%s10694_s3 + $0x4] ss:$20 sps:$4 sm:$0xff]   ;;  %v8366_v33 = vld [vmem:[%s10694_s3] ss:$20 sps:$4 sm:$0xff]  }
 0x199   : > { %v612_v36 = vpop.f32.mrb[2].mxu1 }
 0x19a   : > { %v613_v37 = vpop.f32.mrb[3].mxu1  ;;  %v697_v38 = vsel %vm696_vm3, %v609_v34, -inf  ;;  %v8368_v36 = vld [vmem:[%s10694_s3 + $0x28] ss:$20 sps:$4 sm:$0xff]  }
 0x19b   : > { %698 = vmax.xlane.f32.xlu0 %v697_v38  ;;  %v8369_v37 = vld [vmem:[%s10694_s3 + $0x54] ss:$20 sps:$4 sm:$0xff]   ;;  %v8370_v38 = vld [vmem:[%s10694_s3 + $0x50] ss:$20 sps:$4 sm:$0xff]  }
 0x1a7   : > { %v8794_v39 = vpop.f32.mrb[4].mxu1 }
 0x1a8   : > { %v8796_v40 = vpop.f32.mrb[5].mxu1 }
 0x1a9   : > { %v653_v41 = vpop.f32.mrb[6].mxu1 }
 0x1aa   : > { %v654_v42 = vpop.f32.mrb[7].mxu1  ;;  %v8371_v41 = vld [vmem:[%s10694_s3 + $0x7c] ss:$20 sps:$4 sm:$0xff]  }
 0x1ab   : > { %v8372_v42 = vld [vmem:[%s10694_s3 + $0x78] ss:$20 sps:$4 sm:$0xff]  }
 0x228   : > { %v699_v47 = vpop.xlane.xlu0 %698 }
 0x229   : > { %v700_v48 = vsub.f32 %v609_v34, %v699_v47  ;;  %v8367_v34 = vld [vmem:[%s10694_s3 + $0x2c] ss:$20 sps:$4 sm:$0xff]   ;;  %v7958_v47 = vld [vmem:[%s10699_s8 + $0x18] sm:$0xff]  }
 0x22b   : > { %v701_v49 = vmul.f32 1.442695, %v700_v48  ;;  %v7959_v48 = vld [vmem:[%s10699_s8 + $0x20] sm:$0xff]  }
 0x22d   : > { %8221 = vpow2.f32 %v701_v49  ;;  %v7960_v49 = vld [vmem:[%s10699_s8 + $0x28] sm:$0xff]  }
 0x237   : > { %v8222_v50 = vpop.eup %8221 }
 0x238   : > { %v703_v51 = vsel %vm696_vm3, %v8222_v50, 0.0 }
 0x239   : > { %704 = vadd.xlane.f32.xlu1 %v703_v51  ;;  %v7962_v51 = vld [vmem:[%s10699_s8 + $0x38] sm:$0xff]  }
 0x2c6   : > { %v705_v58 = vpop.xlane.xlu1 %704 }
 0x2c7   : > { %8223 = vrcp.f32 %v705_v58  ;;  %v929_v58 = vrot.slane %v888_v54, %v8946_v52 }
 0x2d1   : > { %v8224_v59 = vpop.eup %8223 }
 0x2d2   : > { %v707_v61 = vmul.f32 %v8224_v59, %v8222_v50  ;;  %v7961_v50 = vld [vmem:[%s10699_s8 + $0x30] sm:$0xff]  }
 0x2d4   : > { %712 = vst.msk [vmem:[%s8670_s14] sm:$0x1] %vm8833_vm4, %v707_v61  ;;  %v713_v62 = vpack.c.bf16 %v707_v61, %v707_v61  ;;  %v611_v61 = vadd.f32 %v8791_v35, %v553_v55  ;;  %v7965_v55 = vld [vmem:[%s10694_s3 + $0x60] ss:$20 sps:$4 sm:$0xff]  }
 0x2d6   : > { %7290 = vmatmul.mubr.bf16.vlgmr.msra.gmra.mrb[8].mxu1 %v713_v62 }
 0x2d7   : > { %7325 = vmatprep.mubr.msk.bf16.mxu1 %vm8507_vm0, %v8504_v5  ;;  %7310 = vmatpush3.bf16.msra.mxu1 %v7955_v44  ;;  %v1168_v44 = vstv %s1167_s13  ;;  %s4189_s13 = sadd.s32 4, %s8659_s16 }
 0x2d8   : > { %7311 = vmatprep.subr.bf16.mxu1 %v8504_v5  ;;  %vm1169_vm5 = vcmp.eq.s32.totalorder %v1168_v44, 1  ;;  %p4190_p1 = scmp.lt.s32.totalorder %s4189_s13, 11  ;;  %s6457_s13 = sadd.s32 7, %s8659_s16 }
 0x2d9   : > { %p6458_p8 = scmp.lt.s32.totalorder %s6457_s13, 11 }
 0x2db   : > { %7312 = vmatpush3.bf16.msra.mxu1 %v7956_v45 }
 0x2dc   : > { %7313 = vmatprep.subr.bf16.mxu1 %v8504_v5 }
 0x2df   : > { %7314 = vmatpush3.bf16.msra.mxu1 %v7957_v46 }
 0x2e0   : > { %7315 = vmatprep.subr.bf16.mxu1 %v8504_v5 }
 0x2e3   : > { %7316 = vmatpush3.bf16.msra.mxu1 %v7958_v47  ;;  %v8374_v47 = vld [vmem:[#allocation6] sm:$0x1] }
 0x2e4   : > { %7317 = vmatprep.subr.bf16.mxu1 %v8504_v5 }
 0x2e7   : > { %7318 = vmatpush3.bf16.msra.mxu1 %v7959_v48 }
 0x2e8   : > { %7319 = vmatprep.subr.bf16.mxu1 %v8504_v5 }
 0x2eb   : > { %7320 = vmatpush3.bf16.msra.mxu1 %v7960_v49 }
 0x2ec   : > { %7321 = vmatprep.subr.bf16.mxu1 %v8504_v5 }
 0x2ef   : > { %7322 = vmatpush3.bf16.msra.mxu1 %v7961_v50 }
 0x2f0   : > { %7323 = vmatprep.subr.bf16.mxu1 %v8504_v5 }
 0x2f3   : > { %7324 = vmatpush3.bf16.msra.mxu1 %v7962_v51 }
 0x2f4   : > { %7329 = vmatprep.subr.bf16.mxu1 %v8504_v5 }
 0x3a9   : > { %v812_v0 = vpop.f32.mrb[8].mxu1 }
 0x3aa   : > { %v818_v2 = vpack.c.bf16 %v812_v0, %v812_v0  ;;  %v7291_v3 = vpop.f32.mrb[9].mxu1 }
 0x3ab   : > { %v815_v4 = vpop.f32.mrb[10].mxu1 }
 0x3ac   : > { %v7292_v6 = vpop.f32.mrb[11].mxu1  ;;  %7298 = vmatmul.mubr.msk.bf16.vlgmr.msra.gmra.mrb[0].mxu0 %vm412_vm1, %v818_v2  ;;  %v650_v2 = vadd.f32 %v8794_v39, %v557_v57  ;;  %v6634_v57 = vld [vmem:[%s8668_s30 + $0x1] sm:$0x1] }
 0x3ad   : > { %941 = vmatpush1.bf16.msra.mxu0 %v8851_v1  ;;  %972 = vmatprep.mubr.bf16.mxu0 %v8506_v11 }
 0x3ae   : > { %942 = vmatprep.subr.bf16.mxu0 %v8859_v7 }
 0x3b1   : > { %943 = vmatpush1.bf16.msra.mxu0 %v8864_v8 }
 0x3b2   : > { %7301 = vmatprep.subr.bf16.mxu0 %v8504_v5 }
 0x47f   : > { %v872_v12 = vpop.f32.mrb[0].mxu0 }
 0x480   : > { %v7805_v13 = vadd.f32 %v872_v12, %v565_v10  ;;  %v7299_v14 = vpop.f32.mrb[1].mxu0 }
 0x481   : > { %v875_v15 = vpop.f32.mrb[2].mxu0 }
 0x482   : > { %v878_v16 = vmax.f32 %v7805_v13, 0.0  ;;  %v7300_v17 = vpop.f32.mrb[3].mxu0 }
 0x484   : > { %v879_v21 = vpack.c.bf16 %v878_v16, %v878_v16 }
 0x486   : > { %6621 = vmatmul.mubr.msk.bf16.vlgmr.msra.gmra.mrb[4].mxu0 %vm412_vm1, %v879_v21 }
 0x487   : > { %7302 = vmatpush3.bf16.msra.mxu0 %v7953_v18  ;;  %7305 = vmatprep.mubr.msk.bf16.mxu0 %vm8507_vm0, %v8504_v5 }
 0x488   : > { %7303 = vmatprep.subr.bf16.mxu0 %v8504_v5 }
 0x48b   : > { %7304 = vmatpush3.bf16.msra.mxu0 %v7954_v22  ;;  %v8963_v22 = vsub.s32 3, %v8779_v29 }
 0x48c   : > { %1337 = vmatprep.subr.bf16.mxu0 %v8365_v32 }
 0x48d   : > { %v561_v32 = vrot.slane %v8787_v31, %v8963_v22 }
 0x48e   : > { %7306 = vmatmul.mubr.msk.bf16.vlgmr.msra.gmra.mrb[8].mxu0 %vm412_vm1, %v879_v21 }
 0x48f   : > { %1338 = vmatpush1.bf16.msra.mxu0 %v8366_v33  ;;  %1369 = vmatprep.mubr.bf16.mxu0 %v8506_v11 }
 0x490   : > { %1339 = vmatprep.subr.bf16.mxu0 %v8367_v34  ;;  %v933_v34 = vrot.slane %v888_v54, %v8949_v53  ;;  %v7964_v54 = vld [vmem:[%s10694_s3 + $0x38] ss:$20 sps:$4 sm:$0xff]  }
 0x493   : > { %1340 = vmatpush1.bf16.msra.mxu0 %v8368_v36  ;;  %v652_v36 = vadd.f32 %v8796_v40, %v561_v32  ;;  %v7963_v40 = vld [vmem:[%s10694_s3 + $0x10] ss:$20 sps:$4 sm:$0xff]  }
 0x494   : > { %1341 = vmatprep.subr.bf16.mxu0 %v8369_v37  ;;  %v7971_v32 = vld [vmem:[%s10693_s2 + $0x20] sm:$0xff]  }
 0x497   : > { %1342 = vmatpush1.bf16.msra.mxu0 %v8370_v38 }
 0x498   : > { %1343 = vmatprep.subr.bf16.mxu0 %v8371_v41 }
 0x49b   : > { %1344 = vmatpush1.bf16.msra.mxu0 %v8372_v42 }
 0x49c   : > { %1378 = vmatprep.subr.bf16.mxu0 %v8373_v43 }
 0x559   : > { %v974_v59 = vpop.f32.mrb[4].mxu0 }
 0x55a   : > { %v975_v62 = vadd.f32 %v974_v59, %v925_v56  ;;  %v976_v0 = vpop.f32.mrb[5].mxu0  ;;  %v7966_v56 = vld [vmem:[%s10694_s3 + $0x88] ss:$20 sps:$4 sm:$0xff]  }
 0x55b   : > { %v977_v3 = vadd.f32 %v976_v0, %v929_v58  ;;  %v978_v4 = vpop.f32.mrb[6].mxu0 }
 0x55c   : > { %v1021_v6 = vadd.f32 %v975_v62, %v611_v61  ;;  %v979_v10 = vpop.f32.mrb[7].mxu0 }
 0x55d   : > { %v1022_v12 = vadd.f32 %v977_v3, %v650_v2 }
 0x55e   : > { %v6623_v13 = vmul.f32 -1.442695, %v1021_v6 }
 0x55f   : > { %v6624_v16 = vmul.f32 -1.442695, %v1022_v12 }
 0x560   : > { %8225 = vpow2.f32 %v6623_v13  ;;  %v7967_v13 = vld [vmem:[%s10693_s2] sm:$0xff]  }
 0x561   : > { %v1015_v14 = vpop.f32.mrb[8].mxu0  ;;  %8227 = vpow2.f32 %v6624_v16  ;;  %v7970_v16 = vld [vmem:[%s10693_s2 + $0x18] sm:$0xff]  }
 0x562   : > { %v7307_v15 = vpop.f32.mrb[9].mxu0  ;;  %v1016_v38 = vadd.f32 %v1015_v14, %v933_v34  ;;  %v7968_v14 = vld [vmem:[%s10693_s2 + $0x8] sm:$0xff]   ;;  %v7973_v34 = vld [vmem:[%s10693_s2 + $0x30] sm:$0xff]  }
 0x563   : > { %v1018_v17 = vpop.f32.mrb[10].mxu0  ;;  %v7969_v15 = vld [vmem:[%s10693_s2 + $0x10] sm:$0xff]  }
 0x564   : > { %v7308_v18 = vpop.f32.mrb[11].mxu0 }
 0x56a   : > { %v8226_v21 = vpop.eup %8225 }
 0x56b   : > { %v1029_v35 = vadd.f32 1.0, %v8226_v21  ;;  %v8228_v39 = vpop.eup %8227 }
 0x56c   : > { %v1030_v33 = vadd.f32 1.0, %v8228_v39 }
 0x56d   : > { %8229 = vrcp.f32 %v1029_v35 }
 0x56e   : > { %8231 = vrcp.f32 %v1030_v33  ;;  %v7972_v33 = vld [vmem:[%s10693_s2 + $0x28] sm:$0xff]  }
 0x577   : > { %v8230_v37 = vpop.eup %8229 }
 0x578   : > { %v1035_v41 = vmul.f32 %v8230_v37, %v652_v36  ;;  %v8232_v43 = vpop.eup %8231  ;;  %v7974_v36 = vld [vmem:[%s10693_s2 + $0x38] sm:$0xff]   ;;  %v7975_v37 = vld [vmem:[#allocation2] sm:$0xff]  }
 0x579   : > { %v1038_v29 = vsub.f32 1.0, %v8232_v43  ;;  %v1040_v31 = vmul.f32 %v8374_v47, %v8232_v43 }
 0x57a   : > { %v1036_v42 = vadd.f32 %v1035_v41, %v1016_v38  ;;  %v7976_v38 = vld [vmem:[#allocation2 + $0x8] sm:$0xff]  }
 0x57c   : > { %8233 = vtanh.f32 %v1036_v42 }
 0x586   : > { %v8234_v45 = vpop.eup %8233 }
 0x587   : > { %v1039_v46 = vmul.f32 %v8234_v45, %v1038_v29 }
 0x589   : > { %v1041_v48 = vadd.f32 %v1040_v31, %v1039_v46 }
 0x58b   : > { %v1042_v49 = vpack.c.bf16 %v1041_v48, %v1041_v48  ;;  %v8973_v50 = vsel %vm1169_vm5, %v1041_v48, %v8374_v47 }
 0x58c   : > { %v1173_v51 = vpack.c.bf16 %v8973_v50, %v8973_v50 }
 0x58d   : > { %7326 = vmatmul.mubr.bf16.vlgmr.msra.gmra.mrb[12].mxu1 %v1042_v49 }
 0x58e   : > { %1175 = vrot.lane.b32.xlu1 %v1173_v51, %s10725_s22  ;;  %7330 = vmatpush3.bf16.msra.mxu1 %v7963_v40 }
 0x58f   : > { %7331 = vmatprep.subr.bf16.mxu1 %v8504_v5  ;;  %7337 = vmatprep.mubr.msk.bf16.mxu1 %vm8507_vm0, %v8504_v5 }
 0x592   : > { %7332 = vmatpush3.bf16.msra.mxu1 %v7964_v54 }
 0x593   : > { %7333 = vmatprep.subr.bf16.mxu1 %v8504_v5 }
 0x596   : > { %7334 = vmatpush3.bf16.msra.mxu1 %v7965_v55 }
 0x597   : > { %7335 = vmatprep.subr.bf16.mxu1 %v8504_v5 }
 0x59a   : > { %7336 = vmatpush3.bf16.msra.mxu1 %v7966_v56 }
 0x59b   : > { %7361 = vmatprep.subr.bf16.mxu1 %v8504_v5 }
 0x600   : > { %v1176_v58 = vpop.permute.xlu1 %1175 }
 0x601   : > { %v1179_v59 = vsel %vm412_vm1, %v6634_v57, %v1176_v58  ;;  %v7980_v57 = vld [vmem:[%s10699_s8 + $0x8] sm:$0xff]   ;;  %v7981_v58 = vld [vmem:[%s10699_s8 + $0x10] sm:$0xff]  }
 0x602   : > { %6655 = vmatmul.mubr.msk.bf16.vlgmr.msra.gmra.mrb[12].mxu0 %vm571_vm2, %v1179_v59  ;;  %7338 = vmatmul.mubr.msk.bf16.vlgmr.msra.gmra.mrb[16].mxu1 %vm571_vm2, %v1179_v59 }
 0x603   : > { %1379 = vmatpush1.bf16.msra.mxu0 %v8729_v19  ;;  %1410 = vmatprep.mubr.bf16.mxu0 %v8506_v11 }
 0x604   : > { %1380 = vmatprep.subr.bf16.mxu0 %v8734_v20  ;;  %7365 = vmatprep.mubr.msk.bf16.mxu1 %vm8507_vm0, %v8504_v5 }
 0x605   : > { %7362 = vmatpush3.bf16.msra.mxu1 %v7975_v37 }
 0x606   : > { %7363 = vmatprep.subr.bf16.mxu1 %v8504_v5 }
 0x607   : > { %1381 = vmatpush1.bf16.msra.mxu0 %v8740_v23 }
 0x608   : > { %1382 = vmatprep.subr.bf16.mxu0 %v8747_v24  ;;  %v9016_v24 = vld [vmem:[%s10695_s4] sm:$0x1f] }
 0x609   : > { %7364 = vmatpush3.bf16.msra.mxu1 %v7976_v38 }
 0x60a   : > { %1699 = vmatprep.subr.bf16.mxu1 %v8845_v63  ;;  %v1329_v63 = vrot.slane %v9016_v24, %v8870_v9 }
 0x60b   : > { %1383 = vmatpush1.bf16.msra.mxu0 %v8757_v25  ;;  %v1313_v25 = vrot.slane %v9016_v24, %v8782_v30 }
 0x60c   : > { %1384 = vmatprep.subr.bf16.mxu0 %v8762_v26 }
 0x60f   : > { %1385 = vmatpush1.bf16.msra.mxu0 %v8769_v27 }
 0x610   : > { %7341 = vmatprep.subr.bf16.mxu0 %v8504_v5 }
 0x612   : > { %6656 = vmatmul.mubr.msk.bf16.vlgmr.msra.gmra.mrb[16].mxu0 %vm571_vm2, %v1179_v59  ;;  %v7982_v59 = vld [vmem:[%s10699_s8 + $0x18] sm:$0xff]  }
 0x613   : > { %7357 = vmatprep.mubr.msk.bf16.mxu0 %vm8507_vm0, %v8504_v5  ;;  %7342 = vmatpush3.bf16.msra.mxu0 %v7967_v13  ;;  %v9163_v13 = vld [vmem:[%s10694_s3 + $0x78] ss:$20 sps:$4 sm:$0xff]  }
 0x614   : > { %7343 = vmatprep.subr.bf16.mxu0 %v8504_v5 }
 0x617   : > { %7344 = vmatpush3.bf16.msra.mxu0 %v7968_v14  ;;  %v1647_v14 = vld [vmem:[%s10698_s7] sm:$0x7] }
 0x618   : > { %7345 = vmatprep.subr.bf16.mxu0 %v8504_v5 }
 0x61b   : > { %7346 = vmatpush3.bf16.msra.mxu0 %v7969_v15  ;;  %v1317_v15 = vrot.slane %v9016_v24, %v8946_v52 }
 0x61c   : > { %7347 = vmatprep.subr.bf16.mxu0 %v8504_v5 }
 0x61f   : > { %7348 = vmatpush3.bf16.msra.mxu0 %v7970_v16  ;;  %v1684_v16 = vrot.slane %v1647_v14, %v8782_v30 }
 0x620   : > { %7349 = vmatprep.subr.bf16.mxu0 %v8504_v5 }
 0x623   : > { %7350 = vmatpush3.bf16.msra.mxu0 %v7971_v32 }
 0x624   : > { %7351 = vmatprep.subr.bf16.mxu0 %v8504_v5 }
 0x627   : > { %7352 = vmatpush3.bf16.msra.mxu0 %v7972_v33 }
 0x628   : > { %7353 = vmatprep.subr.bf16.mxu0 %v8504_v5 }
 0x62b   : > { %7354 = vmatpush3.bf16.msra.mxu0 %v7973_v34 }
 0x62c   : > { %7355 = vmatprep.subr.bf16.mxu0 %v8504_v5 }
 0x62f   : > { %7356 = vmatpush3.bf16.msra.mxu0 %v7974_v36 }
 0x630   : > { %7377 = vmatprep.subr.bf16.mxu0 %v8504_v5 }
 0x660   : > { %v9011_v19 = vpop.f32.mrb[12].mxu1 }
 0x661   : > { %v7327_v20 = vpop.f32.mrb[13].mxu1 }
 0x662   : > { %v1145_v61 = vpop.f32.mrb[14].mxu1  ;;  %v7983_v20 = vld [vmem:[%s10699_s8 + $0x20] sm:$0xff]  }
 0x663   : > { %v7328_v23 = vpop.f32.mrb[15].mxu1  ;;  %v7984_v61 = vld [vmem:[%s10699_s8 + $0x28] sm:$0xff]  }
 0x664   : > { %v7985_v23 = vld [vmem:[%s10699_s8 + $0x30] sm:$0xff]  }
 0x6d5   : > { %v1371_v26 = vpop.f32.mrb[12].mxu0 }
 0x6d6   : > { %v1372_v27 = vadd.f32 %v1371_v26, %v1313_v25  ;;  %v9020_v62 = vpop.f32.mrb[13].mxu0  ;;  %v7986_v25 = vld [vmem:[%s10699_s8 + $0x38] sm:$0xff]   ;;  %v9122_v26 = vld [vmem:[%s10694_s3] ss:$20 sps:$4 sm:$0xff]  }
 0x6d7   : > { %v1375_v0 = vpop.f32.mrb[14].mxu0 }
 0x6d8   : > { %v1376_v2 = vpop.f32.mrb[15].mxu0  ;;  %v1459_v3 = vsel %vm696_vm3, %v1372_v27, -inf  ;;  %v9132_v0 = vld [vmem:[%s10694_s3 + $0x2c] ss:$20 sps:$4 sm:$0xff]  }
 0x6d9   : > { %1460 = vmax.xlane.f32.xlu1 %v1459_v3  ;;  %v9139_v2 = vld [vmem:[%s10694_s3 + $0x28] ss:$20 sps:$4 sm:$0xff]  }
 0x6da   : > { %v9145_v3 = vld [vmem:[%s10694_s3 + $0x54] ss:$20 sps:$4 sm:$0xff]  }
 0x6e5   : > { %v9023_v4 = vpop.f32.mrb[16].mxu0 }
 0x6e6   : > { %v9025_v6 = vpop.f32.mrb[17].mxu0 }
 0x6e7   : > { %v1416_v10 = vpop.f32.mrb[18].mxu0 }
 0x6e8   : > { %v1417_v12 = vpop.f32.mrb[19].mxu0  ;;  %v9151_v10 = vld [vmem:[%s10694_s3 + $0x50] ss:$20 sps:$4 sm:$0xff]  }
 0x6e9   : > { %v9157_v12 = vld [vmem:[%s10694_s3 + $0x7c] ss:$20 sps:$4 sm:$0xff]  }
 0x766   : > { %v1461_v17 = vpop.xlane.xlu1 %1460 }
 0x767   : > { %v1462_v18 = vsub.f32 %v1372_v27, %v1461_v17  ;;  %v9127_v27 = vld [vmem:[%s10694_s3 + $0x4] ss:$20 sps:$4 sm:$0xff]   ;;  %v1321_v17 = vrot.slane %v9016_v24, %v8949_v53 }
 0x769   : > { %v1463_v21 = vmul.f32 1.442695, %v1462_v18  ;;  %v1688_v18 = vrot.slane %v1647_v14, %v8946_v52  ;;  %v1413_v33 = vadd.f32 %v9023_v4, %v1321_v17  ;;  %v1325_v4 = vrot.slane %v9016_v24, %v8963_v22 }
 0x76b   : > { %8235 = vpow2.f32 %v1463_v21 }
 0x775   : > { %v8236_v35 = vpop.eup %8235 }
 0x776   : > { %v1465_v39 = vsel %vm696_vm3, %v8236_v35, 0.0 }
 0x777   : > { %1466 = vadd.xlane.f32.xlu0 %v1465_v39 }
 0x804   : > { %v1467_v41 = vpop.xlane.xlu0 %1466 }
 0x805   : > { %8237 = vrcp.f32 %v1467_v41 }
 0x80f   : > { %v8238_v42 = vpop.eup %8237 }
 0x810   : > { %v1469_v43 = vmul.f32 %v8238_v42, %v8236_v35  ;;  %v1374_v35 = vadd.f32 %v9020_v62, %v1317_v15  ;;  %v6689_v15 = vld [vmem:[%s8668_s30 + $0x2] sm:$0x1] }
 0x812   : > { %6658 = vst.msk [vmem:[%s8670_s14 + $0x2] sm:$0x1] %vm8833_vm4, %v1469_v43  ;;  %v1472_v29 = vpack.c.bf16 %v1469_v43, %v1469_v43 }
 0x814   : > { %7358 = vmatmul.mubr.bf16.vlgmr.msra.gmra.mrb[20].mxu0 %v1472_v29 }
 0x815   : > { %7393 = vmatprep.mubr.msk.bf16.mxu0 %vm8507_vm0, %v8504_v5 }
 0x8e7   : > { %v1571_v44 = vpop.f32.mrb[20].mxu0 }
 0x8e8   : > { %v1577_v45 = vpack.c.bf16 %v1571_v44, %v1571_v44  ;;  %v7359_v46 = vpop.f32.mrb[21].mxu0 }
 0x8e9   : > { %v1574_v47 = vpop.f32.mrb[22].mxu0 }
 0x8ea   : > { %v7360_v31 = vpop.f32.mrb[23].mxu0  ;;  %7366 = vmatmul.mubr.msk.bf16.vlgmr.msra.gmra.mrb[16].mxu1 %vm412_vm1, %v1577_v45 }
 0x8eb   : > { %1700 = vmatpush1.bf16.msra.mxu1 %v8851_v1  ;;  %1731 = vmatprep.mubr.bf16.mxu1 %v8506_v11  ;;  %v7977_v1 = vld [vmem:[%s10697_s6 + $0x8] ss:$12 sps:$4 sm:$0xff]  }
 0x8ec   : > { %1701 = vmatprep.subr.bf16.mxu1 %v8859_v7  ;;  %v7978_v7 = vld [vmem:[%s10697_s6 + $0x20] ss:$12 sps:$4 sm:$0xff]  }
 0x8ef   : > { %1702 = vmatpush1.bf16.msra.mxu1 %v8864_v8  ;;  %v7979_v8 = vld [vmem:[%s10699_s8] sm:$0xff]  }
 0x8f0   : > { %7369 = vmatprep.subr.bf16.mxu1 %v8504_v5  ;;  %7378 = vmatpush3.bf16.msra.mxu0 %v7979_v8 }
 0x8f1   : > { %7379 = vmatprep.subr.bf16.mxu0 %v8504_v5 }
 0x8f4   : > { %7380 = vmatpush3.bf16.msra.mxu0 %v7980_v57 }
 0x8f5   : > { %7381 = vmatprep.subr.bf16.mxu0 %v8504_v5 }
 0x8f8   : > { %7382 = vmatpush3.bf16.msra.mxu0 %v7981_v58 }
 0x8f9   : > { %7383 = vmatprep.subr.bf16.mxu0 %v8504_v5 }
 0x8fc   : > { %7384 = vmatpush3.bf16.msra.mxu0 %v7982_v59  ;;  %v7990_v59 = vld [vmem:[%s10694_s3 + $0x10] ss:$20 sps:$4 sm:$0xff]  }
 0x8fd   : > { %7385 = vmatprep.subr.bf16.mxu0 %v8504_v5 }
 0x900   : > { %7386 = vmatpush3.bf16.msra.mxu0 %v7983_v20 }
 0x901   : > { %7387 = vmatprep.subr.bf16.mxu0 %v8504_v5 }
 0x904   : > { %7388 = vmatpush3.bf16.msra.mxu0 %v7984_v61 }
 0x905   : > { %7389 = vmatprep.subr.bf16.mxu0 %v8504_v5 }
 0x908   : > { %7390 = vmatpush3.bf16.msra.mxu0 %v7985_v23 }
 0x909   : > { %7391 = vmatprep.subr.bf16.mxu0 %v8504_v5 }
 0x90c   : > { %7392 = vmatpush3.bf16.msra.mxu0 %v7986_v25  ;;  %v7994_v25 = vld [vmem:[%s10694_s3 + $0x38] ss:$20 sps:$4 sm:$0xff]  }
 0x90d   : > { %7397 = vmatprep.subr.bf16.mxu0 %v8504_v5 }
 0x9bd   : > { %v1631_v48 = vpop.f32.mrb[16].mxu1 }
 0x9be   : > { %v7806_v40 = vadd.f32 %v1631_v48, %v1329_v63  ;;  %v7367_v49 = vpop.f32.mrb[17].mxu1  ;;  %v1692_v48 = vrot.slane %v1647_v14, %v8949_v53  ;;  %v8002_v14 = vld [vmem:[%s10694_s3 + $0x88] ss:$20 sps:$4 sm:$0xff]  }
 0x9bf   : > { %v1634_v51 = vpop.f32.mrb[18].mxu1 }
 0x9c0   : > { %v1637_v54 = vmax.f32 %v7806_v40, 0.0  ;;  %v7368_v55 = vpop.f32.mrb[19].mxu1  ;;  %v1415_v40 = vadd.f32 %v9025_v6, %v1325_v4 }
 0x9c2   : > { %v1638_v56 = vpack.c.bf16 %v1637_v54, %v1637_v54 }
 0x9c4   : > { %6676 = vmatmul.mubr.msk.bf16.vlgmr.msra.gmra.mrb[20].mxu1 %vm412_vm1, %v1638_v56 }
 0x9c5   : > { %7370 = vmatpush3.bf16.msra.mxu1 %v7977_v1  ;;  %7373 = vmatprep.mubr.msk.bf16.mxu1 %vm8507_vm0, %v8504_v5  ;;  %v9186_v1 = vld [vmem:[%s10694_s3 + $0xc] ss:$20 sps:$4 sm:$0xff]  }
 0x9c6   : > { %7371 = vmatprep.subr.bf16.mxu1 %v8504_v5 }
 0x9c9   : > { %7372 = vmatpush3.bf16.msra.mxu1 %v7978_v7  ;;  %v1924_v7 = vstv %s1923_s26  ;;  %s2679_s26 = scalar_select %p2678_p11, 1, 0 }
 0x9ca   : > { %2093 = vmatprep.subr.bf16.mxu1 %v9127_v27  ;;  %vm1925_vm6 = vcmp.eq.s32.totalorder %v1924_v7, 1 }
 0x9cc   : > { %7374 = vmatmul.mubr.msk.bf16.vlgmr.msra.gmra.mrb[24].mxu1 %vm412_vm1, %v1638_v56 }
 0x9cd   : > { %2125 = vmatprep.mubr.bf16.mxu1 %v8506_v11  ;;  %2094 = vmatpush1.bf16.msra.mxu1 %v9122_v26 }
 0x9ce   : > { %2095 = vmatprep.subr.bf16.mxu1 %v9132_v0 }
 0x9d1   : > { %2096 = vmatpush1.bf16.msra.mxu1 %v9139_v2 }
 0x9d2   : > { %2097 = vmatprep.subr.bf16.mxu1 %v9145_v3 }
 0x9d5   : > { %2098 = vmatpush1.bf16.msra.mxu1 %v9151_v10 }
 0x9d6   : > { %2099 = vmatprep.subr.bf16.mxu1 %v9157_v12 }
 0x9d9   : > { %2100 = vmatpush1.bf16.msra.mxu1 %v9163_v13 }
 0x9da   : > { %2134 = vmatprep.subr.bf16.mxu1 %v9186_v1 }
 0xa97   : > { %v1733_v21 = vpop.f32.mrb[20].mxu1 }
 0xa98   : > { %v1734_v39 = vadd.f32 %v1733_v21, %v1684_v16  ;;  %v1735_v32 = vpop.f32.mrb[21].mxu1  ;;  %v9218_v16 = vld [vmem:[%s10694_s3 + $0x8] ss:$20 sps:$4 sm:$0xff]  }
 0xa99   : > { %v1736_v34 = vadd.f32 %v1735_v32, %v1688_v18  ;;  %v1737_v36 = vpop.f32.mrb[22].mxu1  ;;  %v9223_v18 = vld [vmem:[%s10694_s3 + $0x34] ss:$20 sps:$4 sm:$0xff]   ;;  %v9247_v32 = vld [vmem:[%s10694_s3 + $0x58] ss:$20 sps:$4 sm:$0xff]  }
 0xa9a   : > { %v1780_v37 = vadd.f32 %v1734_v39, %v1374_v35  ;;  %v1738_v38 = vpop.f32.mrb[23].mxu1  ;;  %v9232_v35 = vld [vmem:[%s10694_s3 + $0x30] ss:$20 sps:$4 sm:$0xff]  }
 0xa9b   : > { %v1781_v41 = vadd.f32 %v1736_v34, %v1413_v33  ;;  %v9239_v39 = vld [vmem:[%s10694_s3 + $0x5c] ss:$20 sps:$4 sm:$0xff]   ;;  %v9253_v33 = vld [vmem:[%s10694_s3 + $0x84] ss:$20 sps:$4 sm:$0xff]   ;;  %v9259_v34 = vld [vmem:[%s10694_s3 + $0x80] ss:$20 sps:$4 sm:$0xff]  }
 0xa9c   : > { %v6678_v42 = vmul.f32 -1.442695, %v1780_v37 }
 0xa9d   : > { %v6679_v44 = vmul.f32 -1.442695, %v1781_v41 }
 0xa9e   : > { %8239 = vpow2.f32 %v6678_v42  ;;  %v9272_v42 = vld [vmem:[%s10695_s4] sm:$0x1f] }
 0xa9f   : > { %v1774_v43 = vpop.f32.mrb[24].mxu1  ;;  %8241 = vpow2.f32 %v6679_v44 }
 0xaa0   : > { %v7375_v29 = vpop.f32.mrb[25].mxu1  ;;  %v1775_v51 = vadd.f32 %v1774_v43, %v1692_v48  ;;  %v2069_v43 = vrot.slane %v9272_v42, %v8782_v30 }
 0xaa1   : > { %v1777_v45 = vpop.f32.mrb[26].mxu1 }
 0xaa2   : > { %v7376_v46 = vpop.f32.mrb[27].mxu1 }
 0xaa8   : > { %v8240_v47 = vpop.eup %8239 }
 0xaa9   : > { %v1788_v62 = vadd.f32 1.0, %v8240_v47  ;;  %v8242_v31 = vpop.eup %8241 }
 0xaaa   : > { %v1789_v63 = vadd.f32 1.0, %v8242_v31 }
 0xaab   : > { %8243 = vrcp.f32 %v1788_v62 }
 0xaac   : > { %8245 = vrcp.f32 %v1789_v63 }
 0xab5   : > { %v8244_v49 = vpop.eup %8243 }
 0xab6   : > { %v1794_v54 = vmul.f32 %v8244_v49, %v1415_v40  ;;  %v8246_v24 = vpop.eup %8245  ;;  %v8015_v40 = vld [vmem:[%s10693_s2] sm:$0xff]   ;;  %v8016_v49 = vld [vmem:[%s10693_s2 + $0x8] sm:$0xff]  }
 0xab7   : > { %v1797_v56 = vsub.f32 1.0, %v8246_v24  ;;  %v1799_v57 = vmul.f32 %v8246_v24, %v8973_v50 }
 0xab8   : > { %v1795_v55 = vadd.f32 %v1794_v54, %v1775_v51  ;;  %v8017_v51 = vld [vmem:[%s10693_s2 + $0x10] sm:$0xff]   ;;  %v8018_v54 = vld [vmem:[%s10693_s2 + $0x18] sm:$0xff]  }
 0xaba   : > { %8247 = vtanh.f32 %v1795_v55 }
 0xac4   : > { %v8248_v6 = vpop.eup %8247 }
 0xac5   : > { %v1798_v8 = vmul.f32 %v8248_v6, %v1797_v56 }
 0xac7   : > { %v1800_v58 = vadd.f32 %v1799_v57, %v1798_v8  ;;  %v8019_v8 = vld [vmem:[%s10693_s2 + $0x20] sm:$0xff]   ;;  %v8020_v57 = vld [vmem:[%s10693_s2 + $0x28] sm:$0xff]  }
 0xac9   : > { %v1801_v20 = vpack.c.bf16 %v1800_v58, %v1800_v58  ;;  %v9194_v61 = vsel %vm1925_vm6, %v1800_v58, %v8973_v50  ;;  %v7998_v50 = vld [vmem:[%s10694_s3 + $0x60] ss:$20 sps:$4 sm:$0xff]  }
 0xaca   : > { %v1929_v23 = vpack.c.bf16 %v9194_v61, %v9194_v61  ;;  %v8021_v58 = vld [vmem:[%s10693_s2 + $0x30] sm:$0xff]  }
 0xacb   : > { %7394 = vmatmul.mubr.bf16.vlgmr.msra.gmra.mrb[24].mxu0 %v1801_v20  ;;  %v8023_v20 = vld [vmem:[#allocation2] sm:$0xff]  }
 0xacc   : > { %1931 = vrot.lane.b32.xlu0 %v1929_v23, %s10725_s22  ;;  %7398 = vmatpush3.bf16.msra.mxu0 %v7990_v59  ;;  %v8022_v59 = vld [vmem:[%s10693_s2 + $0x38] sm:$0xff]  }
 0xacd   : > { %7399 = vmatprep.subr.bf16.mxu0 %v8504_v5  ;;  %7405 = vmatprep.mubr.msk.bf16.mxu0 %vm8507_vm0, %v8504_v5  ;;  %v8024_v23 = vld [vmem:[#allocation2 + $0x8] sm:$0xff]  }
 0xad0   : > { %7400 = vmatpush3.bf16.msra.mxu0 %v7994_v25 }
 0xad1   : > { %7401 = vmatprep.subr.bf16.mxu0 %v8504_v5 }
 0xad4   : > { %7402 = vmatpush3.bf16.msra.mxu0 %v7998_v50 }
 0xad5   : > { %7403 = vmatprep.subr.bf16.mxu0 %v8504_v5 }
 0xad8   : > { %7404 = vmatpush3.bf16.msra.mxu0 %v8002_v14 }
 0xad9   : > { %7429 = vmatprep.subr.bf16.mxu0 %v8504_v5 }
 0xb3e   : > { %v1932_v17 = vpop.permute.xlu0 %1931 }
 0xb3f   : > { %v1935_v21 = vsel %vm412_vm1, %v6689_v15, %v1932_v17  ;;  %v9325_v17 = vld [vmem:[%s10697_s6 + $0x4] ss:$12 sps:$4 sm:$0xff]  }
 0xb40   : > { %6710 = vmatmul.mubr.msk.bf16.vlgmr.msra.gmra.mrb[28].mxu1 %vm571_vm2, %v1935_v21  ;;  %7406 = vmatmul.mubr.msk.bf16.vlgmr.msra.gmra.mrb[28].mxu0 %vm571_vm2, %v1935_v21 }
 0xb41   : > { %2135 = vmatpush1.bf16.msra.mxu1 %v9218_v16  ;;  %2166 = vmatprep.mubr.bf16.mxu1 %v8506_v11 }
 0xb42   : > { %2136 = vmatprep.subr.bf16.mxu1 %v9223_v18  ;;  %7433 = vmatprep.mubr.msk.bf16.mxu0 %vm8507_vm0, %v8504_v5 }
 0xb43   : > { %7430 = vmatpush3.bf16.msra.mxu0 %v8023_v20 }
 0xb44   : > { %7431 = vmatprep.subr.bf16.mxu0 %v8504_v5 }
 0xb45   : > { %2137 = vmatpush1.bf16.msra.mxu1 %v9232_v35 }
 0xb46   : > { %2138 = vmatprep.subr.bf16.mxu1 %v9239_v39 }
 0xb47   : > { %7432 = vmatpush3.bf16.msra.mxu0 %v8024_v23 }
 0xb48   : > { %2455 = vmatprep.subr.bf16.mxu0 %v9325_v17 }
 0xb49   : > { %2139 = vmatpush1.bf16.msra.mxu1 %v9247_v32 }
 0xb4a   : > { %2140 = vmatprep.subr.bf16.mxu1 %v9253_v33 }
 0xb4d   : > { %2141 = vmatpush1.bf16.msra.mxu1 %v9259_v34 }
 0xb4e   : > { %7409 = vmatprep.subr.bf16.mxu1 %v8504_v5 }
 0xb50   : > { %6711 = vmatmul.mubr.msk.bf16.vlgmr.msra.gmra.mrb[32].mxu1 %vm571_vm2, %v1935_v21 }
 0xb51   : > { %7425 = vmatprep.mubr.msk.bf16.mxu1 %vm8507_vm0, %v8504_v5  ;;  %7410 = vmatpush3.bf16.msra.mxu1 %v8015_v40 }
 0xb52   : > { %7411 = vmatprep.subr.bf16.mxu1 %v8504_v5 }
 0xb55   : > { %7412 = vmatpush3.bf16.msra.mxu1 %v8016_v49 }
 0xb56   : > { %7413 = vmatprep.subr.bf16.mxu1 %v8504_v5 }
 0xb59   : > { %7414 = vmatpush3.bf16.msra.mxu1 %v8017_v51 }
 0xb5a   : > { %7415 = vmatprep.subr.bf16.mxu1 %v8504_v5 }
 0xb5d   : > { %7416 = vmatpush3.bf16.msra.mxu1 %v8018_v54  ;;  %v8031_v54 = vld [vmem:[%s10697_s6 + $0x8] ss:$12 sps:$4 sm:$0xff]  }
 0xb5e   : > { %7417 = vmatprep.subr.bf16.mxu1 %v8504_v5 }
 0xb61   : > { %7418 = vmatpush3.bf16.msra.mxu1 %v8019_v8 }
 0xb62   : > { %7419 = vmatprep.subr.bf16.mxu1 %v8504_v5 }
 0xb65   : > { %7420 = vmatpush3.bf16.msra.mxu1 %v8020_v57 }
 0xb66   : > { %7421 = vmatprep.subr.bf16.mxu1 %v8504_v5 }
 0xb69   : > { %7422 = vmatpush3.bf16.msra.mxu1 %v8021_v58 }
 0xb6a   : > { %7423 = vmatprep.subr.bf16.mxu1 %v8504_v5 }
 0xb6d   : > { %7424 = vmatpush3.bf16.msra.mxu1 %v8022_v59 }
 0xb6e   : > { %7445 = vmatprep.subr.bf16.mxu1 %v8504_v5 }
 0xb9e   : > { %v9267_v36 = vpop.f32.mrb[24].mxu0 }
 0xb9f   : > { %v7395_v37 = vpop.f32.mrb[25].mxu0 }
 0xba0   : > { %v1904_v38 = vpop.f32.mrb[26].mxu0  ;;  %v9331_v37 = vld [vmem:[%s10697_s6] ss:$12 sps:$4 sm:$0xff]  }
 0xba1   : > { %v7396_v41 = vpop.f32.mrb[27].mxu0 }
 0xc13   : > { %v2127_v29 = vpop.f32.mrb[28].mxu1 }
 0xc14   : > { %v2128_v44 = vadd.f32 %v2127_v29, %v2069_v43  ;;  %v9276_v45 = vpop.f32.mrb[29].mxu1 }
 0xc15   : > { %v2131_v46 = vpop.f32.mrb[30].mxu1 }
 0xc16   : > { %v2132_v47 = vpop.f32.mrb[31].mxu1  ;;  %v2215_v62 = vsel %vm696_vm3, %v2128_v44, -inf  ;;  %v9344_v46 = vld [vmem:[%s10697_s6 + $0x18] ss:$12 sps:$4 sm:$0xff]  }
 0xc17   : > { %2216 = vmax.xlane.f32.xlu1 %v2215_v62  ;;  %v2085_v47 = vrot.slane %v9272_v42, %v8870_v9 }
 0xc23   : > { %v9279_v31 = vpop.f32.mrb[32].mxu1 }
 0xc24   : > { %v9281_v4 = vpop.f32.mrb[33].mxu1 }
 0xc25   : > { %v2172_v63 = vpop.f32.mrb[34].mxu1 }
 0xc26   : > { %v2173_v48 = vpop.f32.mrb[35].mxu1 }
 0xca4   : > { %v2217_v55 = vpop.xlane.xlu1 %2216 }
 0xca5   : > { %v2218_v24 = vsub.f32 %v2128_v44, %v2217_v55  ;;  %v9339_v44 = vld [vmem:[%s10697_s6 + $0x1c] ss:$12 sps:$4 sm:$0xff]  }
 0xca7   : > { %v2219_v56 = vmul.f32 1.442695, %v2218_v24  ;;  %v8032_v24 = vld [vmem:[%s10697_s6 + $0x20] ss:$12 sps:$4 sm:$0xff]  }
 0xca9   : > { %8249 = vpow2.f32 %v2219_v56  ;;  %v2073_v56 = vrot.slane %v9272_v42, %v8946_v52 }
 0xcab   : > { %v2130_v58 = vadd.f32 %v9276_v45, %v2073_v56 }
 0xcb3   : > { %v8250_v7 = vpop.eup %8249 }
 0xcb4   : > { %v2221_v6 = vsel %vm696_vm3, %v8250_v7, 0.0 }
 0xcb5   : > { %2222 = vadd.xlane.f32.xlu0 %v2221_v6  ;;  %v2077_v6 = vrot.slane %v9272_v42, %v8949_v53 }
 0xcb7   : > { %v2169_v23 = vadd.f32 %v9279_v31, %v2077_v6  ;;  %v2081_v31 = vrot.slane %v9272_v42, %v8963_v22  ;;  %v8044_v6 = vld [vmem:[%s10694_s3 + $0x88] ss:$20 sps:$4 sm:$0xff]  }
 0xd42   : > { %v2223_v25 = vpop.xlane.xlu0 %2222 }
 0xd43   : > { %8251 = vrcp.f32 %v2223_v25 }
 0xd4d   : > { %v8252_v50 = vpop.eup %8251 }
 0xd4e   : > { %v2225_v14 = vmul.f32 %v8252_v50, %v8250_v7 }
 0xd50   : > { %6713 = vst.msk [vmem:[%s8670_s14 + $0x4] sm:$0x1] %vm8833_vm4, %v2225_v14  ;;  %v2228_v15 = vpack.c.bf16 %v2225_v14, %v2225_v14 }
 0xd52   : > { %7426 = vmatmul.mubr.bf16.vlgmr.msra.gmra.mrb[36].mxu1 %v2228_v15 }
 0xd53   : > { %7461 = vmatprep.mubr.msk.bf16.mxu1 %vm8507_vm0, %v8504_v5 }
 0xe25   : > { %v2327_v21 = vpop.f32.mrb[36].mxu1 }
 0xe26   : > { %v2333_v38 = vpack.c.bf16 %v2327_v21, %v2327_v21  ;;  %v7427_v41 = vpop.f32.mrb[37].mxu1 }
 0xe27   : > { %v2330_v43 = vpop.f32.mrb[38].mxu1 }
 0xe28   : > { %v7428_v29 = vpop.f32.mrb[39].mxu1  ;;  %7434 = vmatmul.mubr.msk.bf16.vlgmr.msra.gmra.mrb[28].mxu0 %vm412_vm1, %v2333_v38 }
 0xe29   : > { %2456 = vmatpush1.bf16.msra.mxu0 %v9331_v37  ;;  %2487 = vmatprep.mubr.bf16.mxu0 %v8506_v11 }
 0xe2a   : > { %2457 = vmatprep.subr.bf16.mxu0 %v9339_v44 }
 0xe2d   : > { %2458 = vmatpush1.bf16.msra.mxu0 %v9344_v46 }
 0xe2e   : > { %7437 = vmatprep.subr.bf16.mxu0 %v8504_v5 }
 0xefb   : > { %v2387_v62 = vpop.f32.mrb[28].mxu0 }
 0xefc   : > { %v7807_v63 = vadd.f32 %v2387_v62, %v2085_v47  ;;  %v7435_v48 = vpop.f32.mrb[29].mxu0 }
 0xefd   : > { %v2390_v40 = vpop.f32.mrb[30].mxu0 }
 0xefe   : > { %v2393_v49 = vmax.f32 %v7807_v63, 0.0  ;;  %v7436_v51 = vpop.f32.mrb[31].mxu0 }
 0xeff   : > { %v2171_v51 = vadd.f32 %v9281_v4, %v2081_v31  ;;  %v8041_v4 = vld [vmem:[%s10694_s3 + $0x10] ss:$20 sps:$4 sm:$0xff]  }
 0xf00   : > { %v2394_v55 = vpack.c.bf16 %v2393_v49, %v2393_v49 }
 0xf02   : > { %6731 = vmatmul.mubr.msk.bf16.vlgmr.msra.gmra.mrb[32].mxu0 %vm412_vm1, %v2394_v55 }
 0xf03   : > { %7438 = vmatpush3.bf16.msra.mxu0 %v8031_v54  ;;  %7441 = vmatprep.mubr.msk.bf16.mxu0 %vm8507_vm0, %v8504_v5 }
 0xf04   : > { %7439 = vmatprep.subr.bf16.mxu0 %v8504_v5 }
 0xf07   : > { %7440 = vmatpush3.bf16.msra.mxu0 %v8032_v24 }
 0xf08   : > { %2849 = vmatprep.subr.bf16.mxu0 %v9127_v27  ;;  %v8034_v27 = vld [vmem:[%s10699_s8 + $0x8] sm:$0xff]  }
 0xf0a   : > { %7442 = vmatmul.mubr.msk.bf16.vlgmr.msra.gmra.mrb[36].mxu0 %vm412_vm1, %v2394_v55 }
 0xf0b   : > { %2850 = vmatpush1.bf16.msra.mxu0 %v9122_v26  ;;  %2881 = vmatprep.mubr.bf16.mxu0 %v8506_v11  ;;  %v8033_v26 = vld [vmem:[%s10699_s8] sm:$0xff]  }
 0xf0c   : > { %2851 = vmatprep.subr.bf16.mxu0 %v9132_v0  ;;  %7446 = vmatpush3.bf16.msra.mxu1 %v8033_v26  ;;  %v8035_v0 = vld [vmem:[%s10699_s8 + $0x10] sm:$0xff]  }
 0xf0d   : > { %7447 = vmatprep.subr.bf16.mxu1 %v8504_v5 }
 0xf0f   : > { %2852 = vmatpush1.bf16.msra.mxu0 %v9139_v2  ;;  %v8036_v2 = vld [vmem:[%s10699_s8 + $0x18] sm:$0xff]  }
 0xf10   : > { %2853 = vmatprep.subr.bf16.mxu0 %v9145_v3  ;;  %7448 = vmatpush3.bf16.msra.mxu1 %v8034_v27  ;;  %v8037_v3 = vld [vmem:[%s10699_s8 + $0x20] sm:$0xff]  }
 0xf11   : > { %7449 = vmatprep.subr.bf16.mxu1 %v8504_v5 }
 0xf13   : > { %2854 = vmatpush1.bf16.msra.mxu0 %v9151_v10  ;;  %v8038_v10 = vld [vmem:[%s10699_s8 + $0x28] sm:$0xff]  }
 0xf14   : > { %2855 = vmatprep.subr.bf16.mxu0 %v9157_v12  ;;  %7450 = vmatpush3.bf16.msra.mxu1 %v8035_v0  ;;  %v8039_v12 = vld [vmem:[%s10699_s8 + $0x30] sm:$0xff]  }
 0xf15   : > { %7451 = vmatprep.subr.bf16.mxu1 %v8504_v5 }
 0xf17   : > { %2856 = vmatpush1.bf16.msra.mxu0 %v9163_v13  ;;  %v8040_v13 = vld [vmem:[%s10699_s8 + $0x38] sm:$0xff]  }
 0xf18   : > { %2890 = vmatprep.subr.bf16.mxu0 %v9186_v1  ;;  %7452 = vmatpush3.bf16.msra.mxu1 %v8036_v2  ;;  %v2403_v1 = vld [vmem:[%s10698_s7] sm:$0x7]  ;;  %v2680_v2 = vstv %s2679_s26  ;;  %s5701_s26 = sadd.s32 6, %s8659_s16 }
 0xf19   : > { %7453 = vmatprep.subr.bf16.mxu1 %v8504_v5  ;;  %v2440_v7 = vrot.slane %v2403_v1, %v8782_v30  ;;  %v2444_v8 = vrot.slane %v2403_v1, %v8946_v52  ;;  %v2448_v49 = vrot.slane %v2403_v1, %v8949_v53  ;;  %vm2681_vm7 = vcmp.eq.s32.totalorder %v2680_v2, 1  ;;  %p5702_p7 = scmp.lt.s32.totalorder %s5701_s26, 11  ;;  %s8403_s26 = scalar_lea.vmem %s6494_s15, 16 }
 0xf1a   : > { %p8404_p12 = scmp.ne.s32.totalorder %s6494_s15, %s8403_s26 }
 0xf1c   : > { %7454 = vmatpush3.bf16.msra.mxu1 %v8037_v3  ;;  %p8405_p3 = pnand %p8404_p12, %p10728_p0 }
 0xf1d   : > { %7455 = vmatprep.subr.bf16.mxu1 %v8504_v5 }
 0xf1e   : > { %p8406_p2 = pneg %p8405_p3 }
 0xf20   : > { %7456 = vmatpush3.bf16.msra.mxu1 %v8038_v10 }
 0xf21   : > { %7457 = vmatprep.subr.bf16.mxu1 %v8504_v5 }
 0xf24   : > { %7458 = vmatpush3.bf16.msra.mxu1 %v8039_v12 }
 0xf25   : > { %7459 = vmatprep.subr.bf16.mxu1 %v8504_v5 }
 0xf28   : > { %7460 = vmatpush3.bf16.msra.mxu1 %v8040_v13 }
 0xf29   : > { %7465 = vmatprep.subr.bf16.mxu1 %v8504_v5 }
 0xfd5   : > { %v2489_v57 = vpop.f32.mrb[32].mxu0 }
 0xfd6   : > { %v2490_v59 = vadd.f32 %v2489_v57, %v2440_v7  ;;  %v2491_v20 = vpop.f32.mrb[33].mxu0  ;;  %v8042_v7 = vld [vmem:[%s10694_s3 + $0x38] ss:$20 sps:$4 sm:$0xff]  }
 0xfd7   : > { %v2492_v25 = vadd.f32 %v2491_v20, %v2444_v8  ;;  %v2493_v50 = vpop.f32.mrb[34].mxu0  ;;  %v6744_v8 = vld [vmem:[%s8668_s30 + $0x3] sm:$0x1] }
 0xfd8   : > { %v2536_v14 = vadd.f32 %v2490_v59, %v2130_v58  ;;  %v2494_v15 = vpop.f32.mrb[35].mxu0 }
 0xfd9   : > { %v2537_v21 = vadd.f32 %v2492_v25, %v2169_v23 }
 0xfda   : > { %v6733_v38 = vmul.f32 -1.442695, %v2536_v14 }
 0xfdb   : > { %v6734_v29 = vmul.f32 -1.442695, %v2537_v21 }
 0xfdc   : > { %8253 = vpow2.f32 %v6733_v38 }
 0xfdd   : > { %v2530_v41 = vpop.f32.mrb[36].mxu0  ;;  %8255 = vpow2.f32 %v6734_v29  ;;  %v8047_v29 = vld [vmem:[%s10693_s2 + $0x10] sm:$0xff]  }
 0xfde   : > { %v7443_v43 = vpop.f32.mrb[37].mxu0  ;;  %v2531_v55 = vadd.f32 %v2530_v41, %v2448_v49  ;;  %v8045_v41 = vld [vmem:[%s10693_s2] sm:$0xff]   ;;  %v8050_v49 = vld [vmem:[%s10693_s2 + $0x28] sm:$0xff]  }
 0xfdf   : > { %v2533_v47 = vpop.f32.mrb[38].mxu0  ;;  %v8046_v43 = vld [vmem:[%s10693_s2 + $0x8] sm:$0xff]  }
 0xfe0   : > { %v7444_v62 = vpop.f32.mrb[39].mxu0  ;;  %v8048_v47 = vld [vmem:[%s10693_s2 + $0x18] sm:$0xff]  }
 0xfe6   : > { %v8254_v63 = vpop.eup %8253 }
 0xfe7   : > { %v2544_v45 = vadd.f32 1.0, %v8254_v63  ;;  %v8256_v48 = vpop.eup %8255 }
 0xfe8   : > { %v2545_v40 = vadd.f32 1.0, %v8256_v48 }
 0xfe9   : > { %8257 = vrcp.f32 %v2544_v45 }
 0xfea   : > { %8259 = vrcp.f32 %v2545_v40  ;;  %v8049_v40 = vld [vmem:[%s10693_s2 + $0x20] sm:$0xff]  }
 0xff3   : > { %v8258_v54 = vpop.eup %8257 }
 0xff4   : > { %v2550_v24 = vmul.f32 %v8258_v54, %v2171_v51  ;;  %v8260_v27 = vpop.eup %8259  ;;  %v8051_v51 = vld [vmem:[%s10693_s2 + $0x30] sm:$0xff]   ;;  %v8052_v54 = vld [vmem:[%s10693_s2 + $0x38] sm:$0xff]  }
 0xff5   : > { %v2553_v0 = vsub.f32 1.0, %v8260_v27  ;;  %v2555_v42 = vmul.f32 %v8260_v27, %v9194_v61 }
 0xff6   : > { %v2551_v26 = vadd.f32 %v2550_v24, %v2531_v55  ;;  %v8053_v55 = vld [vmem:[#allocation2] sm:$0xff]   ;;  %v8054_v24 = vld [vmem:[#allocation2 + $0x8] sm:$0xff]  }
 0xff8   : > { %8261 = vtanh.f32 %v2551_v26 }
0x1002   : > { %v8262_v3 = vpop.eup %8261 }
0x1003   : > { %v2554_v10 = vmul.f32 %v8262_v3, %v2553_v0 }
0x1005   : > { %v2556_v12 = vadd.f32 %v2555_v42, %v2554_v10 }
0x1007   : > { %v2557_v13 = vpack.c.bf16 %v2556_v12, %v2556_v12  ;;  %v9425_v1 = vsel %vm2681_vm7, %v2556_v12, %v9194_v61  ;;  %v8043_v61 = vld [vmem:[%s10694_s3 + $0x60] ss:$20 sps:$4 sm:$0xff]  }
0x1008   : > { %v2685_v56 = vpack.c.bf16 %v9425_v1, %v9425_v1 }
0x1009   : > { %7462 = vmatmul.mubr.bf16.vlgmr.msra.gmra.mrb[40].mxu1 %v2557_v13 }
0x100a   : > { %2687 = vrot.lane.b32.xlu1 %v2685_v56, %s10725_s22  ;;  %7466 = vmatpush3.bf16.msra.mxu1 %v8041_v4 }
0x100b   : > { %7467 = vmatprep.subr.bf16.mxu1 %v8504_v5  ;;  %7473 = vmatprep.mubr.msk.bf16.mxu1 %vm8507_vm0, %v8504_v5 }
0x100e   : > { %7468 = vmatpush3.bf16.msra.mxu1 %v8042_v7 }
0x100f   : > { %7469 = vmatprep.subr.bf16.mxu1 %v8504_v5 }
0x1012   : > { %7470 = vmatpush3.bf16.msra.mxu1 %v8043_v61 }
0x1013   : > { %7471 = vmatprep.subr.bf16.mxu1 %v8504_v5 }
0x1016   : > { %7472 = vmatpush3.bf16.msra.mxu1 %v8044_v6 }
0x1017   : > { %7497 = vmatprep.subr.bf16.mxu1 %v8504_v5 }
0x107c   : > { %v2688_v57 = vpop.permute.xlu1 %2687 }
0x107d   : > { %v2691_v58 = vsel %vm412_vm1, %v6744_v8, %v2688_v57 }
0x107e   : > { %6765 = vmatmul.mubr.msk.bf16.vlgmr.msra.gmra.mrb[40].mxu0 %vm571_vm2, %v2691_v58  ;;  %7474 = vmatmul.mubr.msk.bf16.vlgmr.msra.gmra.mrb[44].mxu1 %vm571_vm2, %v2691_v58 }
0x107f   : > { %2891 = vmatpush1.bf16.msra.mxu0 %v9218_v16  ;;  %2922 = vmatprep.mubr.bf16.mxu0 %v8506_v11 }
0x1080   : > { %2892 = vmatprep.subr.bf16.mxu0 %v9223_v18  ;;  %7501 = vmatprep.mubr.msk.bf16.mxu1 %vm8507_vm0, %v8504_v5 }
0x1081   : > { %7498 = vmatpush3.bf16.msra.mxu1 %v8053_v55 }
0x1082   : > { %7499 = vmatprep.subr.bf16.mxu1 %v8504_v5 }
0x1083   : > { %2893 = vmatpush1.bf16.msra.mxu0 %v9232_v35 }
0x1084   : > { %2894 = vmatprep.subr.bf16.mxu0 %v9239_v39  ;;  %v9468_v39 = vld [vmem:[%s10695_s4] sm:$0x1f] }
0x1085   : > { %7500 = vmatpush3.bf16.msra.mxu1 %v8054_v24 }
0x1086   : > { %3211 = vmatprep.subr.bf16.mxu1 %v9325_v17  ;;  %v2841_v17 = vrot.slane %v9468_v39, %v8870_v9 }
0x1087   : > { %2895 = vmatpush1.bf16.msra.mxu0 %v9247_v32  ;;  %v2825_v32 = vrot.slane %v9468_v39, %v8782_v30 }
0x1088   : > { %2896 = vmatprep.subr.bf16.mxu0 %v9253_v33 }
0x108b   : > { %2897 = vmatpush1.bf16.msra.mxu0 %v9259_v34 }
0x108c   : > { %7477 = vmatprep.subr.bf16.mxu0 %v8504_v5 }
0x108e   : > { %6766 = vmatmul.mubr.msk.bf16.vlgmr.msra.gmra.mrb[44].mxu0 %vm571_vm2, %v2691_v58  ;;  %v8058_v58 = vld [vmem:[%s10699_s8 + $0x8] sm:$0xff]  }
0x108f   : > { %7493 = vmatprep.mubr.msk.bf16.mxu0 %vm8507_vm0, %v8504_v5  ;;  %7478 = vmatpush3.bf16.msra.mxu0 %v8045_v41  ;;  %v9603_v41 = vld [vmem:[%s10694_s3 + $0x50] ss:$20 sps:$4 sm:$0xff]  }
0x1090   : > { %7479 = vmatprep.subr.bf16.mxu0 %v8504_v5 }
0x1093   : > { %7480 = vmatpush3.bf16.msra.mxu0 %v8046_v43  ;;  %v9609_v43 = vld [vmem:[%s10694_s3 + $0x7c] ss:$20 sps:$4 sm:$0xff]  }
0x1094   : > { %7481 = vmatprep.subr.bf16.mxu0 %v8504_v5 }
0x1097   : > { %7482 = vmatpush3.bf16.msra.mxu0 %v8047_v29  ;;  %v9615_v29 = vld [vmem:[%s10694_s3 + $0x78] ss:$20 sps:$4 sm:$0xff]  }
0x1098   : > { %7483 = vmatprep.subr.bf16.mxu0 %v8504_v5 }
0x109b   : > { %7484 = vmatpush3.bf16.msra.mxu0 %v8048_v47  ;;  %v3159_v47 = vld [vmem:[%s10698_s7] sm:$0x7] }
0x109c   : > { %7485 = vmatprep.subr.bf16.mxu0 %v8504_v5 }
0x109f   : > { %7486 = vmatpush3.bf16.msra.mxu0 %v8049_v40 }
0x10a0   : > { %7487 = vmatprep.subr.bf16.mxu0 %v8504_v5 }
0x10a3   : > { %7488 = vmatpush3.bf16.msra.mxu0 %v8050_v49 }
0x10a4   : > { %7489 = vmatprep.subr.bf16.mxu0 %v8504_v5 }
0x10a7   : > { %7490 = vmatpush3.bf16.msra.mxu0 %v8051_v51 }
0x10a8   : > { %7491 = vmatprep.subr.bf16.mxu0 %v8504_v5 }
0x10ab   : > { %7492 = vmatpush3.bf16.msra.mxu0 %v8052_v54 }
0x10ac   : > { %7513 = vmatprep.subr.bf16.mxu0 %v8504_v5 }
0x10dc   : > { %v9463_v16 = vpop.f32.mrb[40].mxu1 }
0x10dd   : > { %v7463_v18 = vpop.f32.mrb[41].mxu1 }
0x10de   : > { %v2660_v59 = vpop.f32.mrb[42].mxu1  ;;  %v8059_v18 = vld [vmem:[%s10699_s8 + $0x10] sm:$0xff]  }
0x10df   : > { %v7464_v35 = vpop.f32.mrb[43].mxu1  ;;  %v8060_v59 = vld [vmem:[%s10699_s8 + $0x18] sm:$0xff]  }
0x10e0   : > { %v8061_v35 = vld [vmem:[%s10699_s8 + $0x20] sm:$0xff]  }
0x1151   : > { %v2883_v33 = vpop.f32.mrb[40].mxu0 }
0x1152   : > { %v2884_v34 = vadd.f32 %v2883_v33, %v2825_v32  ;;  %v9472_v20 = vpop.f32.mrb[41].mxu0  ;;  %v8062_v32 = vld [vmem:[%s10699_s8 + $0x28] sm:$0xff]   ;;  %v8063_v33 = vld [vmem:[%s10699_s8 + $0x30] sm:$0xff]  }
0x1153   : > { %v2887_v23 = vpop.f32.mrb[42].mxu0 }
0x1154   : > { %v2888_v25 = vpop.f32.mrb[43].mxu0  ;;  %v2971_v50 = vsel %vm696_vm3, %v2884_v34, -inf  ;;  %v9574_v23 = vld [vmem:[%s10694_s3] ss:$20 sps:$4 sm:$0xff]  }
0x1155   : > { %2972 = vmax.xlane.f32.xlu1 %v2971_v50  ;;  %v9579_v25 = vld [vmem:[%s10694_s3 + $0x4] ss:$20 sps:$4 sm:$0xff]   ;;  %v9584_v50 = vld [vmem:[%s10694_s3 + $0x2c] ss:$20 sps:$4 sm:$0xff]  }
0x1161   : > { %v9475_v14 = vpop.f32.mrb[44].mxu0 }
0x1162   : > { %v9477_v15 = vpop.f32.mrb[45].mxu0 }
0x1163   : > { %v2928_v21 = vpop.f32.mrb[46].mxu0 }
0x1164   : > { %v2929_v38 = vpop.f32.mrb[47].mxu0  ;;  %v9591_v21 = vld [vmem:[%s10694_s3 + $0x28] ss:$20 sps:$4 sm:$0xff]  }
0x1165   : > { %v9597_v38 = vld [vmem:[%s10694_s3 + $0x54] ss:$20 sps:$4 sm:$0xff]  }
0x11e2   : > { %v2973_v62 = vpop.xlane.xlu1 %2972 }
0x11e3   : > { %v2974_v63 = vsub.f32 %v2884_v34, %v2973_v62  ;;  %v8064_v34 = vld [vmem:[%s10699_s8 + $0x38] sm:$0xff]   ;;  %v2829_v62 = vrot.slane %v9468_v39, %v8946_v52 }
0x11e5   : > { %v2975_v45 = vmul.f32 1.442695, %v2974_v63  ;;  %v3196_v63 = vrot.slane %v3159_v47, %v8782_v30  ;;  %v2886_v40 = vadd.f32 %v9472_v20, %v2829_v62  ;;  %v8072_v62 = vld [vmem:[%s10694_s3 + $0x38] ss:$20 sps:$4 sm:$0xff]  }
0x11e7   : > { %8263 = vpow2.f32 %v2975_v45  ;;  %v2833_v45 = vrot.slane %v9468_v39, %v8949_v53 }
0x11e9   : > { %v2925_v54 = vadd.f32 %v9475_v14, %v2833_v45  ;;  %v2837_v14 = vrot.slane %v9468_v39, %v8963_v22  ;;  %v6799_v45 = vld [vmem:[%s8668_s30 + $0x4] sm:$0x1] }
0x11f1   : > { %v8264_v48 = vpop.eup %8263 }
0x11f2   : > { %v2977_v31 = vsel %vm696_vm3, %v8264_v48, 0.0 }
0x11f3   : > { %2978 = vadd.xlane.f32.xlu0 %v2977_v31 }
0x1280   : > { %v2979_v26 = vpop.xlane.xlu0 %2978 }
0x1281   : > { %8265 = vrcp.f32 %v2979_v26 }
0x128b   : > { %v8266_v27 = vpop.eup %8265 }
0x128c   : > { %v2981_v0 = vmul.f32 %v8266_v27, %v8264_v48  ;;  %v3200_v48 = vrot.slane %v3159_v47, %v8946_v52 }
0x128e   : > { %6768 = vst.msk [vmem:[%s8670_s14 + $0x6] sm:$0x1] %vm8833_vm4, %v2981_v0  ;;  %v2984_v2 = vpack.c.bf16 %v2981_v0, %v2981_v0 }
0x1290   : > { %7494 = vmatmul.mubr.bf16.vlgmr.msra.gmra.mrb[48].mxu0 %v2984_v2 }
0x1291   : > { %7529 = vmatprep.mubr.msk.bf16.mxu0 %vm8507_vm0, %v8504_v5 }
0x1363   : > { %v3083_v3 = vpop.f32.mrb[48].mxu0 }
0x1364   : > { %v3089_v10 = vpack.c.bf16 %v3083_v3, %v3083_v3  ;;  %v7495_v42 = vpop.f32.mrb[49].mxu0 }
0x1365   : > { %v3086_v12 = vpop.f32.mrb[50].mxu0 }
0x1366   : > { %v7496_v4 = vpop.f32.mrb[51].mxu0  ;;  %7502 = vmatmul.mubr.msk.bf16.vlgmr.msra.gmra.mrb[44].mxu1 %vm412_vm1, %v3089_v10 }
0x1367   : > { %3212 = vmatpush1.bf16.msra.mxu1 %v9331_v37  ;;  %3243 = vmatprep.mubr.bf16.mxu1 %v8506_v11  ;;  %v8055_v37 = vld [vmem:[%s10697_s6 + $0x8] ss:$12 sps:$4 sm:$0xff]  }
0x1368   : > { %3213 = vmatprep.subr.bf16.mxu1 %v9339_v44  ;;  %v8056_v44 = vld [vmem:[%s10697_s6 + $0x20] ss:$12 sps:$4 sm:$0xff]  }
0x136b   : > { %3214 = vmatpush1.bf16.msra.mxu1 %v9344_v46  ;;  %v8057_v46 = vld [vmem:[%s10699_s8] sm:$0xff]  }
0x136c   : > { %7505 = vmatprep.subr.bf16.mxu1 %v8504_v5  ;;  %7514 = vmatpush3.bf16.msra.mxu0 %v8057_v46 }
0x136d   : > { %7515 = vmatprep.subr.bf16.mxu0 %v8504_v5 }
0x1370   : > { %7516 = vmatpush3.bf16.msra.mxu0 %v8058_v58  ;;  %v3436_v58 = vstv %s3435_s25  ;;  %s4191_s25 = scalar_select %p4190_p1, 1, 0 }
0x1371   : > { %7517 = vmatprep.subr.bf16.mxu0 %v8504_v5  ;;  %vm3437_vm8 = vcmp.eq.s32.totalorder %v3436_v58, 1 }
0x1374   : > { %7518 = vmatpush3.bf16.msra.mxu0 %v8059_v18 }
0x1375   : > { %7519 = vmatprep.subr.bf16.mxu0 %v8504_v5 }
0x1378   : > { %7520 = vmatpush3.bf16.msra.mxu0 %v8060_v59 }
0x1379   : > { %7521 = vmatprep.subr.bf16.mxu0 %v8504_v5 }
0x137c   : > { %7522 = vmatpush3.bf16.msra.mxu0 %v8061_v35 }
0x137d   : > { %7523 = vmatprep.subr.bf16.mxu0 %v8504_v5 }
0x1380   : > { %7524 = vmatpush3.bf16.msra.mxu0 %v8062_v32  ;;  %v8068_v32 = vld [vmem:[%s10694_s3 + $0x10] ss:$20 sps:$4 sm:$0xff]  }
0x1381   : > { %7525 = vmatprep.subr.bf16.mxu0 %v8504_v5 }
0x1384   : > { %7526 = vmatpush3.bf16.msra.mxu0 %v8063_v33 }
0x1385   : > { %7527 = vmatprep.subr.bf16.mxu0 %v8504_v5 }
0x1388   : > { %7528 = vmatpush3.bf16.msra.mxu0 %v8064_v34 }
0x1389   : > { %7533 = vmatprep.subr.bf16.mxu0 %v8504_v5 }
0x1439   : > { %v3143_v13 = vpop.f32.mrb[44].mxu1 }
0x143a   : > { %v7808_v56 = vadd.f32 %v3143_v13, %v2841_v17  ;;  %v7503_v7 = vpop.f32.mrb[45].mxu1 }
0x143b   : > { %v3146_v61 = vpop.f32.mrb[46].mxu1  ;;  %v3204_v7 = vrot.slane %v3159_v47, %v8949_v53 }
0x143c   : > { %v3149_v6 = vmax.f32 %v7808_v56, 0.0  ;;  %v7504_v8 = vpop.f32.mrb[47].mxu1  ;;  %v2927_v61 = vadd.f32 %v9477_v15, %v2837_v14 }
0x143e   : > { %v3150_v57 = vpack.c.bf16 %v3149_v6, %v3149_v6 }
0x1440   : > { %6786 = vmatmul.mubr.msk.bf16.vlgmr.msra.gmra.mrb[48].mxu1 %vm412_vm1, %v3150_v57 }
0x1441   : > { %7506 = vmatpush3.bf16.msra.mxu1 %v8055_v37  ;;  %7509 = vmatprep.mubr.msk.bf16.mxu1 %vm8507_vm0, %v8504_v5 }
0x1442   : > { %7507 = vmatprep.subr.bf16.mxu1 %v8504_v5 }
0x1445   : > { %7508 = vmatpush3.bf16.msra.mxu1 %v8056_v44  ;;  %v9638_v44 = vld [vmem:[%s10694_s3 + $0xc] ss:$20 sps:$4 sm:$0xff]  }
0x1446   : > { %3605 = vmatprep.subr.bf16.mxu1 %v9579_v25 }
0x1448   : > { %7510 = vmatmul.mubr.msk.bf16.vlgmr.msra.gmra.mrb[52].mxu1 %vm412_vm1, %v3150_v57 }
0x1449   : > { %3637 = vmatprep.mubr.bf16.mxu1 %v8506_v11  ;;  %3606 = vmatpush1.bf16.msra.mxu1 %v9574_v23 }
0x144a   : > { %3607 = vmatprep.subr.bf16.mxu1 %v9584_v50 }
0x144d   : > { %3608 = vmatpush1.bf16.msra.mxu1 %v9591_v21 }
0x144e   : > { %3609 = vmatprep.subr.bf16.mxu1 %v9597_v38 }
0x1451   : > { %3610 = vmatpush1.bf16.msra.mxu1 %v9603_v41 }
0x1452   : > { %3611 = vmatprep.subr.bf16.mxu1 %v9609_v43 }
0x1455   : > { %3612 = vmatpush1.bf16.msra.mxu1 %v9615_v29 }
0x1456   : > { %3646 = vmatprep.subr.bf16.mxu1 %v9638_v44 }
0x1513   : > { %v3245_v31 = vpop.f32.mrb[48].mxu1 }
0x1514   : > { %v3246_v49 = vadd.f32 %v3245_v31, %v3196_v63  ;;  %v3247_v51 = vpop.f32.mrb[49].mxu1  ;;  %v8080_v63 = vld [vmem:[%s10694_s3 + $0x88] ss:$20 sps:$4 sm:$0xff]  }
0x1515   : > { %v3248_v55 = vadd.f32 %v3247_v51, %v3200_v48  ;;  %v3249_v24 = vpop.f32.mrb[50].mxu1  ;;  %v9670_v48 = vld [vmem:[%s10694_s3 + $0x8] ss:$20 sps:$4 sm:$0xff]   ;;  %v9684_v51 = vld [vmem:[%s10694_s3 + $0x30] ss:$20 sps:$4 sm:$0xff]  }
0x1516   : > { %v3292_v26 = vadd.f32 %v3246_v49, %v2886_v40  ;;  %v3250_v27 = vpop.f32.mrb[51].mxu1  ;;  %v9675_v40 = vld [vmem:[%s10694_s3 + $0x34] ss:$20 sps:$4 sm:$0xff]   ;;  %v9705_v24 = vld [vmem:[%s10694_s3 + $0x84] ss:$20 sps:$4 sm:$0xff]  }
0x1517   : > { %v3293_v0 = vadd.f32 %v3248_v55, %v2925_v54  ;;  %v9691_v54 = vld [vmem:[%s10694_s3 + $0x5c] ss:$20 sps:$4 sm:$0xff]   ;;  %v9699_v55 = vld [vmem:[%s10694_s3 + $0x58] ss:$20 sps:$4 sm:$0xff]  }
0x1518   : > { %v6788_v2 = vmul.f32 -1.442695, %v3292_v26  ;;  %v9711_v26 = vld [vmem:[%s10694_s3 + $0x80] ss:$20 sps:$4 sm:$0xff]  }
0x1519   : > { %v6789_v42 = vmul.f32 -1.442695, %v3293_v0 }
0x151a   : > { %8267 = vpow2.f32 %v6788_v2 }
0x151b   : > { %v3286_v3 = vpop.f32.mrb[52].mxu1  ;;  %8269 = vpow2.f32 %v6789_v42 }
0x151c   : > { %v7511_v10 = vpop.f32.mrb[53].mxu1  ;;  %v3287_v8 = vadd.f32 %v3286_v3, %v3204_v7 }
0x151d   : > { %v3289_v12 = vpop.f32.mrb[54].mxu1  ;;  %v9724_v10 = vld [vmem:[%s10695_s4] sm:$0x1f] }
0x151e   : > { %v7512_v4 = vpop.f32.mrb[55].mxu1  ;;  %v3581_v42 = vrot.slane %v9724_v10, %v8782_v30 }
0x1524   : > { %v8268_v17 = vpop.eup %8267 }
0x1525   : > { %v3300_v20 = vadd.f32 1.0, %v8268_v17  ;;  %v8270_v13 = vpop.eup %8269 }
0x1526   : > { %v3301_v56 = vadd.f32 1.0, %v8270_v13 }
0x1527   : > { %8271 = vrcp.f32 %v3300_v20 }
0x1528   : > { %8273 = vrcp.f32 %v3301_v56 }
0x1531   : > { %v8272_v6 = vpop.eup %8271 }
0x1532   : > { %v3306_v37 = vmul.f32 %v8272_v6, %v2927_v61  ;;  %v8274_v39 = vpop.eup %8273 }
0x1533   : > { %v3309_v46 = vsub.f32 1.0, %v8274_v39  ;;  %v3311_v59 = vmul.f32 %v8274_v39, %v9425_v1  ;;  %v8096_v39 = vld [vmem:[%s10693_s2 + $0x18] sm:$0xff]  }
0x1534   : > { %v3307_v57 = vadd.f32 %v3306_v37, %v3287_v8  ;;  %v8093_v8 = vld [vmem:[%s10693_s2] sm:$0xff]   ;;  %v8094_v37 = vld [vmem:[%s10693_s2 + $0x8] sm:$0xff]  }
0x1536   : > { %8275 = vtanh.f32 %v3307_v57  ;;  %v8095_v57 = vld [vmem:[%s10693_s2 + $0x10] sm:$0xff]  }
0x1540   : > { %v8276_v15 = vpop.eup %8275 }
0x1541   : > { %v3310_v18 = vmul.f32 %v8276_v15, %v3309_v46 }
0x1543   : > { %v3312_v35 = vadd.f32 %v3311_v59, %v3310_v18 }
0x1545   : > { %v3313_v33 = vpack.c.bf16 %v3312_v35, %v3312_v35  ;;  %v9646_v34 = vsel %vm3437_vm8, %v3312_v35, %v9425_v1  ;;  %v8076_v1 = vld [vmem:[%s10694_s3 + $0x60] ss:$20 sps:$4 sm:$0xff]  }
0x1546   : > { %v3441_v47 = vpack.c.bf16 %v9646_v34, %v9646_v34  ;;  %v8097_v35 = vld [vmem:[%s10693_s2 + $0x20] sm:$0xff]  }
0x1547   : > { %7530 = vmatmul.mubr.bf16.vlgmr.msra.gmra.mrb[52].mxu0 %v3313_v33  ;;  %v8099_v33 = vld [vmem:[%s10693_s2 + $0x30] sm:$0xff]  }
0x1548   : > { %3443 = vrot.lane.b32.xlu0 %v3441_v47, %s10725_s22  ;;  %7534 = vmatpush3.bf16.msra.mxu0 %v8068_v32  ;;  %v8098_v32 = vld [vmem:[%s10693_s2 + $0x28] sm:$0xff]   ;;  %v8100_v47 = vld [vmem:[%s10693_s2 + $0x38] sm:$0xff]  }
0x1549   : > { %7535 = vmatprep.subr.bf16.mxu0 %v8504_v5  ;;  %7541 = vmatprep.mubr.msk.bf16.mxu0 %vm8507_vm0, %v8504_v5 }
0x154c   : > { %7536 = vmatpush3.bf16.msra.mxu0 %v8072_v62  ;;  %v8101_v62 = vld [vmem:[#allocation2] sm:$0xff]  }
0x154d   : > { %7537 = vmatprep.subr.bf16.mxu0 %v8504_v5 }
0x1550   : > { %7538 = vmatpush3.bf16.msra.mxu0 %v8076_v1  ;;  %v8102_v1 = vld [vmem:[#allocation2 + $0x8] sm:$0xff]  }
0x1551   : > { %7539 = vmatprep.subr.bf16.mxu0 %v8504_v5 }
0x1554   : > { %7540 = vmatpush3.bf16.msra.mxu0 %v8080_v63 }
0x1555   : > { %7565 = vmatprep.subr.bf16.mxu0 %v8504_v5 }
0x15ba   : > { %v3444_v31 = vpop.permute.xlu0 %3443 }
0x15bb   : > { %v3447_v49 = vsel %vm412_vm1, %v6799_v45, %v3444_v31 }
0x15bc   : > { %6820 = vmatmul.mubr.msk.bf16.vlgmr.msra.gmra.mrb[56].mxu1 %vm571_vm2, %v3447_v49  ;;  %7542 = vmatmul.mubr.msk.bf16.vlgmr.msra.gmra.mrb[56].mxu0 %vm571_vm2, %v3447_v49 }
0x15bd   : > { %3647 = vmatpush1.bf16.msra.mxu1 %v9670_v48  ;;  %3678 = vmatprep.mubr.bf16.mxu1 %v8506_v11 }
0x15be   : > { %3648 = vmatprep.subr.bf16.mxu1 %v9675_v40  ;;  %7569 = vmatprep.mubr.msk.bf16.mxu0 %vm8507_vm0, %v8504_v5 }
0x15bf   : > { %7566 = vmatpush3.bf16.msra.mxu0 %v8101_v62 }
0x15c0   : > { %7567 = vmatprep.subr.bf16.mxu0 %v8504_v5 }
0x15c1   : > { %3649 = vmatpush1.bf16.msra.mxu1 %v9684_v51 }
0x15c2   : > { %3650 = vmatprep.subr.bf16.mxu1 %v9691_v54 }
0x15c3   : > { %7568 = vmatpush3.bf16.msra.mxu0 %v8102_v1 }
0x15c5   : > { %3651 = vmatpush1.bf16.msra.mxu1 %v9699_v55 }
0x15c6   : > { %3652 = vmatprep.subr.bf16.mxu1 %v9705_v24 }
0x15c9   : > { %3653 = vmatpush1.bf16.msra.mxu1 %v9711_v26 }
0x15ca   : > { %7545 = vmatprep.subr.bf16.mxu1 %v8504_v5 }
0x15cc   : > { %6821 = vmatmul.mubr.msk.bf16.vlgmr.msra.gmra.mrb[60].mxu1 %vm571_vm2, %v3447_v49 }
0x15cd   : > { %7561 = vmatprep.mubr.msk.bf16.mxu1 %vm8507_vm0, %v8504_v5  ;;  %7546 = vmatpush3.bf16.msra.mxu1 %v8093_v8 }
0x15ce   : > { %7547 = vmatprep.subr.bf16.mxu1 %v8504_v5 }
0x15d1   : > { %7548 = vmatpush3.bf16.msra.mxu1 %v8094_v37 }
0x15d2   : > { %7549 = vmatprep.subr.bf16.mxu1 %v8504_v5 }
0x15d5   : > { %7550 = vmatpush3.bf16.msra.mxu1 %v8095_v57 }
0x15d6   : > { %7551 = vmatprep.subr.bf16.mxu1 %v8504_v5 }
0x15d9   : > { %7552 = vmatpush3.bf16.msra.mxu1 %v8096_v39 }
0x15da   : > { %7553 = vmatprep.subr.bf16.mxu1 %v8504_v5 }
0x15dd   : > { %7554 = vmatpush3.bf16.msra.mxu1 %v8097_v35 }
0x15de   : > { %7555 = vmatprep.subr.bf16.mxu1 %v8504_v5 }
0x15e1   : > { %7556 = vmatpush3.bf16.msra.mxu1 %v8098_v32  ;;  %v3589_v32 = vrot.slane %v9724_v10, %v8949_v53 }
0x15e2   : > { %7557 = vmatprep.subr.bf16.mxu1 %v8504_v5 }
0x15e5   : > { %7558 = vmatpush3.bf16.msra.mxu1 %v8099_v33 }
0x15e6   : > { %7559 = vmatprep.subr.bf16.mxu1 %v8504_v5 }
0x15e9   : > { %7560 = vmatpush3.bf16.msra.mxu1 %v8100_v47 }
0x15ea   : > { %7581 = vmatprep.subr.bf16.mxu1 %v8504_v5 }
0x161a   : > { %v9719_v27 = vpop.f32.mrb[52].mxu0 }
0x161b   : > { %v7531_v0 = vpop.f32.mrb[53].mxu0 }
0x161c   : > { %v3416_v2 = vpop.f32.mrb[54].mxu0  ;;  %v9777_v0 = vld [vmem:[%s10697_s6 + $0x4] ss:$12 sps:$4 sm:$0xff]  }
0x161d   : > { %v7532_v3 = vpop.f32.mrb[55].mxu0  ;;  %3967 = vmatprep.subr.bf16.mxu0 %v9777_v0 }
0x161e   : > { %v9783_v3 = vld [vmem:[%s10697_s6] ss:$12 sps:$4 sm:$0xff]  }
0x168f   : > { %v3639_v12 = vpop.f32.mrb[56].mxu1 }
0x1690   : > { %v3640_v4 = vadd.f32 %v3639_v12, %v3581_v42  ;;  %v9728_v17 = vpop.f32.mrb[57].mxu1 }
0x1691   : > { %v3643_v20 = vpop.f32.mrb[58].mxu1 }
0x1692   : > { %v3644_v13 = vpop.f32.mrb[59].mxu1  ;;  %v3727_v14 = vsel %vm696_vm3, %v3640_v4, -inf }
0x1693   : > { %3728 = vmax.xlane.f32.xlu1 %v3727_v14  ;;  %v9791_v13 = vld [vmem:[%s10697_s6 + $0x1c] ss:$12 sps:$4 sm:$0xff]   ;;  %v9796_v14 = vld [vmem:[%s10697_s6 + $0x18] ss:$12 sps:$4 sm:$0xff]  }
0x169f   : > { %v9731_v56 = vpop.f32.mrb[60].mxu1 }
0x16a0   : > { %v9733_v7 = vpop.f32.mrb[61].mxu1 }
0x16a1   : > { %v3684_v61 = vpop.f32.mrb[62].mxu1 }
0x16a2   : > { %v3685_v6 = vpop.f32.mrb[63].mxu1  ;;  %v3597_v61 = vrot.slane %v9724_v10, %v8870_v9 }
0x1720   : > { %v3729_v46 = vpop.xlane.xlu1 %3728 }
0x1721   : > { %v3730_v58 = vsub.f32 %v3640_v4, %v3729_v46 }
0x1723   : > { %v3731_v15 = vmul.f32 1.442695, %v3730_v58  ;;  %v8109_v58 = vld [vmem:[%s10697_s6 + $0x8] ss:$12 sps:$4 sm:$0xff]  }
0x1725   : > { %8277 = vpow2.f32 %v3731_v15 }
0x172f   : > { %v8278_v18 = vpop.eup %8277 }
0x1730   : > { %v3733_v59 = vsel %vm696_vm3, %v8278_v18, 0.0 }
0x1731   : > { %3734 = vadd.xlane.f32.xlu0 %v3733_v59  ;;  %v3585_v59 = vrot.slane %v9724_v10, %v8946_v52 }
0x1733   : > { %v3642_v62 = vadd.f32 %v9728_v17, %v3585_v59 }
0x17be   : > { %v3735_v63 = vpop.xlane.xlu0 %3734 }
0x17bf   : > { %8279 = vrcp.f32 %v3735_v63 }
0x17c9   : > { %v8280_v45 = vpop.eup %8279 }
0x17ca   : > { %v3737_v31 = vmul.f32 %v8280_v45, %v8278_v18  ;;  %v8110_v18 = vld [vmem:[%s10697_s6 + $0x20] ss:$12 sps:$4 sm:$0xff]   ;;  %v3681_v45 = vadd.f32 %v9731_v56, %v3589_v32  ;;  %v3593_v56 = vrot.slane %v9724_v10, %v8963_v22 }
0x17cc   : > { %6823 = vst.msk [vmem:[%s8670_s14 + $0x8] sm:$0x1] %vm8833_vm4, %v3737_v31  ;;  %v3740_v49 = vpack.c.bf16 %v3737_v31, %v3737_v31 }
0x17ce   : > { %7562 = vmatmul.mubr.bf16.vlgmr.msra.gmra.mrb[64].mxu1 %v3740_v49 }
0x17cf   : > { %7597 = vmatprep.mubr.msk.bf16.mxu1 %vm8507_vm0, %v8504_v5 }
0x18a1   : > { %v3839_v2 = vpop.f32.mrb[64].mxu1 }
0x18a2   : > { %v3845_v42 = vpack.c.bf16 %v3839_v2, %v3839_v2  ;;  %v7563_v12 = vpop.f32.mrb[65].mxu1 }
0x18a3   : > { %v3842_v4 = vpop.f32.mrb[66].mxu1 }
0x18a4   : > { %v7564_v20 = vpop.f32.mrb[67].mxu1  ;;  %7570 = vmatmul.mubr.msk.bf16.vlgmr.msra.gmra.mrb[56].mxu0 %vm412_vm1, %v3845_v42 }
0x18a5   : > { %3968 = vmatpush1.bf16.msra.mxu0 %v9783_v3  ;;  %3999 = vmatprep.mubr.bf16.mxu0 %v8506_v11 }
0x18a6   : > { %3969 = vmatprep.subr.bf16.mxu0 %v9791_v13 }
0x18a9   : > { %3970 = vmatpush1.bf16.msra.mxu0 %v9796_v14 }
0x18aa   : > { %7573 = vmatprep.subr.bf16.mxu0 %v8504_v5 }
0x1977   : > { %v3899_v6 = vpop.f32.mrb[56].mxu0 }
0x1978   : > { %v7809_v8 = vadd.f32 %v3899_v6, %v3597_v61  ;;  %v7571_v37 = vpop.f32.mrb[57].mxu0 }
0x1979   : > { %v3902_v57 = vpop.f32.mrb[58].mxu0 }
0x197a   : > { %v3905_v39 = vmax.f32 %v7809_v8, 0.0  ;;  %v7572_v46 = vpop.f32.mrb[59].mxu0 }
0x197c   : > { %v3906_v15 = vpack.c.bf16 %v3905_v39, %v3905_v39 }
0x197e   : > { %6841 = vmatmul.mubr.msk.bf16.vlgmr.msra.gmra.mrb[60].mxu0 %vm412_vm1, %v3906_v15 }
0x197f   : > { %7574 = vmatpush3.bf16.msra.mxu0 %v8109_v58  ;;  %7577 = vmatprep.mubr.msk.bf16.mxu0 %vm8507_vm0, %v8504_v5 }
0x1980   : > { %7575 = vmatprep.subr.bf16.mxu0 %v8504_v5 }
0x1983   : > { %7576 = vmatpush3.bf16.msra.mxu0 %v8110_v18 }
0x1984   : > { %4361 = vmatprep.subr.bf16.mxu0 %v9579_v25  ;;  %v8112_v25 = vld [vmem:[%s10699_s8 + $0x8] sm:$0xff]  }
0x1986   : > { %7578 = vmatmul.mubr.msk.bf16.vlgmr.msra.gmra.mrb[64].mxu0 %vm412_vm1, %v3906_v15  ;;  %v3683_v15 = vadd.f32 %v9733_v7, %v3593_v56  ;;  %v8119_v7 = vld [vmem:[%s10694_s3 + $0x10] ss:$20 sps:$4 sm:$0xff]  }
0x1987   : > { %4362 = vmatpush1.bf16.msra.mxu0 %v9574_v23  ;;  %4393 = vmatprep.mubr.bf16.mxu0 %v8506_v11  ;;  %v8111_v23 = vld [vmem:[%s10699_s8] sm:$0xff]  }
0x1988   : > { %4363 = vmatprep.subr.bf16.mxu0 %v9584_v50  ;;  %7582 = vmatpush3.bf16.msra.mxu1 %v8111_v23  ;;  %v8113_v50 = vld [vmem:[%s10699_s8 + $0x10] sm:$0xff]  }
0x1989   : > { %7583 = vmatprep.subr.bf16.mxu1 %v8504_v5 }
0x198b   : > { %4364 = vmatpush1.bf16.msra.mxu0 %v9591_v21  ;;  %v8114_v21 = vld [vmem:[%s10699_s8 + $0x18] sm:$0xff]  }
0x198c   : > { %4365 = vmatprep.subr.bf16.mxu0 %v9597_v38  ;;  %7584 = vmatpush3.bf16.msra.mxu1 %v8112_v25  ;;  %v8115_v38 = vld [vmem:[%s10699_s8 + $0x20] sm:$0xff]  }
0x198d   : > { %7585 = vmatprep.subr.bf16.mxu1 %v8504_v5 }
0x198f   : > { %4366 = vmatpush1.bf16.msra.mxu0 %v9603_v41  ;;  %v8116_v41 = vld [vmem:[%s10699_s8 + $0x28] sm:$0xff]  }
0x1990   : > { %4367 = vmatprep.subr.bf16.mxu0 %v9609_v43  ;;  %7586 = vmatpush3.bf16.msra.mxu1 %v8113_v50  ;;  %v8117_v43 = vld [vmem:[%s10699_s8 + $0x30] sm:$0xff]  }
0x1991   : > { %7587 = vmatprep.subr.bf16.mxu1 %v8504_v5 }
0x1993   : > { %4368 = vmatpush1.bf16.msra.mxu0 %v9615_v29  ;;  %v8118_v29 = vld [vmem:[%s10699_s8 + $0x38] sm:$0xff]  }
0x1994   : > { %4402 = vmatprep.subr.bf16.mxu0 %v9638_v44  ;;  %7588 = vmatpush3.bf16.msra.mxu1 %v8114_v21  ;;  %v3915_v44 = vld [vmem:[%s10698_s7] sm:$0x7] }
0x1995   : > { %7589 = vmatprep.subr.bf16.mxu1 %v8504_v5  ;;  %v3952_v35 = vrot.slane %v3915_v44, %v8782_v30  ;;  %v3956_v33 = vrot.slane %v3915_v44, %v8946_v52  ;;  %v3960_v58 = vrot.slane %v3915_v44, %v8949_v53 }
0x1998   : > { %7590 = vmatpush3.bf16.msra.mxu1 %v8115_v38 }
0x1999   : > { %7591 = vmatprep.subr.bf16.mxu1 %v8504_v5 }
0x199c   : > { %7592 = vmatpush3.bf16.msra.mxu1 %v8116_v41  ;;  %v4192_v41 = vstv %s4191_s25  ;;  %s6459_s25 = scalar_select %p6458_p8, 1, 0 }
0x199d   : > { %7593 = vmatprep.subr.bf16.mxu1 %v8504_v5  ;;  %vm4193_vm9 = vcmp.eq.s32.totalorder %v4192_v41, 1 }
0x19a0   : > { %7594 = vmatpush3.bf16.msra.mxu1 %v8117_v43 }
0x19a1   : > { %7595 = vmatprep.subr.bf16.mxu1 %v8504_v5 }
0x19a4   : > { %7596 = vmatpush3.bf16.msra.mxu1 %v8118_v29 }
0x19a5   : > { %7601 = vmatprep.subr.bf16.mxu1 %v8504_v5 }
0x1a51   : > { %v4001_v47 = vpop.f32.mrb[60].mxu0 }
0x1a52   : > { %v4002_v1 = vadd.f32 %v4001_v47, %v3952_v35  ;;  %v4003_v63 = vpop.f32.mrb[61].mxu0  ;;  %v8122_v47 = vld [vmem:[%s10694_s3 + $0x88] ss:$20 sps:$4 sm:$0xff]  }
0x1a53   : > { %v4004_v31 = vadd.f32 %v4003_v63, %v3956_v33  ;;  %v4005_v49 = vpop.f32.mrb[62].mxu0  ;;  %v8120_v33 = vld [vmem:[%s10694_s3 + $0x38] ss:$20 sps:$4 sm:$0xff]  }
0x1a54   : > { %v4048_v2 = vadd.f32 %v4002_v1, %v3642_v62  ;;  %v4006_v42 = vpop.f32.mrb[63].mxu0  ;;  %v6854_v62 = vld [vmem:[%s8668_s30 + $0x5] sm:$0x1] }
0x1a55   : > { %v4049_v12 = vadd.f32 %v4004_v31, %v3681_v45 }
0x1a56   : > { %v6843_v4 = vmul.f32 -1.442695, %v4048_v2 }
0x1a57   : > { %v6844_v6 = vmul.f32 -1.442695, %v4049_v12 }
0x1a58   : > { %8281 = vpow2.f32 %v6843_v4 }
0x1a59   : > { %v4042_v20 = vpop.f32.mrb[64].mxu0  ;;  %8283 = vpow2.f32 %v6844_v6  ;;  %v8123_v6 = vld [vmem:[%s10693_s2] sm:$0xff]  }
0x1a5a   : > { %v7579_v61 = vpop.f32.mrb[65].mxu0  ;;  %v4043_v23 = vadd.f32 %v4042_v20, %v3960_v58 }
0x1a5b   : > { %v4045_v8 = vpop.f32.mrb[66].mxu0 }
0x1a5c   : > { %v7580_v37 = vpop.f32.mrb[67].mxu0  ;;  %v8124_v8 = vld [vmem:[%s10693_s2 + $0x8] sm:$0xff]  }
0x1a5d   : > { %v8125_v37 = vld [vmem:[%s10693_s2 + $0x10] sm:$0xff]  }
0x1a62   : > { %v8282_v57 = vpop.eup %8281 }
0x1a63   : > { %v4056_v17 = vadd.f32 1.0, %v8282_v57  ;;  %v8284_v39 = vpop.eup %8283  ;;  %v8126_v57 = vld [vmem:[%s10693_s2 + $0x18] sm:$0xff]  }
0x1a64   : > { %v4057_v46 = vadd.f32 1.0, %v8284_v39 }
0x1a65   : > { %8285 = vrcp.f32 %v4056_v17 }
0x1a66   : > { %8287 = vrcp.f32 %v4057_v46 }
0x1a6f   : > { %v8286_v18 = vpop.eup %8285 }
0x1a70   : > { %v4062_v25 = vmul.f32 %v8286_v18, %v3683_v15  ;;  %v8288_v21 = vpop.eup %8287  ;;  %v8127_v15 = vld [vmem:[%s10693_s2 + $0x20] sm:$0xff]   ;;  %v8128_v18 = vld [vmem:[%s10693_s2 + $0x28] sm:$0xff]  }
0x1a71   : > { %v4065_v38 = vsub.f32 1.0, %v8288_v21  ;;  %v4067_v10 = vmul.f32 %v8288_v21, %v9646_v34  ;;  %v8132_v21 = vld [vmem:[#allocation2 + $0x8] sm:$0xff]  }
0x1a72   : > { %v4063_v50 = vadd.f32 %v4062_v25, %v4043_v23  ;;  %v8129_v23 = vld [vmem:[%s10693_s2 + $0x30] sm:$0xff]   ;;  %v8130_v25 = vld [vmem:[%s10693_s2 + $0x38] sm:$0xff]  }
0x1a74   : > { %8289 = vtanh.f32 %v4063_v50  ;;  %v8131_v50 = vld [vmem:[#allocation2] sm:$0xff]  }
0x1a7e   : > { %v8290_v43 = vpop.eup %8289 }
0x1a7f   : > { %v4066_v29 = vmul.f32 %v8290_v43, %v4065_v38 }
0x1a81   : > { %v4068_v44 = vadd.f32 %v4067_v10, %v4066_v29 }
0x1a83   : > { %v4069_v59 = vpack.c.bf16 %v4068_v44, %v4068_v44  ;;  %v9877_v35 = vsel %vm4193_vm9, %v4068_v44, %v9646_v34  ;;  %v8121_v34 = vld [vmem:[%s10694_s3 + $0x60] ss:$20 sps:$4 sm:$0xff]  }
0x1a84   : > { %v4197_v32 = vpack.c.bf16 %v9877_v35, %v9877_v35 }
0x1a85   : > { %7598 = vmatmul.mubr.bf16.vlgmr.msra.gmra.mrb[68].mxu1 %v4069_v59 }
0x1a86   : > { %4199 = vrot.lane.b32.xlu1 %v4197_v32, %s10725_s22  ;;  %7602 = vmatpush3.bf16.msra.mxu1 %v8119_v7 }
0x1a87   : > { %7603 = vmatprep.subr.bf16.mxu1 %v8504_v5  ;;  %7609 = vmatprep.mubr.msk.bf16.mxu1 %vm8507_vm0, %v8504_v5 }
0x1a8a   : > { %7604 = vmatpush3.bf16.msra.mxu1 %v8120_v33 }
0x1a8b   : > { %7605 = vmatprep.subr.bf16.mxu1 %v8504_v5 }
0x1a8e   : > { %7606 = vmatpush3.bf16.msra.mxu1 %v8121_v34 }
0x1a8f   : > { %7607 = vmatprep.subr.bf16.mxu1 %v8504_v5 }
0x1a92   : > { %7608 = vmatpush3.bf16.msra.mxu1 %v8122_v47 }
0x1a93   : > { %7633 = vmatprep.subr.bf16.mxu1 %v8504_v5 }
0x1af8   : > { %v4200_v1 = vpop.permute.xlu1 %4199 }
0x1af9   : > { %v4203_v63 = vsel %vm412_vm1, %v6854_v62, %v4200_v1 }
0x1afa   : > { %6875 = vmatmul.mubr.msk.bf16.vlgmr.msra.gmra.mrb[68].mxu0 %vm571_vm2, %v4203_v63  ;;  %7610 = vmatmul.mubr.msk.bf16.vlgmr.msra.gmra.mrb[72].mxu1 %vm571_vm2, %v4203_v63 }
0x1afb   : > { %4403 = vmatpush1.bf16.msra.mxu0 %v9670_v48  ;;  %4434 = vmatprep.mubr.bf16.mxu0 %v8506_v11 }
0x1afc   : > { %4404 = vmatprep.subr.bf16.mxu0 %v9675_v40  ;;  %7637 = vmatprep.mubr.msk.bf16.mxu1 %vm8507_vm0, %v8504_v5 }
0x1afd   : > { %7634 = vmatpush3.bf16.msra.mxu1 %v8131_v50 }
0x1afe   : > { %7635 = vmatprep.subr.bf16.mxu1 %v8504_v5 }
0x1aff   : > { %4405 = vmatpush1.bf16.msra.mxu0 %v9684_v51 }
0x1b00   : > { %4406 = vmatprep.subr.bf16.mxu0 %v9691_v54  ;;  %v9920_v54 = vld [vmem:[%s10695_s4] sm:$0x1f] }
0x1b01   : > { %7636 = vmatpush3.bf16.msra.mxu1 %v8132_v21 }
0x1b02   : > { %4723 = vmatprep.subr.bf16.mxu1 %v9777_v0  ;;  %v4353_v0 = vrot.slane %v9920_v54, %v8870_v9 }
0x1b03   : > { %4407 = vmatpush1.bf16.msra.mxu0 %v9699_v55  ;;  %v4337_v55 = vrot.slane %v9920_v54, %v8782_v30 }
0x1b04   : > { %4408 = vmatprep.subr.bf16.mxu0 %v9705_v24 }
0x1b07   : > { %4409 = vmatpush1.bf16.msra.mxu0 %v9711_v26 }
0x1b08   : > { %7613 = vmatprep.subr.bf16.mxu0 %v8504_v5 }
0x1b0a   : > { %6876 = vmatmul.mubr.msk.bf16.vlgmr.msra.gmra.mrb[72].mxu0 %vm571_vm2, %v4203_v63 }
0x1b0b   : > { %7629 = vmatprep.mubr.msk.bf16.mxu0 %vm8507_vm0, %v8504_v5  ;;  %7614 = vmatpush3.bf16.msra.mxu0 %v8123_v6  ;;  %v10043_v6 = vld [vmem:[%s10694_s3 + $0x28] ss:$20 sps:$4 sm:$0xff]  }
0x1b0c   : > { %7615 = vmatprep.subr.bf16.mxu0 %v8504_v5 }
0x1b0f   : > { %7616 = vmatpush3.bf16.msra.mxu0 %v8124_v8  ;;  %v10049_v8 = vld [vmem:[%s10694_s3 + $0x54] ss:$20 sps:$4 sm:$0xff]  }
0x1b10   : > { %7617 = vmatprep.subr.bf16.mxu0 %v8504_v5 }
0x1b13   : > { %7618 = vmatpush3.bf16.msra.mxu0 %v8125_v37  ;;  %v10055_v37 = vld [vmem:[%s10694_s3 + $0x50] ss:$20 sps:$4 sm:$0xff]  }
0x1b14   : > { %7619 = vmatprep.subr.bf16.mxu0 %v8504_v5 }
0x1b17   : > { %7620 = vmatpush3.bf16.msra.mxu0 %v8126_v57  ;;  %v10061_v57 = vld [vmem:[%s10694_s3 + $0x7c] ss:$20 sps:$4 sm:$0xff]  }
0x1b18   : > { %7621 = vmatprep.subr.bf16.mxu0 %v8504_v5 }
0x1b1b   : > { %7622 = vmatpush3.bf16.msra.mxu0 %v8127_v15 }
0x1b1c   : > { %7623 = vmatprep.subr.bf16.mxu0 %v8504_v5 }
0x1b1f   : > { %7624 = vmatpush3.bf16.msra.mxu0 %v8128_v18 }
0x1b20   : > { %7625 = vmatprep.subr.bf16.mxu0 %v8504_v5 }
0x1b23   : > { %7626 = vmatpush3.bf16.msra.mxu0 %v8129_v23 }
0x1b24   : > { %7627 = vmatprep.subr.bf16.mxu0 %v8504_v5 }
0x1b27   : > { %7628 = vmatpush3.bf16.msra.mxu0 %v8130_v25 }
0x1b28   : > { %7649 = vmatprep.subr.bf16.mxu0 %v8504_v5 }
0x1b58   : > { %v9915_v48 = vpop.f32.mrb[68].mxu1 }
0x1b59   : > { %v7599_v40 = vpop.f32.mrb[69].mxu1 }
0x1b5a   : > { %v4172_v45 = vpop.f32.mrb[70].mxu1 }
0x1b5b   : > { %v7600_v51 = vpop.f32.mrb[71].mxu1  ;;  %v8136_v45 = vld [vmem:[%s10699_s8 + $0x8] sm:$0xff]  }
0x1b5c   : > { %v8137_v51 = vld [vmem:[%s10699_s8 + $0x10] sm:$0xff]  }
0x1bcd   : > { %v4395_v24 = vpop.f32.mrb[68].mxu0 }
0x1bce   : > { %v4396_v26 = vadd.f32 %v4395_v24, %v4337_v55  ;;  %v9924_v31 = vpop.f32.mrb[69].mxu0  ;;  %v8138_v55 = vld [vmem:[%s10699_s8 + $0x18] sm:$0xff]   ;;  %v8139_v24 = vld [vmem:[%s10699_s8 + $0x20] sm:$0xff]  }
0x1bcf   : > { %v4399_v49 = vpop.f32.mrb[70].mxu0 }
0x1bd0   : > { %v4400_v2 = vpop.f32.mrb[71].mxu0  ;;  %v4483_v42 = vsel %vm696_vm3, %v4396_v26, -inf  ;;  %v8141_v49 = vld [vmem:[%s10699_s8 + $0x30] sm:$0xff]  }
0x1bd1   : > { %4484 = vmax.xlane.f32.xlu1 %v4483_v42  ;;  %v8142_v2 = vld [vmem:[%s10699_s8 + $0x38] sm:$0xff]   ;;  %v10026_v42 = vld [vmem:[%s10694_s3] ss:$20 sps:$4 sm:$0xff]  }
0x1bdd   : > { %v9927_v12 = vpop.f32.mrb[72].mxu0 }
0x1bde   : > { %v9929_v4 = vpop.f32.mrb[73].mxu0 }
0x1bdf   : > { %v4440_v20 = vpop.f32.mrb[74].mxu0 }
0x1be0   : > { %v4441_v61 = vpop.f32.mrb[75].mxu0  ;;  %v10031_v20 = vld [vmem:[%s10694_s3 + $0x4] ss:$20 sps:$4 sm:$0xff]  }
0x1be1   : > { %v10036_v61 = vld [vmem:[%s10694_s3 + $0x2c] ss:$20 sps:$4 sm:$0xff]  }
0x1c5e   : > { %v4485_v17 = vpop.xlane.xlu1 %4484 }
0x1c5f   : > { %v4486_v39 = vsub.f32 %v4396_v26, %v4485_v17  ;;  %v8140_v26 = vld [vmem:[%s10699_s8 + $0x28] sm:$0xff]  }
0x1c60   : > { %v10067_v17 = vld [vmem:[%s10694_s3 + $0x78] ss:$20 sps:$4 sm:$0xff]  }
0x1c61   : > { %v4487_v56 = vmul.f32 1.442695, %v4486_v39  ;;  %v4671_v39 = vld [vmem:[%s10698_s7] sm:$0x7] }
0x1c62   : > { %v4712_v15 = vrot.slane %v4671_v39, %v8946_v52 }
0x1c63   : > { %8291 = vpow2.f32 %v4487_v56  ;;  %v4341_v56 = vrot.slane %v9920_v54, %v8946_v52 }
0x1c65   : > { %v4398_v23 = vadd.f32 %v9924_v31, %v4341_v56 }
0x1c6d   : > { %v8292_v46 = vpop.eup %8291 }
0x1c6e   : > { %v4489_v58 = vsel %vm696_vm3, %v8292_v46, 0.0 }
0x1c6f   : > { %4490 = vadd.xlane.f32.xlu0 %v4489_v58  ;;  %v4345_v58 = vrot.slane %v9920_v54, %v8949_v53 }
0x1c71   : > { %v4437_v21 = vadd.f32 %v9927_v12, %v4345_v58  ;;  %v4349_v12 = vrot.slane %v9920_v54, %v8963_v22  ;;  %v8150_v58 = vld [vmem:[%s10694_s3 + $0x38] ss:$20 sps:$4 sm:$0xff]  }
0x1cfc   : > { %v4491_v38 = vpop.xlane.xlu0 %4490 }
0x1cfd   : > { %8293 = vrcp.f32 %v4491_v38 }
0x1d07   : > { %v8294_v41 = vpop.eup %8293 }
0x1d08   : > { %v4493_v43 = vmul.f32 %v8294_v41, %v8292_v46  ;;  %v4708_v46 = vrot.slane %v4671_v39, %v8782_v30 }
0x1d0a   : > { %6878 = vst.msk [vmem:[%s8670_s14 + $0xa] sm:$0x1] %vm8833_vm4, %v4493_v43  ;;  %v4496_v29 = vpack.c.bf16 %v4493_v43, %v4493_v43 }
0x1d0c   : > { %7630 = vmatmul.mubr.bf16.vlgmr.msra.gmra.mrb[76].mxu0 %v4496_v29 }
0x1d0d   : > { %7665 = vmatprep.mubr.msk.bf16.mxu0 %vm8507_vm0, %v8504_v5 }
0x1ddf   : > { %v4595_v10 = vpop.f32.mrb[76].mxu0 }
0x1de0   : > { %v4601_v44 = vpack.c.bf16 %v4595_v10, %v4595_v10  ;;  %v7631_v7 = vpop.f32.mrb[77].mxu0 }
0x1de1   : > { %v4598_v59 = vpop.f32.mrb[78].mxu0 }
0x1de2   : > { %v7632_v32 = vpop.f32.mrb[79].mxu0  ;;  %7638 = vmatmul.mubr.msk.bf16.vlgmr.msra.gmra.mrb[72].mxu1 %vm412_vm1, %v4601_v44 }
0x1de3   : > { %4724 = vmatpush1.bf16.msra.mxu1 %v9783_v3  ;;  %4755 = vmatprep.mubr.bf16.mxu1 %v8506_v11  ;;  %v8133_v3 = vld [vmem:[%s10697_s6 + $0x8] ss:$12 sps:$4 sm:$0xff]  }
0x1de4   : > { %4725 = vmatprep.subr.bf16.mxu1 %v9791_v13  ;;  %v8134_v13 = vld [vmem:[%s10697_s6 + $0x20] ss:$12 sps:$4 sm:$0xff]  }
0x1de7   : > { %4726 = vmatpush1.bf16.msra.mxu1 %v9796_v14  ;;  %v8135_v14 = vld [vmem:[%s10699_s8] sm:$0xff]  }
0x1de8   : > { %7641 = vmatprep.subr.bf16.mxu1 %v8504_v5  ;;  %7650 = vmatpush3.bf16.msra.mxu0 %v8135_v14 }
0x1de9   : > { %7651 = vmatprep.subr.bf16.mxu0 %v8504_v5 }
0x1dec   : > { %7652 = vmatpush3.bf16.msra.mxu0 %v8136_v45  ;;  %v10090_v45 = vld [vmem:[%s10694_s3 + $0xc] ss:$20 sps:$4 sm:$0xff]  }
0x1ded   : > { %7653 = vmatprep.subr.bf16.mxu0 %v8504_v5 }
0x1df0   : > { %7654 = vmatpush3.bf16.msra.mxu0 %v8137_v51 }
0x1df1   : > { %7655 = vmatprep.subr.bf16.mxu0 %v8504_v5 }
0x1df4   : > { %7656 = vmatpush3.bf16.msra.mxu0 %v8138_v55  ;;  %v4948_v55 = vstv %s4947_s24  ;;  %s5703_s24 = scalar_select %p5702_p7, 1, 0 }
0x1df5   : > { %7657 = vmatprep.subr.bf16.mxu0 %v8504_v5  ;;  %vm4949_vm10 = vcmp.eq.s32.totalorder %v4948_v55, 1  ;;  %v8174_v55 = vld [vmem:[%s10693_s2 + $0x18] sm:$0xff]  }
0x1df8   : > { %7658 = vmatpush3.bf16.msra.mxu0 %v8139_v24 }
0x1df9   : > { %7659 = vmatprep.subr.bf16.mxu0 %v8504_v5 }
0x1dfc   : > { %7660 = vmatpush3.bf16.msra.mxu0 %v8140_v26 }
0x1dfd   : > { %7661 = vmatprep.subr.bf16.mxu0 %v8504_v5 }
0x1e00   : > { %7662 = vmatpush3.bf16.msra.mxu0 %v8141_v49 }
0x1e01   : > { %7663 = vmatprep.subr.bf16.mxu0 %v8504_v5 }
0x1e04   : > { %7664 = vmatpush3.bf16.msra.mxu0 %v8142_v2  ;;  %v8146_v2 = vld [vmem:[%s10694_s3 + $0x10] ss:$20 sps:$4 sm:$0xff]  }
0x1e05   : > { %7669 = vmatprep.subr.bf16.mxu0 %v8504_v5 }
0x1eb5   : > { %v4655_v33 = vpop.f32.mrb[72].mxu1 }
0x1eb6   : > { %v7810_v34 = vadd.f32 %v4655_v33, %v4353_v0  ;;  %v7639_v47 = vpop.f32.mrb[73].mxu1 }
0x1eb7   : > { %v4658_v62 = vpop.f32.mrb[74].mxu1 }
0x1eb8   : > { %v4661_v1 = vmax.f32 %v7810_v34, 0.0  ;;  %v7640_v63 = vpop.f32.mrb[75].mxu1 }
0x1eb9   : > { %v4439_v63 = vadd.f32 %v9929_v4, %v4349_v12 }
0x1eba   : > { %v4662_v40 = vpack.c.bf16 %v4661_v1, %v4661_v1  ;;  %v4716_v1 = vrot.slane %v4671_v39, %v8949_v53 }
0x1ebc   : > { %6896 = vmatmul.mubr.msk.bf16.vlgmr.msra.gmra.mrb[76].mxu1 %vm412_vm1, %v4662_v40 }
0x1ebd   : > { %7642 = vmatpush3.bf16.msra.mxu1 %v8133_v3  ;;  %7645 = vmatprep.mubr.msk.bf16.mxu1 %vm8507_vm0, %v8504_v5 }
0x1ebe   : > { %7643 = vmatprep.subr.bf16.mxu1 %v8504_v5 }
0x1ec1   : > { %7644 = vmatpush3.bf16.msra.mxu1 %v8134_v13 }
0x1ec2   : > { %5117 = vmatprep.subr.bf16.mxu1 %v10031_v20 }
0x1ec4   : > { %7646 = vmatmul.mubr.msk.bf16.vlgmr.msra.gmra.mrb[80].mxu1 %vm412_vm1, %v4662_v40 }
0x1ec5   : > { %5149 = vmatprep.mubr.bf16.mxu1 %v8506_v11  ;;  %5118 = vmatpush1.bf16.msra.mxu1 %v10026_v42 }
0x1ec6   : > { %5119 = vmatprep.subr.bf16.mxu1 %v10036_v61 }
0x1ec9   : > { %5120 = vmatpush1.bf16.msra.mxu1 %v10043_v6 }
0x1eca   : > { %5121 = vmatprep.subr.bf16.mxu1 %v10049_v8 }
0x1ecd   : > { %5122 = vmatpush1.bf16.msra.mxu1 %v10055_v37 }
0x1ece   : > { %5123 = vmatprep.subr.bf16.mxu1 %v10061_v57 }
0x1ed1   : > { %5124 = vmatpush1.bf16.msra.mxu1 %v10067_v17 }
0x1ed2   : > { %5158 = vmatprep.subr.bf16.mxu1 %v10090_v45 }
0x1f8f   : > { %v4757_v18 = vpop.f32.mrb[76].mxu1 }
0x1f90   : > { %v4758_v25 = vadd.f32 %v4757_v18, %v4708_v46  ;;  %v4759_v50 = vpop.f32.mrb[77].mxu1  ;;  %v6909_v18 = vld [vmem:[%s8668_s30 + $0x6] sm:$0x1] }
0x1f91   : > { %v4760_v38 = vadd.f32 %v4759_v50, %v4712_v15  ;;  %v4761_v41 = vpop.f32.mrb[78].mxu1  ;;  %v8158_v15 = vld [vmem:[%s10694_s3 + $0x88] ss:$20 sps:$4 sm:$0xff]  }
0x1f92   : > { %v4804_v43 = vadd.f32 %v4758_v25, %v4398_v23  ;;  %v4762_v29 = vpop.f32.mrb[79].mxu1  ;;  %v10122_v23 = vld [vmem:[%s10694_s3 + $0x8] ss:$20 sps:$4 sm:$0xff]  }
0x1f93   : > { %v4805_v10 = vadd.f32 %v4760_v38, %v4437_v21  ;;  %v10127_v50 = vld [vmem:[%s10694_s3 + $0x34] ss:$20 sps:$4 sm:$0xff]   ;;  %v10136_v38 = vld [vmem:[%s10694_s3 + $0x30] ss:$20 sps:$4 sm:$0xff]  }
0x1f94   : > { %v6898_v44 = vmul.f32 -1.442695, %v4804_v43  ;;  %v10143_v41 = vld [vmem:[%s10694_s3 + $0x5c] ss:$20 sps:$4 sm:$0xff]   ;;  %v10151_v43 = vld [vmem:[%s10694_s3 + $0x58] ss:$20 sps:$4 sm:$0xff]  }
0x1f95   : > { %v6899_v32 = vmul.f32 -1.442695, %v4805_v10  ;;  %v10157_v29 = vld [vmem:[%s10694_s3 + $0x84] ss:$20 sps:$4 sm:$0xff]   ;;  %v10163_v10 = vld [vmem:[%s10694_s3 + $0x80] ss:$20 sps:$4 sm:$0xff]  }
0x1f96   : > { %8295 = vpow2.f32 %v6898_v44 }
0x1f97   : > { %v4798_v7 = vpop.f32.mrb[80].mxu1  ;;  %8297 = vpow2.f32 %v6899_v32 }
0x1f98   : > { %v7647_v59 = vpop.f32.mrb[81].mxu1  ;;  %v4799_v40 = vadd.f32 %v4798_v7, %v4716_v1 }
0x1f99   : > { %v4801_v0 = vpop.f32.mrb[82].mxu1 }
0x1f9a   : > { %v7648_v33 = vpop.f32.mrb[83].mxu1  ;;  %v10176_v0 = vld [vmem:[%s10695_s4] sm:$0x1f] }
0x1f9b   : > { %v5093_v33 = vrot.slane %v10176_v0, %v8782_v30 }
0x1fa0   : > { %v8296_v34 = vpop.eup %8295 }
0x1fa1   : > { %v4812_v31 = vadd.f32 1.0, %v8296_v34  ;;  %v8298_v47 = vpop.eup %8297 }
0x1fa2   : > { %v4813_v62 = vadd.f32 1.0, %v8298_v47 }
0x1fa3   : > { %8299 = vrcp.f32 %v4812_v31 }
0x1fa4   : > { %8301 = vrcp.f32 %v4813_v62 }
0x1fad   : > { %v8300_v3 = vpop.eup %8299 }
0x1fae   : > { %v4818_v13 = vmul.f32 %v8300_v3, %v4439_v63  ;;  %v8302_v54 = vpop.eup %8301 }
0x1faf   : > { %v4821_v51 = vsub.f32 1.0, %v8302_v54  ;;  %v4823_v26 = vmul.f32 %v8302_v54, %v9877_v35  ;;  %v8172_v54 = vld [vmem:[%s10693_s2 + $0x8] sm:$0xff]  }
0x1fb0   : > { %v4819_v14 = vadd.f32 %v4818_v13, %v4799_v40 }
0x1fb2   : > { %8303 = vtanh.f32 %v4819_v14  ;;  %v8171_v14 = vld [vmem:[%s10693_s2] sm:$0xff]  }
0x1fbc   : > { %v8304_v4 = vpop.eup %8303 }
0x1fbd   : > { %v4822_v24 = vmul.f32 %v8304_v4, %v4821_v51  ;;  %v8173_v51 = vld [vmem:[%s10693_s2 + $0x10] sm:$0xff]  }
0x1fbf   : > { %v4824_v49 = vadd.f32 %v4823_v26, %v4822_v24 }
0x1fc1   : > { %v4825_v39 = vpack.c.bf16 %v4824_v49, %v4824_v49  ;;  %v10098_v56 = vsel %vm4949_vm10, %v4824_v49, %v9877_v35  ;;  %v8154_v35 = vld [vmem:[%s10694_s3 + $0x60] ss:$20 sps:$4 sm:$0xff]  }
0x1fc2   : > { %v4953_v46 = vpack.c.bf16 %v10098_v56, %v10098_v56 }
0x1fc3   : > { %7666 = vmatmul.mubr.bf16.vlgmr.msra.gmra.mrb[80].mxu0 %v4825_v39  ;;  %v8175_v39 = vld [vmem:[%s10693_s2 + $0x20] sm:$0xff]  }
0x1fc4   : > { %4955 = vrot.lane.b32.xlu0 %v4953_v46, %s10725_s22  ;;  %7670 = vmatpush3.bf16.msra.mxu0 %v8146_v2  ;;  %v8176_v46 = vld [vmem:[%s10693_s2 + $0x28] sm:$0xff]  }
0x1fc5   : > { %7671 = vmatprep.subr.bf16.mxu0 %v8504_v5  ;;  %7677 = vmatprep.mubr.msk.bf16.mxu0 %vm8507_vm0, %v8504_v5 }
0x1fc8   : > { %7672 = vmatpush3.bf16.msra.mxu0 %v8150_v58  ;;  %v8177_v58 = vld [vmem:[%s10693_s2 + $0x30] sm:$0xff]  }
0x1fc9   : > { %7673 = vmatprep.subr.bf16.mxu0 %v8504_v5 }
0x1fcc   : > { %7674 = vmatpush3.bf16.msra.mxu0 %v8154_v35  ;;  %v8178_v35 = vld [vmem:[%s10693_s2 + $0x38] sm:$0xff]  }
0x1fcd   : > { %7675 = vmatprep.subr.bf16.mxu0 %v8504_v5 }
0x1fd0   : > { %7676 = vmatpush3.bf16.msra.mxu0 %v8158_v15  ;;  %v8179_v15 = vld [vmem:[#allocation2] sm:$0xff]  }
0x1fd1   : > { %7701 = vmatprep.subr.bf16.mxu0 %v8504_v5 }
0x2036   : > { %v4956_v25 = vpop.permute.xlu0 %4955 }
0x2037   : > { %v4959_v21 = vsel %vm412_vm1, %v6909_v18, %v4956_v25  ;;  %v8180_v18 = vld [vmem:[#allocation2 + $0x8] sm:$0xff]  }
0x2038   : > { %6930 = vmatmul.mubr.msk.bf16.vlgmr.msra.gmra.mrb[84].mxu1 %vm571_vm2, %v4959_v21  ;;  %7678 = vmatmul.mubr.msk.bf16.vlgmr.msra.gmra.mrb[84].mxu0 %vm571_vm2, %v4959_v21 }
0x2039   : > { %5159 = vmatpush1.bf16.msra.mxu1 %v10122_v23  ;;  %5190 = vmatprep.mubr.bf16.mxu1 %v8506_v11 }
0x203a   : > { %5160 = vmatprep.subr.bf16.mxu1 %v10127_v50  ;;  %7705 = vmatprep.mubr.msk.bf16.mxu0 %vm8507_vm0, %v8504_v5 }
0x203b   : > { %7702 = vmatpush3.bf16.msra.mxu0 %v8179_v15 }
0x203c   : > { %7703 = vmatprep.subr.bf16.mxu0 %v8504_v5 }
0x203d   : > { %5161 = vmatpush1.bf16.msra.mxu1 %v10136_v38 }
0x203e   : > { %5162 = vmatprep.subr.bf16.mxu1 %v10143_v41 }
0x203f   : > { %7704 = vmatpush3.bf16.msra.mxu0 %v8180_v18 }
0x2041   : > { %5163 = vmatpush1.bf16.msra.mxu1 %v10151_v43 }
0x2042   : > { %5164 = vmatprep.subr.bf16.mxu1 %v10157_v29 }
0x2045   : > { %5165 = vmatpush1.bf16.msra.mxu1 %v10163_v10 }
0x2046   : > { %7681 = vmatprep.subr.bf16.mxu1 %v8504_v5 }
0x2048   : > { %6931 = vmatmul.mubr.msk.bf16.vlgmr.msra.gmra.mrb[88].mxu1 %vm571_vm2, %v4959_v21 }
0x2049   : > { %7697 = vmatprep.mubr.msk.bf16.mxu1 %vm8507_vm0, %v8504_v5  ;;  %7682 = vmatpush3.bf16.msra.mxu1 %v8171_v14  ;;  %v5109_v14 = vrot.slane %v10176_v0, %v8870_v9 }
0x204a   : > { %7683 = vmatprep.subr.bf16.mxu1 %v8504_v5 }
0x204d   : > { %7684 = vmatpush3.bf16.msra.mxu1 %v8172_v54 }
0x204e   : > { %7685 = vmatprep.subr.bf16.mxu1 %v8504_v5 }
0x2051   : > { %7686 = vmatpush3.bf16.msra.mxu1 %v8173_v51 }
0x2052   : > { %7687 = vmatprep.subr.bf16.mxu1 %v8504_v5 }
0x2055   : > { %7688 = vmatpush3.bf16.msra.mxu1 %v8174_v55 }
0x2056   : > { %7689 = vmatprep.subr.bf16.mxu1 %v8504_v5 }
0x2059   : > { %7690 = vmatpush3.bf16.msra.mxu1 %v8175_v39  ;;  %v8188_v39 = vld [vmem:[%s10697_s6 + $0x20] ss:$12 sps:$4 sm:$0xff]  }
0x205a   : > { %7691 = vmatprep.subr.bf16.mxu1 %v8504_v5 }
0x205d   : > { %7692 = vmatpush3.bf16.msra.mxu1 %v8176_v46  ;;  %v5097_v46 = vrot.slane %v10176_v0, %v8946_v52 }
0x205e   : > { %7693 = vmatprep.subr.bf16.mxu1 %v8504_v5 }
0x2061   : > { %7694 = vmatpush3.bf16.msra.mxu1 %v8177_v58 }
0x2062   : > { %7695 = vmatprep.subr.bf16.mxu1 %v8504_v5 }
0x2065   : > { %7696 = vmatpush3.bf16.msra.mxu1 %v8178_v35  ;;  %v5101_v35 = vrot.slane %v10176_v0, %v8949_v53 }
0x2066   : > { %7717 = vmatprep.subr.bf16.mxu1 %v8504_v5 }
0x2096   : > { %v10171_v44 = vpop.f32.mrb[80].mxu0 }
0x2097   : > { %v7667_v7 = vpop.f32.mrb[81].mxu0 }
0x2098   : > { %v4928_v59 = vpop.f32.mrb[82].mxu0 }
0x2099   : > { %v7668_v32 = vpop.f32.mrb[83].mxu0 }
0x209a   : > { %v10229_v32 = vld [vmem:[%s10697_s6 + $0x4] ss:$12 sps:$4 sm:$0xff]  }
0x209b   : > { %5479 = vmatprep.subr.bf16.mxu0 %v10229_v32 }
0x210b   : > { %v5151_v34 = vpop.f32.mrb[84].mxu1 }
0x210c   : > { %v5152_v31 = vadd.f32 %v5151_v34, %v5093_v33  ;;  %v10180_v47 = vpop.f32.mrb[85].mxu1  ;;  %v10235_v34 = vld [vmem:[%s10697_s6] ss:$12 sps:$4 sm:$0xff]  }
0x210d   : > { %v5155_v12 = vpop.f32.mrb[86].mxu1 }
0x210e   : > { %v5156_v62 = vpop.f32.mrb[87].mxu1  ;;  %v5239_v1 = vsel %vm696_vm3, %v5152_v31, -inf }
0x210f   : > { %5240 = vmax.xlane.f32.xlu1 %v5239_v1 }
0x211b   : > { %v10183_v63 = vpop.f32.mrb[88].mxu1 }
0x211c   : > { %v10185_v3 = vpop.f32.mrb[89].mxu1 }
0x211d   : > { %v5196_v40 = vpop.f32.mrb[90].mxu1 }
0x211e   : > { %v5197_v13 = vpop.f32.mrb[91].mxu1  ;;  %v10243_v40 = vld [vmem:[%s10697_s6 + $0x1c] ss:$12 sps:$4 sm:$0xff]  }
0x211f   : > { %v10248_v13 = vld [vmem:[%s10697_s6 + $0x18] ss:$12 sps:$4 sm:$0xff]  }
0x219c   : > { %v5241_v4 = vpop.xlane.xlu1 %5240 }
0x219d   : > { %v5242_v24 = vsub.f32 %v5152_v31, %v5241_v4 }
0x219f   : > { %v5243_v26 = vmul.f32 1.442695, %v5242_v24 }
0x21a1   : > { %8305 = vpow2.f32 %v5243_v26 }
0x21ab   : > { %v8306_v49 = vpop.eup %8305 }
0x21ac   : > { %v5245_v2 = vsel %vm696_vm3, %v8306_v49, 0.0 }
0x21ad   : > { %5246 = vadd.xlane.f32.xlu0 %v5245_v2 }
0x223a   : > { %v5247_v25 = vpop.xlane.xlu0 %5246 }
0x223b   : > { %8307 = vrcp.f32 %v5247_v25  ;;  %v5154_v25 = vadd.f32 %v10180_v47, %v5097_v46 }
0x2245   : > { %v8308_v21 = vpop.eup %8307 }
0x2246   : > { %v5249_v7 = vmul.f32 %v8308_v21, %v8306_v49  ;;  %v8187_v49 = vld [vmem:[%s10697_s6 + $0x8] ss:$12 sps:$4 sm:$0xff]  }
0x2248   : > { %6933 = vst.msk [vmem:[%s8670_s14 + $0xc] sm:$0x1] %vm8833_vm4, %v5249_v7  ;;  %v5252_v59 = vpack.c.bf16 %v5249_v7, %v5249_v7 }
0x224a   : > { %7698 = vmatmul.mubr.bf16.vlgmr.msra.gmra.mrb[92].mxu1 %v5252_v59  ;;  %v5193_v59 = vadd.f32 %v10183_v63, %v5101_v35  ;;  %v5105_v63 = vrot.slane %v10176_v0, %v8963_v22 }
0x224b   : > { %7733 = vmatprep.mubr.msk.bf16.mxu1 %vm8507_vm0, %v8504_v5 }
0x231d   : > { %v5351_v33 = vpop.f32.mrb[92].mxu1 }
0x231e   : > { %v5357_v31 = vpack.c.bf16 %v5351_v33, %v5351_v33  ;;  %v7699_v12 = vpop.f32.mrb[93].mxu1 }
0x231f   : > { %v5354_v62 = vpop.f32.mrb[94].mxu1 }
0x2320   : > { %v7700_v1 = vpop.f32.mrb[95].mxu1  ;;  %7706 = vmatmul.mubr.msk.bf16.vlgmr.msra.gmra.mrb[84].mxu0 %vm412_vm1, %v5357_v31 }
0x2321   : > { %5480 = vmatpush1.bf16.msra.mxu0 %v10235_v34  ;;  %5511 = vmatprep.mubr.bf16.mxu0 %v8506_v11 }
0x2322   : > { %5481 = vmatprep.subr.bf16.mxu0 %v10243_v40 }
0x2325   : > { %5482 = vmatpush1.bf16.msra.mxu0 %v10248_v13 }
0x2326   : > { %7709 = vmatprep.subr.bf16.mxu0 %v8504_v5 }
0x23f3   : > { %v5411_v54 = vpop.f32.mrb[84].mxu0 }
0x23f4   : > { %v7811_v51 = vadd.f32 %v5411_v54, %v5109_v14  ;;  %v7707_v55 = vpop.f32.mrb[85].mxu0 }
0x23f5   : > { %v5414_v4 = vpop.f32.mrb[86].mxu0 }
0x23f6   : > { %v5417_v24 = vmax.f32 %v7811_v51, 0.0  ;;  %v7708_v26 = vpop.f32.mrb[87].mxu0 }
0x23f8   : > { %v5418_v2 = vpack.c.bf16 %v5417_v24, %v5417_v24 }
0x23fa   : > { %6951 = vmatmul.mubr.msk.bf16.vlgmr.msra.gmra.mrb[88].mxu0 %vm412_vm1, %v5418_v2 }
0x23fb   : > { %7710 = vmatpush3.bf16.msra.mxu0 %v8187_v49  ;;  %7713 = vmatprep.mubr.msk.bf16.mxu0 %vm8507_vm0, %v8504_v5 }
0x23fc   : > { %7711 = vmatprep.subr.bf16.mxu0 %v8504_v5 }
0x23ff   : > { %7712 = vmatpush3.bf16.msra.mxu0 %v8188_v39 }
0x2400   : > { %5873 = vmatprep.subr.bf16.mxu0 %v10031_v20  ;;  %v8190_v20 = vld [vmem:[%s10699_s8 + $0x8] sm:$0xff]  }
0x2402   : > { %7714 = vmatmul.mubr.msk.bf16.vlgmr.msra.gmra.mrb[92].mxu0 %vm412_vm1, %v5418_v2 }
0x2403   : > { %5874 = vmatpush1.bf16.msra.mxu0 %v10026_v42  ;;  %5905 = vmatprep.mubr.bf16.mxu0 %v8506_v11  ;;  %v8189_v42 = vld [vmem:[%s10699_s8] sm:$0xff]  }
0x2404   : > { %5875 = vmatprep.subr.bf16.mxu0 %v10036_v61  ;;  %7718 = vmatpush3.bf16.msra.mxu1 %v8189_v42  ;;  %v8191_v61 = vld [vmem:[%s10699_s8 + $0x10] sm:$0xff]   ;;  %v5195_v42 = vadd.f32 %v10185_v3, %v5105_v63 }
0x2405   : > { %7719 = vmatprep.subr.bf16.mxu1 %v8504_v5  ;;  %v8197_v3 = vld [vmem:[%s10694_s3 + $0x10] ss:$20 sps:$4 sm:$0xff]  }
0x2406   : > { %v8203_v63 = vld [vmem:[%s10693_s2 + $0x10] sm:$0xff]  }
0x2407   : > { %5876 = vmatpush1.bf16.msra.mxu0 %v10043_v6  ;;  %v8192_v6 = vld [vmem:[%s10699_s8 + $0x18] sm:$0xff]  }
0x2408   : > { %5877 = vmatprep.subr.bf16.mxu0 %v10049_v8  ;;  %7720 = vmatpush3.bf16.msra.mxu1 %v8190_v20  ;;  %v8193_v8 = vld [vmem:[%s10699_s8 + $0x20] sm:$0xff]  }
0x2409   : > { %7721 = vmatprep.subr.bf16.mxu1 %v8504_v5 }
0x240b   : > { %5878 = vmatpush1.bf16.msra.mxu0 %v10055_v37  ;;  %v8194_v37 = vld [vmem:[%s10699_s8 + $0x28] sm:$0xff]  }
0x240c   : > { %5879 = vmatprep.subr.bf16.mxu0 %v10061_v57  ;;  %7722 = vmatpush3.bf16.msra.mxu1 %v8191_v61  ;;  %v8195_v57 = vld [vmem:[%s10699_s8 + $0x30] sm:$0xff]  }
0x240d   : > { %7723 = vmatprep.subr.bf16.mxu1 %v8504_v5 }
0x240f   : > { %5880 = vmatpush1.bf16.msra.mxu0 %v10067_v17  ;;  %v8196_v17 = vld [vmem:[%s10699_s8 + $0x38] sm:$0xff]  }
0x2410   : > { %5914 = vmatprep.subr.bf16.mxu0 %v10090_v45  ;;  %7724 = vmatpush3.bf16.msra.mxu1 %v8192_v6  ;;  %v5427_v45 = vld [vmem:[%s10698_s7] sm:$0x7] }
0x2411   : > { %7725 = vmatprep.subr.bf16.mxu1 %v8504_v5  ;;  %v5464_v58 = vrot.slane %v5427_v45, %v8782_v30  ;;  %v5468_v15 = vrot.slane %v5427_v45, %v8946_v52  ;;  %v5472_v39 = vrot.slane %v5427_v45, %v8949_v53 }
0x2414   : > { %7726 = vmatpush3.bf16.msra.mxu1 %v8193_v8 }
0x2415   : > { %7727 = vmatprep.subr.bf16.mxu1 %v8504_v5 }
0x2418   : > { %7728 = vmatpush3.bf16.msra.mxu1 %v8194_v37 }
0x2419   : > { %7729 = vmatprep.subr.bf16.mxu1 %v8504_v5 }
0x241c   : > { %7730 = vmatpush3.bf16.msra.mxu1 %v8195_v57 }
0x241d   : > { %7731 = vmatprep.subr.bf16.mxu1 %v8504_v5 }
0x2420   : > { %7732 = vmatpush3.bf16.msra.mxu1 %v8196_v17  ;;  %v5704_v17 = vstv %s5703_s24 }
0x2421   : > { %7737 = vmatprep.subr.bf16.mxu1 %v8504_v5  ;;  %vm5705_vm11 = vcmp.eq.s32.totalorder %v5704_v17, 1 }
0x24cd   : > { %v5513_v18 = vpop.f32.mrb[88].mxu0 }
0x24ce   : > { %v5514_v21 = vadd.f32 %v5513_v18, %v5464_v58  ;;  %v5515_v7 = vpop.f32.mrb[89].mxu0 }
0x24cf   : > { %v5516_v33 = vadd.f32 %v5515_v7, %v5468_v15  ;;  %v5517_v31 = vpop.f32.mrb[90].mxu0  ;;  %v6964_v7 = vld [vmem:[%s8668_s30 + $0x7] sm:$0x1]  ;;  %s8409_s30 = scalar_lea.vmem %s6494_s15, 32 }
0x24d0   : > { %v5560_v12 = vadd.f32 %v5514_v21, %v5154_v25  ;;  %v5518_v62 = vpop.f32.mrb[91].mxu0  ;;  %v8198_v25 = vld [vmem:[%s10694_s3 + $0x38] ss:$20 sps:$4 sm:$0xff]   ;;  %v8200_v21 = vld [vmem:[%s10694_s3 + $0x88] ss:$20 sps:$4 sm:$0xff]   ;;  %p8411_p6 = scmp.lt.s32.totalorder %s8409_s30, %s8403_s26 }
0x24d1   : > { %v5561_v1 = vadd.f32 %v5516_v33, %v5193_v59 }
0x24d2   : > { %v6953_v14 = vmul.f32 -1.442695, %v5560_v12  ;;  %p8412_p9 = por %p8411_p6, %p8410_p5 }
0x24d3   : > { %v6954_v55 = vmul.f32 -1.442695, %v5561_v1 }
0x24d4   : > { %8309 = vpow2.f32 %v6953_v14  ;;  %p8413_p10 = pnand %p8412_p9, %p8406_p2 }
0x24d5   : > { %v5554_v54 = vpop.f32.mrb[92].mxu0  ;;  %8311 = vpow2.f32 %v6954_v55 }
0x24d6   : > { %v7715_v51 = vpop.f32.mrb[93].mxu0  ;;  %v5555_v61 = vadd.f32 %v5554_v54, %v5472_v39 }
0x24d7   : > { %v5557_v4 = vpop.f32.mrb[94].mxu0 }
0x24d8   : > { %v7716_v24 = vpop.f32.mrb[95].mxu0 }
0x24de   : > { %v8310_v26 = vpop.eup %8309 }
0x24df   : > { %v5568_v47 = vadd.f32 1.0, %v8310_v26  ;;  %v8312_v49 = vpop.eup %8311 }
0x24e0   : > { %v5569_v2 = vadd.f32 1.0, %v8312_v49  ;;  %v8202_v49 = vld [vmem:[%s10693_s2 + $0x8] sm:$0xff]  }
0x24e1   : > { %8313 = vrcp.f32 %v5568_v47 }
0x24e2   : > { %8315 = vrcp.f32 %v5569_v2  ;;  %v8204_v2 = vld [vmem:[%s10693_s2 + $0x18] sm:$0xff]  }
0x24eb   : > { %v8314_v20 = vpop.eup %8313 }
0x24ec   : > { %v5574_v6 = vmul.f32 %v8314_v20, %v5195_v42  ;;  %v8316_v37 = vpop.eup %8315 }
0x24ed   : > { %v5577_v57 = vsub.f32 1.0, %v8316_v37  ;;  %v5579_v0 = vmul.f32 %v8316_v37, %v10098_v56 }
0x24ee   : > { %v5575_v8 = vadd.f32 %v5574_v6, %v5555_v61  ;;  %v1059_v61 = vld [vmem:[%s10700_s9] sm:$0x1] }
0x24f0   : > { %8317 = vtanh.f32 %v5575_v8  ;;  %v10411_v8 = vadd.f32 %v9011_v19, %v1059_v61 }
0x24fa   : > { %v8318_v46 = vpop.eup %8317 }
0x24fb   : > { %v5578_v58 = vmul.f32 %v8318_v46, %v5577_v57  ;;  %v1818_v57 = vld [vmem:[%s10700_s9] sm:$0x1]  ;;  %v1149_v46 = vsel %vm1148_vm12, %v10411_v8, -inf }
0x24fc   : > { %v10418_v17 = vadd.f32 %v9267_v36, %v1818_v57 }
0x24fd   : > { %v5580_v45 = vadd.f32 %v5579_v0, %v5578_v58  ;;  %v2574_v58 = vld [vmem:[%s10700_s9] sm:$0x1] }
0x24fe   : > { %v10426_v19 = vadd.f32 %v9463_v16, %v2574_v58  ;;  %v1907_v0 = vsel %vm1148_vm12, %v10418_v17, -inf  ;;  %v8205_v16 = vld [vmem:[%s10693_s2 + $0x20] sm:$0xff]   ;;  %v8210_v58 = vld [vmem:[#allocation2 + $0x8] sm:$0xff]  }
0x24ff   : > { %v5581_v35 = vpack.c.bf16 %v5580_v45, %v5580_v45  ;;  %v10329_v15 = vsel %vm5705_vm11, %v5580_v45, %v10098_v56  ;;  %v8199_v56 = vld [vmem:[%s10694_s3 + $0x60] ss:$20 sps:$4 sm:$0xff]  }
0x2500   : > { %v5709_v18 = vpack.c.bf16 %v10329_v15, %v10329_v15  ;;  %v3330_v45 = vld [vmem:[%s10700_s9] sm:$0x1] }
0x2501   : > { %7734 = vmatmul.mubr.bf16.vlgmr.msra.gmra.mrb[96].mxu1 %v5581_v35  ;;  %v10434_v36 = vadd.f32 %v9719_v27, %v3330_v45  ;;  %v4086_v35 = vld [vmem:[%s10700_s9] sm:$0x1] }
0x2502   : > { %5711 = vrot.lane.b32.xlu1 %v5709_v18, %s10725_s22  ;;  %7738 = vmatpush3.bf16.msra.mxu1 %v8197_v3  ;;  %v2663_v3 = vsel %vm1148_vm12, %v10426_v19, -inf  ;;  %v10445_v18 = vadd.f32 %v9915_v48, %v4086_v35  ;;  %v5598_v27 = vld [vmem:[%s10700_s9] sm:$0x1] }
0x2503   : > { %7739 = vmatprep.subr.bf16.mxu1 %v8504_v5  ;;  %7745 = vmatprep.mubr.msk.bf16.mxu1 %vm8507_vm0, %v8504_v5 }
0x2504   : > { %v4175_v48 = vsel %vm1148_vm12, %v10445_v18, -inf }
0x2506   : > { %7740 = vmatpush3.bf16.msra.mxu1 %v8198_v25  ;;  %v3419_v25 = vsel %vm1148_vm12, %v10434_v36, -inf }
0x2507   : > { %7741 = vmatprep.subr.bf16.mxu1 %v8504_v5 }
0x250a   : > { %7742 = vmatpush3.bf16.msra.mxu1 %v8199_v56  ;;  %v8206_v56 = vld [vmem:[%s10693_s2 + $0x28] sm:$0xff]  }
0x250b   : > { %7743 = vmatprep.subr.bf16.mxu1 %v8504_v5 }
0x250e   : > { %7744 = vmatpush3.bf16.msra.mxu1 %v8200_v21 }
0x250f   : > { %7769 = vmatprep.subr.bf16.mxu1 %v8504_v5 }
0x2574   : > { %v5712_v59 = vpop.permute.xlu1 %5711 }
0x2575   : > { %v5715_v33 = vsel %vm412_vm1, %v6964_v7, %v5712_v59  ;;  %v8207_v7 = vld [vmem:[%s10693_s2 + $0x30] sm:$0xff]  }
0x2576   : > { %6985 = vmatmul.mubr.msk.bf16.vlgmr.msra.gmra.mrb[96].mxu0 %vm571_vm2, %v5715_v33  ;;  %7746 = vmatmul.mubr.msk.bf16.vlgmr.msra.gmra.mrb[100].mxu1 %vm571_vm2, %v5715_v33 }
0x2577   : > { %5915 = vmatpush1.bf16.msra.mxu0 %v10122_v23  ;;  %5946 = vmatprep.mubr.bf16.mxu0 %v8506_v11 }
0x2578   : > { %5916 = vmatprep.subr.bf16.mxu0 %v10127_v50  ;;  %7773 = vmatprep.mubr.msk.bf16.mxu1 %vm8507_vm0, %v8504_v5 }
0x257b   : > { %5917 = vmatpush1.bf16.msra.mxu0 %v10136_v38 }
0x257c   : > { %5918 = vmatprep.subr.bf16.mxu0 %v10143_v41  ;;  %v10372_v41 = vld [vmem:[%s10695_s4] sm:$0x1f] }
0x257f   : > { %5919 = vmatpush1.bf16.msra.mxu0 %v10151_v43  ;;  %v5849_v43 = vrot.slane %v10372_v41, %v8782_v30 }
0x2580   : > { %5920 = vmatprep.subr.bf16.mxu0 %v10157_v29  ;;  %v4842_v29 = vld [vmem:[%s10700_s9] sm:$0x1] }
0x2581   : > { %v10382_v14 = vadd.f32 %v10171_v44, %v4842_v29  ;;  %v8201_v44 = vld [vmem:[%s10693_s2] sm:$0xff]  }
0x2583   : > { %5921 = vmatpush1.bf16.msra.mxu0 %v10163_v10  ;;  %v4931_v55 = vsel %vm1148_vm12, %v10382_v14, -inf }
0x2584   : > { %7749 = vmatprep.subr.bf16.mxu0 %v8504_v5 }
0x2586   : > { %6986 = vmatmul.mubr.msk.bf16.vlgmr.msra.gmra.mrb[100].mxu0 %vm571_vm2, %v5715_v33  ;;  %v8208_v33 = vld [vmem:[%s10693_s2 + $0x38] sm:$0xff]  }
0x2587   : > { %7765 = vmatprep.mubr.msk.bf16.mxu0 %vm8507_vm0, %v8504_v5  ;;  %7750 = vmatpush3.bf16.msra.mxu0 %v8201_v44 }
0x2588   : > { %7751 = vmatprep.subr.bf16.mxu0 %v8504_v5 }
0x258b   : > { %7752 = vmatpush3.bf16.msra.mxu0 %v8202_v49 }
0x258c   : > { %7753 = vmatprep.subr.bf16.mxu0 %v8504_v5 }
0x258f   : > { %7754 = vmatpush3.bf16.msra.mxu0 %v8203_v63 }
0x2590   : > { %7755 = vmatprep.subr.bf16.mxu0 %v8504_v5 }
0x2593   : > { %7756 = vmatpush3.bf16.msra.mxu0 %v8204_v2 }
0x2594   : > { %7757 = vmatprep.subr.bf16.mxu0 %v8504_v5 }
0x2597   : > { %7758 = vmatpush3.bf16.msra.mxu0 %v8205_v16 }
0x2598   : > { %7759 = vmatprep.subr.bf16.mxu0 %v8504_v5 }
0x259b   : > { %7760 = vmatpush3.bf16.msra.mxu0 %v8206_v56 }
0x259c   : > { %7761 = vmatprep.subr.bf16.mxu0 %v8504_v5 }
0x259f   : > { %7762 = vmatpush3.bf16.msra.mxu0 %v8207_v7 }
0x25a0   : > { %7763 = vmatprep.subr.bf16.mxu0 %v8504_v5 }
0x25a3   : > { %7764 = vmatpush3.bf16.msra.mxu0 %v8208_v33 }
0x25a4   : > { %7785 = vmatprep.subr.bf16.mxu0 %v8504_v5 }
0x25d4   : > { %v10367_v23 = vpop.f32.mrb[96].mxu1 }
0x25d5   : > { %v7735_v50 = vpop.f32.mrb[97].mxu1  ;;  %v10457_v21 = vadd.f32 %v10367_v23, %v5598_v27 }
0x25d6   : > { %v5684_v31 = vpop.f32.mrb[98].mxu1 }
0x25d7   : > { %v7736_v38 = vpop.f32.mrb[99].mxu1  ;;  %v5687_v59 = vsel %vm1148_vm12, %v10457_v21, -inf }
0x2649   : > { %v5907_v10 = vpop.f32.mrb[96].mxu0 }
0x264a   : > { %v5908_v12 = vadd.f32 %v5907_v10, %v5849_v43  ;;  %v10379_v62 = vpop.f32.mrb[97].mxu0 }
0x264b   : > { %v5911_v1 = vpop.f32.mrb[98].mxu0 }
0x264c   : > { %v5912_v54 = vpop.f32.mrb[99].mxu0  ;;  %v5995_v51 = vsel %vm696_vm3, %v5908_v12, -inf }
0x264d   : > { %5996 = vmax.xlane.f32.xlu1 %v5995_v51 }
0x2651   : > { %4932 = vmax.xlane.f32.xlu1 %v4931_v55 }
0x2659   : > { %v10387_v4 = vpop.f32.mrb[100].mxu0 }
0x265a   : > { %v10389_v24 = vpop.f32.mrb[101].mxu0 }
0x265b   : > { %v5952_v26 = vpop.f32.mrb[102].mxu0 }
0x265c   : > { %v5953_v47 = vpop.f32.mrb[103].mxu0 }
0x26da   : > { %v5997_v39 = vpop.xlane.xlu1 %5996 }
0x26db   : > { %v5998_v42 = vsub.f32 %v5908_v12, %v5997_v39 }
0x26dd   : > { %v5999_v20 = vmul.f32 1.442695, %v5998_v42 }
0x26df   : > { %8319 = vpow2.f32 %v5999_v20 }
0x26e9   : > { %v8320_v6 = vpop.eup %8319 }
0x26ea   : > { %v6001_v37 = vsel %vm696_vm3, %v8320_v6, 0.0 }
0x26eb   : > { %6002 = vadd.xlane.f32.xlu0 %v6001_v37 }
0x26ef   : > { %1150 = vmax.xlane.f32.xlu0 %v1149_v46  ;;  %v8209_v46 = vld [vmem:[#allocation2] sm:$0xff]  }
0x26f0   : > { %7770 = vmatpush3.bf16.msra.mxu1 %v8209_v46  ;;  %v5857_v46 = vrot.slane %v10372_v41, %v8949_v53 }
0x26f1   : > { %7771 = vmatprep.subr.bf16.mxu1 %v8504_v5 }
0x26f3   : > { %1908 = vmax.xlane.f32.xlu0 %v1907_v0 }
0x26f4   : > { %7772 = vmatpush3.bf16.msra.mxu1 %v8210_v58 }
0x26f5   : > { %6235 = vmatprep.subr.bf16.mxu1 %v10229_v32 }
0x26f7   : > { %2664 = vmax.xlane.f32.xlu0 %v2663_v3 }
0x26fb   : > { %3420 = vmax.xlane.f32.xlu0 %v3419_v25 }
0x26ff   : > { %4176 = vmax.xlane.f32.xlu0 %v4175_v48 }
0x2703   : > { %5688 = vmax.xlane.f32.xlu0 %v5687_v59 }
0x2778   : > { %v6003_v23 = vpop.xlane.xlu0 %6002 }
0x2779   : > { %8321 = vrcp.f32 %v6003_v23 }
0x277c   : > { %v1151_v50 = vpop.xlane.xlu0 %1150 }
0x277d   : > { %v1152_v31 = vsub.f32 %v10411_v8, %v1151_v50 }
0x277f   : > { %v1153_v38 = vmul.f32 1.442695, %v1152_v31 }
0x2780   : > { %v10473_v43 = vpop.xlane.xlu0 %1908 }
0x2781   : > { %8323 = vpow2.f32 %v1153_v38 }
0x2783   : > { %v8322_v29 = vpop.eup %8321 }
0x2784   : > { %v2665_v10 = vpop.xlane.xlu0 %2664  ;;  %v6005_v12 = vmul.f32 %v8322_v29, %v8320_v6 }
0x2785   : > { %v2666_v1 = vsub.f32 %v10426_v19, %v2665_v10 }
0x2786   : > { %6988 = vst.msk [vmem:[%s8670_s14 + $0xe] sm:$0x1] %vm8833_vm4, %v6005_v12  ;;  %v6008_v54 = vpack.c.bf16 %v6005_v12, %v6005_v12 }
0x2787   : > { %v2667_v51 = vmul.f32 1.442695, %v2666_v1 }
0x2788   : > { %7766 = vmatmul.mubr.bf16.vlgmr.msra.gmra.mrb[104].mxu0 %v6008_v54  ;;  %v10479_v55 = vpop.xlane.xlu0 %3420 }
0x2789   : > { %8325 = vpow2.f32 %v2667_v51  ;;  %7801 = vmatprep.mubr.msk.bf16.mxu0 %vm8507_vm0, %v8504_v5 }
0x278b   : > { %v8324_v26 = vpop.eup %8323 }
0x278c   : > { %v4177_v47 = vpop.xlane.xlu0 %4176  ;;  %v1155_v44 = vsel %vm1148_vm12, %v8324_v26, 0.0 }
0x278d   : > { %v4178_v49 = vsub.f32 %v10445_v18, %v4177_v47  ;;  %1156 = vadd.xlane.f32.xlu0 %v1155_v44 }
0x278f   : > { %v4179_v63 = vmul.f32 1.442695, %v4178_v49 }
0x2790   : > { %v5689_v2 = vpop.xlane.xlu0 %5688 }
0x2791   : > { %8327 = vpow2.f32 %v4179_v63  ;;  %v5690_v60 = vsub.f32 %v10457_v21, %v5689_v2 }
0x2793   : > { %v8326_v39 = vpop.eup %8325  ;;  %v5691_v42 = vmul.f32 1.442695, %v5690_v60  ;;  %v8216_v60 = vld [vmem:[%s10699_s8 + $0x18] sm:$0xff]  }
0x2794   : > { %v2669_v20 = vsel %vm1148_vm12, %v8326_v39, 0.0  ;;  %v8217_v39 = vld [vmem:[%s10699_s8 + $0x20] sm:$0xff]  }
0x2795   : > { %8329 = vpow2.f32 %v5691_v42  ;;  %2670 = vadd.xlane.f32.xlu0 %v2669_v20  ;;  %v8218_v42 = vld [vmem:[%s10699_s8 + $0x28] sm:$0xff]   ;;  %v8219_v20 = vld [vmem:[%s10699_s8 + $0x30] sm:$0xff]  }
0x279b   : > { %v8328_v61 = vpop.eup %8327 }
0x279c   : > { %v4181_v6 = vsel %vm1148_vm12, %v8328_v61, 0.0  ;;  %v8220_v61 = vld [vmem:[%s10699_s8 + $0x38] sm:$0xff]  }
0x279d   : > { %4182 = vadd.xlane.f32.xlu0 %v4181_v6  ;;  %v6183_v6 = vld [vmem:[%s10698_s7] sm:$0x7] }
0x279e   : > { %v6224_v58 = vrot.slane %v6183_v6, %v8946_v52 }
0x279f   : > { %v8330_v37 = vpop.eup %8329 }
0x27a0   : > { %v5693_v57 = vsel %vm1148_vm12, %v8330_v37, 0.0  ;;  %v5853_v37 = vrot.slane %v10372_v41, %v8946_v52 }
0x27a1   : > { %5694 = vadd.xlane.f32.xlu0 %v5693_v57  ;;  %v6220_v57 = vrot.slane %v6183_v6, %v8782_v30 }
0x281a   : > { %v1157_v0 = vpop.xlane.xlu0 %1156 }
0x281b   : > { %8331 = vlog2.f32 %v1157_v0 }
0x2822   : > { %v2671_v45 = vpop.xlane.xlu0 %2670 }
0x2823   : > { %8333 = vlog2.f32 %v2671_v45  ;;  %v5910_v45 = vadd.f32 %v10379_v62, %v5853_v37 }
0x2825   : > { %v8332_v3 = vpop.eup %8331 }
0x2826   : > { %v1159_v35 = vmul.f32 0.6931472, %v8332_v3 }
0x2828   : > { %v1160_v16 = vadd.f32 %v1159_v35, %v1151_v50  ;;  %v5949_v35 = vadd.f32 %v10387_v4, %v5857_v46  ;;  %v5861_v4 = vrot.slane %v10372_v41, %v8963_v22 }
0x282a   : > { %v1161_v27 = vsub.f32 %v10411_v8, %v1160_v16  ;;  %v4183_v56 = vpop.xlane.xlu0 %4182 }
0x282b   : > { %8335 = vlog2.f32 %v4183_v56 }
0x282c   : > { %1164 = vst.msk [vmem:[%s8670_s14 + $0x1] sm:$0x1] %vm10492_vm13, %v1161_v27 }
0x282d   : > { %v8334_v32 = vpop.eup %8333 }
0x282e   : > { %v2673_v48 = vmul.f32 0.6931472, %v8334_v32  ;;  %v5695_v7 = vpop.xlane.xlu0 %5694 }
0x282f   : > { %8337 = vlog2.f32 %v5695_v7 }
0x2830   : > { %v2674_v59 = vadd.f32 %v2673_v48, %v2665_v10 }
0x2832   : > { %v2675_v33 = vsub.f32 %v10426_v19, %v2674_v59 }
0x2834   : > { %6743 = vst.msk [vmem:[%s8670_s14 + $0x5] sm:$0x1] %vm10492_vm13, %v2675_v33 }
0x2835   : > { %v8336_v28 = vpop.eup %8335 }
0x2836   : > { %v4185_v23 = vmul.f32 0.6931472, %v8336_v28 }
0x2838   : > { %v4186_v8 = vadd.f32 %v4185_v23, %v4177_v47 }
0x2839   : > { %v8338_v50 = vpop.eup %8337 }
0x283a   : > { %v4187_v31 = vsub.f32 %v10445_v18, %v4186_v8  ;;  %v5697_v38 = vmul.f32 0.6931472, %v8338_v50  ;;  %v5865_v18 = vrot.slane %v10372_v41, %v8870_v9  ;;  %v8213_v9 = vld [vmem:[%s10699_s8] sm:$0xff]  }
0x283b   : > { %7786 = vmatpush3.bf16.msra.mxu0 %v8213_v9 }
0x283c   : > { %6853 = vst.msk [vmem:[%s8670_s14 + $0x9] sm:$0x1] %vm10492_vm13, %v4187_v31  ;;  %v5698_v29 = vadd.f32 %v5697_v38, %v5689_v2  ;;  %7787 = vmatprep.subr.bf16.mxu0 %v8504_v5  ;;  %v8215_v2 = vld [vmem:[%s10699_s8 + $0x10] sm:$0xff]   ;;  %v6228_v31 = vrot.slane %v6183_v6, %v8949_v53  ;;  %v5951_v38 = vadd.f32 %v10389_v24, %v5861_v4 }
0x283e   : > { %v5699_v12 = vsub.f32 %v10457_v21, %v5698_v29 }
0x2840   : > { %6963 = vst.msk [vmem:[%s8670_s14 + $0xd] sm:$0x1] %vm10492_vm13, %v5699_v12 }
0x285b   : > { %v6107_v19 = vpop.f32.mrb[104].mxu0 }
0x285c   : > { %v6113_v10 = vpack.c.bf16 %v6107_v19, %v6107_v19  ;;  %v7767_v1 = vpop.f32.mrb[105].mxu0 }
0x285d   : > { %v6110_v54 = vpop.f32.mrb[106].mxu0 }
0x285e   : > { %v7768_v51 = vpop.f32.mrb[107].mxu0  ;;  %7774 = vmatmul.mubr.msk.bf16.vlgmr.msra.gmra.mrb[100].mxu1 %vm412_vm1, %v6113_v10 }
0x285f   : > { %6236 = vmatpush1.bf16.msra.mxu1 %v10235_v34  ;;  %6267 = vmatprep.mubr.bf16.mxu1 %v8506_v11  ;;  %v8211_v34 = vld [vmem:[%s10697_s6 + $0x8] ss:$12 sps:$4 sm:$0xff]   ;;  %v6460_v51 = vstv %s6459_s25 }
0x2860   : > { %6237 = vmatprep.subr.bf16.mxu1 %v10243_v40  ;;  %v8212_v40 = vld [vmem:[%s10697_s6 + $0x20] ss:$12 sps:$4 sm:$0xff]   ;;  %vm6461_vm14 = vcmp.eq.s32.totalorder %v6460_v51, 1 }
0x2863   : > { %6238 = vmatpush1.bf16.msra.mxu1 %v10248_v13  ;;  %v8214_v13 = vld [vmem:[%s10699_s8 + $0x8] sm:$0xff]  }
0x2864   : > { %7777 = vmatprep.subr.bf16.mxu1 %v8504_v5  ;;  %7788 = vmatpush3.bf16.msra.mxu0 %v8214_v13 }
0x2865   : > { %7789 = vmatprep.subr.bf16.mxu0 %v8504_v5 }
0x2868   : > { %7790 = vmatpush3.bf16.msra.mxu0 %v8215_v2 }
0x2869   : > { %7791 = vmatprep.subr.bf16.mxu0 %v8504_v5 }
0x286c   : > { %7792 = vmatpush3.bf16.msra.mxu0 %v8216_v60 }
0x286d   : > { %7793 = vmatprep.subr.bf16.mxu0 %v8504_v5 }
0x2870   : > { %7794 = vmatpush3.bf16.msra.mxu0 %v8217_v39 }
0x2871   : > { %7795 = vmatprep.subr.bf16.mxu0 %v8504_v5 }
0x2874   : > { %7796 = vmatpush3.bf16.msra.mxu0 %v8218_v42 }
0x2875   : > { %7797 = vmatprep.subr.bf16.mxu0 %v8504_v5 }
0x2878   : > { %7798 = vmatpush3.bf16.msra.mxu0 %v8219_v20 }
0x2879   : > { %7799 = vmatprep.subr.bf16.mxu0 %v8504_v5 }
0x287c   : > { %7800 = vmatpush3.bf16.msra.mxu0 %v8220_v61 }
0x2931   : > { %v6167_v21 = vpop.f32.mrb[100].mxu1 }
0x2932   : > { %v7812_v26 = vadd.f32 %v6167_v21, %v5865_v18  ;;  %v7775_v47 = vpop.f32.mrb[101].mxu1 }
0x2933   : > { %v6170_v44 = vpop.f32.mrb[102].mxu1 }
0x2934   : > { %v6173_v49 = vmax.f32 %v7812_v26, 0.0  ;;  %v7776_v63 = vpop.f32.mrb[103].mxu1  ;;  %v1910_v26 = vsub.f32 %v10418_v17, %v10473_v43  ;;  %v3422_v44 = vsub.f32 %v10434_v36, %v10479_v55 }
0x2936   : > { %v6174_v11 = vpack.c.bf16 %v6173_v49, %v6173_v49  ;;  %v1911_v47 = vmul.f32 1.442695, %v1910_v26  ;;  %v4933_v49 = vpop.xlane.xlu1 %4932 }
0x2937   : > { %v4934_v63 = vsub.f32 %v10382_v14, %v4933_v49 }
0x2938   : > { %7006 = vmatmul.mubr.msk.bf16.vlgmr.msra.gmra.mrb[104].mxu1 %vm412_vm1, %v6174_v11 }
0x2939   : > { %7778 = vmatpush3.bf16.msra.mxu1 %v8211_v34  ;;  %7781 = vmatprep.mubr.msk.bf16.mxu1 %vm8507_vm0, %v8504_v5  ;;  %v3423_v34 = vmul.f32 1.442695, %v3422_v44 }
0x293a   : > { %7779 = vmatprep.subr.bf16.mxu1 %v8504_v5 }
0x293d   : > { %7780 = vmatpush3.bf16.msra.mxu1 %v8212_v40 }
0x2940   : > { %7782 = vmatmul.mubr.msk.bf16.vlgmr.msra.gmra.mrb[108].mxu1 %vm412_vm1, %v6174_v11  ;;  %v4935_v11 = vmul.f32 1.442695, %v4934_v63 }
0x2a0b   : > { %v6269_v0 = vpop.f32.mrb[104].mxu1 }
0x2a0c   : > { %v6270_v3 = vadd.f32 %v6269_v0, %v6220_v57  ;;  %v6271_v5 = vpop.f32.mrb[105].mxu1 }
0x2a0d   : > { %v6272_v16 = vadd.f32 %v6271_v5, %v6224_v58  ;;  %v6273_v27 = vpop.f32.mrb[106].mxu1 }
0x2a0e   : > { %v6316_v56 = vadd.f32 %v6270_v3, %v5910_v45  ;;  %v6274_v32 = vpop.f32.mrb[107].mxu1 }
0x2a0f   : > { %v6317_v48 = vadd.f32 %v6272_v16, %v5949_v35 }
0x2a10   : > { %v7008_v7 = vmul.f32 -1.442695, %v6316_v56 }
0x2a11   : > { %v7009_v33 = vmul.f32 -1.442695, %v6317_v48 }
0x2a12   : > { %8339 = vpow2.f32 %v7008_v7 }
0x2a13   : > { %v6310_v30 = vpop.f32.mrb[108].mxu1  ;;  %8341 = vpow2.f32 %v7009_v33 }
0x2a14   : > { %v7783_v59 = vpop.f32.mrb[109].mxu1  ;;  %v6311_v12 = vadd.f32 %v6310_v30, %v6228_v31 }
0x2a15   : > { %v6313_v28 = vpop.f32.mrb[110].mxu1 }
0x2a16   : > { %v7784_v52 = vpop.f32.mrb[111].mxu1 }
0x2a1c   : > { %v8340_v23 = vpop.eup %8339 }
0x2a1d   : > { %v6324_v62 = vadd.f32 1.0, %v8340_v23  ;;  %v8342_v8 = vpop.eup %8341 }
0x2a1e   : > { %v6325_v50 = vadd.f32 1.0, %v8342_v8 }
0x2a1f   : > { %8343 = vrcp.f32 %v6324_v62 }
0x2a20   : > { %8345 = vrcp.f32 %v6325_v50 }
0x2a29   : > { %v8344_v29 = vpop.eup %8343 }
0x2a2a   : > { %v6330_v19 = vmul.f32 %v8344_v29, %v5951_v38  ;;  %v8346_v1 = vpop.eup %8345 }
0x2a2b   : > { %v6333_v54 = vsub.f32 1.0, %v8346_v1  ;;  %v6335_v22 = vmul.f32 %v8346_v1, %v10329_v15 }
0x2a2c   : > { %v6331_v10 = vadd.f32 %v6330_v19, %v6311_v12 }
0x2a2e   : > { %8347 = vtanh.f32 %v6331_v10 }
0x2a2f   : > { %8349 = vpow2.f32 %v1911_v47 }
0x2a30   : > { %8351 = vpow2.f32 %v3423_v34 }
0x2a31   : > { %8353 = vpow2.f32 %v4935_v11 }
0x2a38   : > { %v8348_v18 = vpop.eup %8347 }
0x2a39   : > { %v6334_v21 = vmul.f32 %v8348_v18, %v6333_v54  ;;  %v8350_v42 = vpop.eup %8349 }
0x2a3a   : > { %v1913_v20 = vsel %vm1148_vm12, %v8350_v42, 0.0  ;;  %v8352_v61 = vpop.eup %8351 }
0x2a3b   : > { %v6336_v53 = vadd.f32 %v6335_v22, %v6334_v21  ;;  %v3425_v6 = vsel %vm1148_vm12, %v8352_v61, 0.0  ;;  %v8354_v37 = vpop.eup %8353 }
0x2a3c   : > { %v4937_v57 = vsel %vm1148_vm12, %v8354_v37, 0.0 }
0x2a3d   : > { %v6337_v41 = vpack.c.bf16 %v6336_v53, %v6336_v53  ;;  %v6462_v24 = vsel %vm6461_vm14, %v6336_v53, %v10329_v15  ;;  %v6354_v15 = vld [vmem:[%s10700_s9] sm:$0x1] }
0x2a3e   : > { %6463 = vst [vmem:[#allocation6] sm:$0x1] %v6462_v24 }
0x2a3f   : > { %7802 = vmatmul.mubr.bf16.vlgmr.msra.gmra.mrb[108].mxu0 %v6337_v41 }
0x2b12   : > { %v6437_v40 = vpop.f32.mrb[108].mxu0 }
0x2b13   : > { %v10588_v9 = vadd.f32 %v6437_v40, %v6354_v15  ;;  %v7803_v13 = vpop.f32.mrb[109].mxu0 }
0x2b14   : > { %v6440_v2 = vpop.f32.mrb[110].mxu0 }
0x2b15   : > { %v7804_v60 = vpop.f32.mrb[111].mxu0  ;;  %v6443_v39 = vsel %vm1148_vm12, %v10588_v9, -inf }
0x2b16   : > { %6444 = vmax.xlane.f32.xlu1 %v6443_v39 }
0x2b1a   : > { %1914 = vadd.xlane.f32.xlu1 %v1913_v20 }
0x2b1e   : > { %3426 = vadd.xlane.f32.xlu1 %v3425_v6 }
0x2b22   : > { %4938 = vadd.xlane.f32.xlu1 %v4937_v57 }
0x2ba3   : > { %v6445_v46 = vpop.xlane.xlu1 %6444 }
0x2ba4   : > { %v6446_v58 = vsub.f32 %v10588_v9, %v6445_v46 }
0x2ba6   : > { %v6447_v0 = vmul.f32 1.442695, %v6446_v58 }
0x2ba7   : > { %v1915_v45 = vpop.xlane.xlu1 %1914 }
0x2ba8   : > { %8355 = vpow2.f32 %v6447_v0 }
0x2ba9   : > { %8357 = vlog2.f32 %v1915_v45 }
0x2bab   : > { %v3427_v3 = vpop.xlane.xlu1 %3426 }
0x2bac   : > { %8359 = vlog2.f32 %v3427_v3 }
0x2baf   : > { %v4939_v5 = vpop.xlane.xlu1 %4938 }
0x2bb0   : > { %8361 = vlog2.f32 %v4939_v5 }
0x2bb2   : > { %v8356_v35 = vpop.eup %8355 }
0x2bb3   : > { %v8358_v16 = vpop.eup %8357  ;;  %v6449_v27 = vsel %vm1148_vm12, %v8356_v35, 0.0 }
0x2bb4   : > { %v1917_v56 = vmul.f32 0.6931472, %v8358_v16  ;;  %6450 = vadd.xlane.f32.xlu1 %v6449_v27 }
0x2bb6   : > { %v8360_v32 = vpop.eup %8359  ;;  %v1918_v48 = vadd.f32 %v1917_v56, %v10473_v43 }
0x2bb7   : > { %v3429_v7 = vmul.f32 0.6931472, %v8360_v32 }
0x2bb8   : > { %v1919_v30 = vsub.f32 %v10418_v17, %v1918_v48 }
0x2bb9   : > { %v3430_v59 = vadd.f32 %v3429_v7, %v10479_v55 }
0x2bba   : > { %v8362_v33 = vpop.eup %8361  ;;  %6688 = vst.msk [vmem:[%s8670_s14 + $0x3] sm:$0x1] %vm10492_vm13, %v1919_v30 }
0x2bbb   : > { %v3431_v28 = vsub.f32 %v10434_v36, %v3430_v59  ;;  %v4941_v52 = vmul.f32 0.6931472, %v8362_v33 }
0x2bbd   : > { %6798 = vst.msk [vmem:[%s8670_s14 + $0x7] sm:$0x1] %vm10492_vm13, %v3431_v28  ;;  %v4942_v23 = vadd.f32 %v4941_v52, %v4933_v49 }
0x2bbf   : > { %v4943_v62 = vsub.f32 %v10382_v14, %v4942_v23 }
0x2bc1   : > { %6908 = vst.msk [vmem:[%s8670_s14 + $0xb] sm:$0x1] %vm10492_vm13, %v4943_v62 }
0x2bc2   : > { %8416 = shalt.err (!%p8413_p10)
}
0x2bc3   : > { %s8417_s12 = scalar_lea.hbm %s10702_s11, 16  ;;  %p10729_p13 = pmov %p10728_p0 }
0x2bc4   : > { %p8418_p11 = scmp.ne.s32.totalorder %s10702_s11, %s8417_s12  ;;  %p8423_p7 = scmp.lt.u32.totalorder %s8417_s12, %s10702_s11 }
0x2bc6   : > { %p8419_p1 = pnand %p8418_p11, %p10729_p13 }
0x2bc8   : > { %p8420_p4 = pneg %p8419_p1 }
0x2bca   : > { %p8425_p8 = pnand %p8423_p7, %p8420_p4 }
0x2bcc   : > { %8428 = shalt.err (!%p8425_p8)
}
0x2bcd   : > { %p10730_p12 = pmov %p10728_p0  ;;  %s7028_s30 = sshll.u32 %s8592_s21, 8 }
0x2bce   : > { %s6479_s24 = sshll.u32 %s8670_s14, 4  ;;  %s10634_s13 = scalar_lea.hbm %s10701_s10, %s7028_s30  ;;  %s10637_s24 = int_to_ptr.vmem [resolvable:$true] %s6479_s24 }
0x2bcf   : > { %7851 = dma.vmem_to_hbm [thread:$0]  (%p10730_p12), %s6494_s15, 16, %s10702_s11, [#allocation7]  }
0x2bd0   : > { %s10731_s15 = sand.u32 1, %s8491_s18   ;;  %s8429_s16 = scalar_lea.vmem %s10637_s24, 256 }
0x2bd1   : > { %s10644_s25 = scalar_lea.sflag [#allocation4], %s10731_s15  ;;  %p8430_p0 = scmp.ne.s32.totalorder %s10637_s24, %s8429_s16 }
0x2bd2   : > { %p10732_p3 = scmp.ne.s32.totalorder %s10713_s27, 0  ;;  %s8509_s0 = smov [#allocation5]  }
0x2bd3   : > { %s8433_s1 = sshll.u32 %s8509_s0, 4  ;;  %s8434_s1 = int_to_ptr.vmem [resolvable:$false] %s8433_s1 }
0x2bd4   : > { %p8431_p2 = pnand %p8430_p0, %p10732_p3  ;;  %s8435_s26 = scalar_lea.vmem %s8434_s1, 512 }
0x2bd5   : > { %p8436_p6 = scmp.lt.s32.totalorder %s10637_s24, %s8434_s1  ;;  %p8437_p9 = scmp.lt.s32.totalorder %s8435_s26, %s8429_s16 }
0x2bd6   : > { %p8432_p5 = pneg %p8431_p2 }
0x2bd7   : > { %p8438_p10 = por %p8437_p9, %p8436_p6 }
0x2bd9   : > { %p8439_p11 = pnand %p8438_p10, %p8432_p5 }
0x2c41   : > { %v6451_v14 = vpop.xlane.xlu1 %6450 }
0x2c42   : > { %8363 = vlog2.f32 %v6451_v14 }
0x2c4c   : > { %v8364_v17 = vpop.eup %8363 }
0x2c4d   : > { %v6453_v36 = vmul.f32 0.6931472, %v8364_v17 }
0x2c4f   : > { %v6454_v43 = vadd.f32 %v6453_v36, %v6445_v46 }
0x2c51   : > { %v6455_v55 = vsub.f32 %v10588_v9, %v6454_v43 }
0x2c53   : > { %7018 = vst.msk [vmem:[%s8670_s14 + $0xf] sm:$0x1] %vm10492_vm13, %v6455_v55 }
0x2c54   : > { %8442 = shalt.err (!%p8439_p11)
}
0x2c55   : > { %s8443_s14 = scalar_lea.hbm %s10634_s13, 256  ;;  %s8447_s12 = scalar_lea.hbm %s10701_s10, 512 }
0x2c56   : > { %p8444_p13 = scmp.ne.s32.totalorder %s10634_s13, %s8443_s14  ;;  %p8448_p7 = scmp.lt.u32.totalorder %s10634_s13, %s10701_s10 }
0x2c57   : > { %p8449_p8 = scmp.lt.u32.totalorder %s8447_s12, %s8443_s14  ;;  %p8451_p0 = scmp.lt.u32.totalorder %s8443_s14, %s10634_s13 }
0x2c58   : > { %p8445_p1 = pnand %p8444_p13, %p10732_p3 }
0x2c59   : > { %p8450_p12 = por %p8449_p8, %p8448_p7 }
0x2c5a   : > { %p8446_p4 = pneg %p8445_p1 }
0x2c5b   : > { %p8452_p2 = por %p8451_p0, %p8450_p12 }
0x2c5d   : > { %p8453_p5 = pnand %p8452_p2, %p8446_p4 }
0x2c5f   : > { %8456 = shalt.err (!%p8453_p5)
}
0x2c60   : > { %s8510_s16 = smov 2   ;;  %p10733_p6 = scmp.eq.s32.totalorder %s8592_s21, 1 }
0x2c61   : > { %7849 = dma.vmem_to_hbm [thread:$0]  (%p10732_p3), %s10637_s24, 256, %s10634_s13, %s10644_s25, %s10725_s22, %s10725_s22, %s8510_s16  }
0x2c62   : > { %8478 = dma.done.wait (%p10733_p6), [#allocation7], 16   ;;  %p10734_p9 = pmov %p10733_p6 }
0x2c64   : > { %8480 = vsyncadd (%p10734_p9), [#allocation7], 4294967280 }
0x2c65 PF: > { %p7867_p10 = scmp.ge.s32.totalorder %s8499_s20, 2  ;;  %s6509_s1 = sand.u32 1, %s8487_s17  }
0x2c66   : > { %p10735_p11 = scmp.ne.s32.totalorder %s10714_s28, 0  ;;  %s6510_s27 = scalar_lea.sflag [#allocation4], %s6509_s1 }
0x2c68   : > { %p7860_p13 = pnand %p7867_p10, %p10735_p11 }
0x2c6a   : > { %8482 = dma.done.wait (!%p7860_p13), %s6510_s27, 256  }
0x2c6b   : > { %8484 = vsyncadd (!%p7860_p13), %s6510_s27, 4294967040  ;;  %s10736_s22 = sld [smem:[#allocation11_spill]]  ;;  %p24_p3 = scmp.ge.s32.totalorder %s8596_s23, 4  }
0x2c6c   : > { %s10737_s17 = smov %s8491_s18  ;;  %s10738_s18 = smov %s8495_s19 }
0x2c6d   : > { %s10740_s20 = smov %s8596_s23  ;;  %26 = sbr.rel (!%p24_p3) target bundleno = 8 (0x8), region = 126 }
0x2c71   : > { %s10739_s19 = smov %s10736_s22 }
0x2c74   :  { %6515 = vsyncpa [#allocation3], 1 }
0x2c75   :  { %6517 = vsyncpa [#allocation3 + $0x1], 1 }
0x2c76   :  { %6518 = vsyncpa [#allocation4], 1 }
0x2c77   :  { %6520 = vsyncpa [#allocation4 + $0x1], 1 }
0x2c78   :  { %6521 = vsyncpa [#allocation7], 1 }

</bundles_post_ra>
